<compile_context>
chip_gen: v7x
topology: tpu7x:2x2x1
jax: 0.10.0
libtpu: 0.0.40
codegen_flags: <defaults>
</compile_context>

<pallas_src>
import functools

import jax
import jax.numpy as jnp
from jax.experimental import pallas as pl
from jax.experimental.pallas import tpu as pltpu


# ----------------------------------------------------------------------------
# Fused conv stack kernel: all conv layers for one batch element per grid step.
# ----------------------------------------------------------------------------
def _fused_conv_kernel(*refs, layer_specs, pool_size, n_layers):
    x_ref = refs[0]
    wb_refs = refs[1:1 + 2 * n_layers]
    o_ref = refs[1 + 2 * n_layers]
    act_a, act_b, pool_s = refs[2 + 2 * n_layers:]
    scratches = (act_a, act_b)

    cur_ref = x_ref  # layer 1 reads the (L_in, C_pad) input block directly
    for i, (ksize, l_out, pooled) in enumerate(layer_specs):
        w_ref = wb_refs[2 * i]      # (K, C_in, C_out) bf16
        b_ref = wb_refs[2 * i + 1]  # (1, C_out) f32
        c_out = w_ref.shape[-1]

        # Conv1d as K shifted matmuls; bf16 MXU inputs, f32 accumulation.
        acc = jnp.zeros((l_out, c_out), jnp.float32)
        for k in range(ksize):  # static unrolled loop over kernel taps
            a = cur_ref[pl.ds(k, l_out), :].astype(jnp.bfloat16)
            acc = acc + jnp.dot(a, w_ref[k], preferred_element_type=jnp.float32)
        acc = jnp.maximum(acc + b_ref[...], 0.0)  # bias + ReLU (f32 epilogue)

        if pooled:
            # MaxPool1d(kernel_size=pool_size, stride=pool_size), floor mode.
            pool_s[pl.ds(0, l_out), :] = acc
            l_cur = (l_out - pool_size) // pool_size + 1
            pooled_v = pool_s[pl.ds(0, l_cur, pool_size), :]
            for kk in range(1, pool_size):
                pooled_v = jnp.maximum(pooled_v,
                                       pool_s[pl.ds(kk, l_cur, pool_size), :])
            acc = pooled_v
        else:
            l_cur = l_out

        if i == n_layers - 1:
            o_ref[...] = acc.astype(o_ref.dtype)
        else:
            nxt = scratches[i % 2]                  # ping-pong activation scratch
            nxt[pl.ds(0, l_cur), :] = acc
            cur_ref = nxt


def fused_conv_forward(x_nlc, conv_ws, conv_bs, *, kernel_sizes, pool_layers,
                       pool_size):
    """x_nlc: (N, L_in, C_pad) f32; conv_ws[i]: (K_i, C_in_i, C_out) bf16;
    conv_bs[i]: (1, C_out) f32.  Returns (N, L_final, C_out) bf16."""
    n, l_in, c_pad = x_nlc.shape
    c_out = conv_ws[0].shape[-1]
    n_layers = len(kernel_sizes)

    layer_specs = []
    lengths_after = []
    l_cur = l_in
    for i, ks in enumerate(kernel_sizes):
        l_out = l_cur - ks + 1
        pooled = i in pool_layers
        layer_specs.append((ks, l_out, pooled))
        l_cur = (l_out - pool_size) // pool_size + 1 if pooled else l_out
        lengths_after.append(l_cur)
    l_final = l_cur
    l_scratch = max([8] + lengths_after[:-1])
    l_pool_max = max([8] + [lo for (_, lo, p) in layer_specs if p])

    in_specs = [pl.BlockSpec((None, l_in, c_pad), lambda b: (b, 0, 0))]
    args = [x_nlc]
    for w, b in zip(conv_ws, conv_bs):
        in_specs.append(pl.BlockSpec(w.shape, lambda b: (0, 0, 0)))
        in_specs.append(pl.BlockSpec(b.shape, lambda b: (0, 0)))
        args.extend([w, b])

    kernel = functools.partial(_fused_conv_kernel,
                               layer_specs=tuple(layer_specs),
                               pool_size=pool_size, n_layers=n_layers)
    return pl.pallas_call(
        kernel,
        out_shape=jax.ShapeDtypeStruct((n, l_final, c_out), jnp.bfloat16),
        grid=(n,),
        in_specs=in_specs,
        out_specs=pl.BlockSpec((None, l_final, c_out), lambda b: (b, 0, 0)),
        scratch_shapes=[
            pltpu.VMEM((l_scratch, c_out), jnp.float32),   # activation ping
            pltpu.VMEM((l_scratch, c_out), jnp.float32),   # activation pong
            pltpu.VMEM((l_pool_max, c_out), jnp.float32),  # pre-pool scratch
        ],
        compiler_params=pltpu.CompilerParams(dimension_semantics=("parallel",)),
    )(*args)


# ----------------------------------------------------------------------------
# fc1: y = relu(x @ W + b), tiled over the reduction axis (F_in) with a f32
# VMEM accumulator (init/finalize via pl.when).  Weights stream in bf16 tiles.
# ----------------------------------------------------------------------------
def _fc1_kernel(x_ref, w_ref, b_ref, o_ref, acc_ref):
    k = pl.program_id(0)

    @pl.when(k == 0)
    def _init():
        acc_ref[...] = jnp.zeros_like(acc_ref)

    acc_ref[...] += jnp.dot(x_ref[...], w_ref[...],
                            preferred_element_type=jnp.float32)

    @pl.when(k == pl.num_programs(0) - 1)
    def _finalize():
        y = jnp.maximum(acc_ref[...] + b_ref[...], 0.0)
        o_ref[...] = y.astype(o_ref.dtype)


def fc1_relu(x, w, b, *, tk):
    """x: (N, F_in) bf16; w: (F_in, F_out) bf16; b: (1, F_out) f32."""
    n, f_in = x.shape
    f_out = w.shape[1]
    n_k = f_in // tk
    return pl.pallas_call(
        _fc1_kernel,
        out_shape=jax.ShapeDtypeStruct((n, f_out), jnp.bfloat16),
        grid=(n_k,),
        in_specs=[
            pl.BlockSpec((n, tk), lambda k: (0, k)),
            pl.BlockSpec((tk, f_out), lambda k: (k, 0)),
            pl.BlockSpec((1, f_out), lambda k: (0, 0)),
        ],
        out_specs=pl.BlockSpec((n, f_out), lambda k: (0, 0)),
        scratch_shapes=[pltpu.VMEM((n, f_out), jnp.float32)],
        compiler_params=pltpu.CompilerParams(dimension_semantics=("arbitrary",)),
    )(x, w, b)


# ----------------------------------------------------------------------------
# fc2 + fc3 + log_softmax fused in a single small kernel (weights VMEM-resident).
# ----------------------------------------------------------------------------
def _fc_tail_kernel(x_ref, w2_ref, b2_ref, w3_ref, b3_ref, o_ref):
    h = jnp.dot(x_ref[...], w2_ref[...], preferred_element_type=jnp.float32)
    h = jnp.maximum(h + b2_ref[...], 0.0)
    y = jnp.dot(h.astype(jnp.bfloat16), w3_ref[...],
                preferred_element_type=jnp.float32)
    y = y + b3_ref[...]
    y = y - jnp.max(y, axis=-1, keepdims=True)
    y = y - jnp.log(jnp.sum(jnp.exp(y), axis=-1, keepdims=True))
    o_ref[...] = y


def fc_tail(x, w2, b2, w3, b3):
    n = x.shape[0]
    n_class = w3.shape[1]
    return pl.pallas_call(
        _fc_tail_kernel,
        out_shape=jax.ShapeDtypeStruct((n, n_class), jnp.float32),
    )(x, w2, b2, w3, b3)


# ----------------------------------------------------------------------------
# CharCNN module (parameters initialised deterministically in-script).
# ----------------------------------------------------------------------------
class CharCNNPallas:
    def __init__(self, n_class=4, n_char=70, max_seq_len=1014,
                 kernel_sizes=(7, 7, 3, 3, 3, 3), channel_size=256,
                 pool_size=3, fc_size=1024, dropout=0.5, key=None):
        self.n_class = n_class
        self.n_char = n_char
        self.max_seq_len = max_seq_len
        self.kernel_sizes = tuple(kernel_sizes)
        self.channel_size = channel_size
        self.pool_size = pool_size
        self.pool_layers = (0, 1, 5)  # conv1, conv2, conv6 have MaxPool1d
        self.final_linear_len = (max_seq_len - 96) // 27
        self.fc_size = fc_size
        self.c_pad = ((n_char + 127) // 128) * 128  # pad conv1 C_in to lane width

        if key is None:
            key = jax.random.PRNGKey(0)
        keys = jax.random.split(key, 2 * len(self.kernel_sizes) + 6)

        def init_w(k, shape, fan_in):
            return jax.random.normal(k, shape, jnp.float32) / jnp.sqrt(fan_in)

        # Conv params: PyTorch layout (C_out, C_in, K) -> (K, C_in, C_out) bf16,
        # conv1's C_in zero-padded; all layout work done once at init.
        self.conv_ws, self.conv_bs = [], []
        c_in = n_char
        for i, ks in enumerate(self.kernel_sizes):
            w = init_w(keys[2 * i], (channel_size, c_in, ks), c_in * ks)
            b = init_w(keys[2 * i + 1], (channel_size,), c_in * ks)
            w_kio = jnp.transpose(w, (2, 1, 0))
            if i == 0 and self.c_pad != c_in:
                w_kio = jnp.pad(w_kio, ((0, 0), (0, self.c_pad - c_in), (0, 0)))
            self.conv_ws.append(w_kio.astype(jnp.bfloat16))
            self.conv_bs.append(b.reshape(1, -1).astype(jnp.float32))
            c_in = channel_size

        # FC params in PyTorch layout (out, in), converted to (in, out).
        fc_in = channel_size * self.final_linear_len
        kw = keys[2 * len(self.kernel_sizes):]
        w1 = init_w(kw[0], (fc_size, fc_in), fc_in)
        b1 = init_w(kw[1], (fc_size,), fc_in)
        w2 = init_w(kw[2], (fc_size, fc_size), fc_size)
        b2 = init_w(kw[3], (fc_size,), fc_size)
        w3 = init_w(kw[4], (n_class, fc_size), fc_size)
        b3 = init_w(kw[5], (n_class,), fc_size)

        # fc1 rows are in PyTorch's (c*L + l) flatten order; permute once into
        # (l*C + c) order so the (N, L, C) conv output flattens with no transpose.
        w1_clo = w1.T.reshape(channel_size, self.final_linear_len, fc_size)
        w1_lco = jnp.transpose(w1_clo, (1, 0, 2)).reshape(fc_in, fc_size)
        self.w1 = w1_lco.astype(jnp.bfloat16)
        self.b1 = b1.reshape(1, -1).astype(jnp.float32)
        self.w2 = w2.T.astype(jnp.bfloat16)
        self.b2 = b2.reshape(1, -1).astype(jnp.float32)
        self.w3 = w3.T.astype(jnp.bfloat16)
        self.b3 = b3.reshape(1, -1).astype(jnp.float32)

        # Reduction-tile size for fc1: largest divisor of fc_in <= 2048.
        self.fc1_tk = fc_in
        for cand in (2048, 1024, 512, 256, 128, 64, 32, 16, 8):
            if fc_in % cand == 0:
                self.fc1_tk = cand
                break

        self._forward = jax.jit(self._forward_impl)

    def _forward_impl(self, x_ncl):
        """x_ncl: (N, n_char, max_seq_len) float32 — same layout as PyTorch."""
        n = x_ncl.shape[0]
        # (N, C, L) -> (N, L, C) internal layout; zero-pad channels to lane width.
        x = jnp.transpose(x_ncl.astype(jnp.float32), (0, 2, 1))
        if self.c_pad != self.n_char:
            x = jnp.pad(x, ((0, 0), (0, 0), (0, self.c_pad - self.n_char)))

        h = fused_conv_forward(x, self.conv_ws, self.conv_bs,
                               kernel_sizes=self.kernel_sizes,
                               pool_layers=self.pool_layers,
                               pool_size=self.pool_size)
        h = h.reshape(n, -1)  # (N, L_final*C) — matches the permuted fc1 rows

        # TODO(synk): dropout is treated as inference-mode identity (no RNG mask).
        h = fc1_relu(h, self.w1, self.b1, tk=self.fc1_tk)
        return fc_tail(h, self.w2, self.b2, self.w3, self.b3)

    def __call__(self, x_ncl):
        return self._forward(x_ncl)


if __name__ == "__main__":
    # Small, self-consistent shapes:
    #   max_seq_len=150 -> conv/pool chain yields length 2 == (150-96)//27.
    batch = 2
    n_char = 70
    max_seq_len = 150
    channel_size = 64
    fc_size = 128
    n_class = 4

    key = jax.random.PRNGKey(0)
    k_params, k_input = jax.random.split(key)

    model = CharCNNPallas(n_class=n_class, n_char=n_char,
                          max_seq_len=max_seq_len, channel_size=channel_size,
                          fc_size=fc_size, key=k_params)

    x = jax.random.normal(k_input, (batch, n_char, max_seq_len), jnp.float32)

    out = model(x)
    out = jax.block_until_ready(out)

    assert out.shape == (batch, n_class), out.shape
    # log-softmax rows must (approximately) sum to 1 in prob space.
    assert jnp.allclose(jnp.sum(jnp.exp(out), axis=-1), 1.0, atol=1e-4)
    print("KERNEL_OK")
</pallas_src>

<mosaic_0001>
module attributes {stable_mosaic.version = 11 : i64} {
  func.func @_fused_conv_kernel(%arg0: i32, %arg1: memref<1x150x128xf32, #tpu.memory_space<vmem>>, %arg2: memref<7x128x64xbf16, #tpu.memory_space<vmem>>, %arg3: memref<1x64xf32, #tpu.memory_space<vmem>>, %arg4: memref<7x64x64xbf16, #tpu.memory_space<vmem>>, %arg5: memref<1x64xf32, #tpu.memory_space<vmem>>, %arg6: memref<3x64x64xbf16, #tpu.memory_space<vmem>>, %arg7: memref<1x64xf32, #tpu.memory_space<vmem>>, %arg8: memref<3x64x64xbf16, #tpu.memory_space<vmem>>, %arg9: memref<1x64xf32, #tpu.memory_space<vmem>>, %arg10: memref<3x64x64xbf16, #tpu.memory_space<vmem>>, %arg11: memref<1x64xf32, #tpu.memory_space<vmem>>, %arg12: memref<3x64x64xbf16, #tpu.memory_space<vmem>>, %arg13: memref<1x64xf32, #tpu.memory_space<vmem>>, %arg14: memref<1x2x64xbf16, #tpu.memory_space<vmem>>, %arg15: memref<48x64xf32, #tpu.memory_space<vmem>>, %arg16: memref<48x64xf32, #tpu.memory_space<vmem>>, %arg17: memref<144x64xf32, #tpu.memory_space<vmem>>) attributes {dimension_semantics = [#tpu.dimension_semantics<parallel>], iteration_bounds = array<i64: 2>, scalar_prefetch = 0 : i64, scratch_operands = 3 : i64, tpu.core_type = #tpu.core_type<tc>, window_params = [{transform_indices = @transform_0, window_bounds = array<i64: 1, 150, 128>}, {pipeline_mode = #tpu.pipeline_mode<synchronous>, transform_indices = @transform_1, window_bounds = array<i64: 7, 128, 64>}, {pipeline_mode = #tpu.pipeline_mode<synchronous>, transform_indices = @transform_2, window_bounds = array<i64: 1, 64>}, {pipeline_mode = #tpu.pipeline_mode<synchronous>, transform_indices = @transform_3, window_bounds = array<i64: 7, 64, 64>}, {pipeline_mode = #tpu.pipeline_mode<synchronous>, transform_indices = @transform_4, window_bounds = array<i64: 1, 64>}, {pipeline_mode = #tpu.pipeline_mode<synchronous>, transform_indices = @transform_5, window_bounds = array<i64: 3, 64, 64>}, {pipeline_mode = #tpu.pipeline_mode<synchronous>, transform_indices = @transform_6, window_bounds = array<i64: 1, 64>}, {pipeline_mode = #tpu.pipeline_mode<synchronous>, transform_indices = @transform_7, window_bounds = array<i64: 3, 64, 64>}, {pipeline_mode = #tpu.pipeline_mode<synchronous>, transform_indices = @transform_8, window_bounds = array<i64: 1, 64>}, {pipeline_mode = #tpu.pipeline_mode<synchronous>, transform_indices = @transform_9, window_bounds = array<i64: 3, 64, 64>}, {pipeline_mode = #tpu.pipeline_mode<synchronous>, transform_indices = @transform_10, window_bounds = array<i64: 1, 64>}, {pipeline_mode = #tpu.pipeline_mode<synchronous>, transform_indices = @transform_11, window_bounds = array<i64: 3, 64, 64>}, {pipeline_mode = #tpu.pipeline_mode<synchronous>, transform_indices = @transform_12, window_bounds = array<i64: 1, 64>}, {transform_indices = @transform_13, window_bounds = array<i64: 1, 2, 64>}]} {
    %cst = arith.constant 0.000000e+00 : f32
    %0 = vector.broadcast %cst : f32 to vector<144x64xf32>
    %c0 = arith.constant 0 : index
    %c0_0 = arith.constant 0 : index
    %c0_1 = arith.constant 0 : index
    %1 = vector.load %arg1[%c0, %c0_0, %c0_1] : memref<1x150x128xf32, #tpu.memory_space<vmem>>, vector<1x144x128xf32>
    %2 = vector.shape_cast %1 : vector<1x144x128xf32> to vector<144x128xf32>
    %3 = arith.truncf %2 : vector<144x128xf32> to vector<144x128xbf16>
    %c0_2 = arith.constant 0 : index
    %c0_3 = arith.constant 0 : index
    %c0_4 = arith.constant 0 : index
    %4 = vector.load %arg2[%c0_2, %c0_3, %c0_4] : memref<7x128x64xbf16, #tpu.memory_space<vmem>>, vector<1x128x64xbf16>
    %5 = vector.shape_cast %4 : vector<1x128x64xbf16> to vector<128x64xbf16>
    %cst_5 = arith.constant dense<0.000000e+00> : vector<144x64xf32>
    %6 = tpu.matmul %3, %5, %cst_5 {dimension_numbers = #tpu.dot_dimension_numbers<[1], [0], [0], [1], [0, 0, 1, 1], [], []>} : vector<144x128xbf16>, vector<128x64xbf16>, vector<144x64xf32> -> vector<144x64xf32>
    %7 = arith.addf %0, %6 : vector<144x64xf32>
    %c0_6 = arith.constant 0 : index
    %c1 = arith.constant 1 : index
    %c0_7 = arith.constant 0 : index
    %8 = vector.load %arg1[%c0_6, %c1, %c0_7] : memref<1x150x128xf32, #tpu.memory_space<vmem>>, vector<1x144x128xf32>
    %9 = vector.shape_cast %8 : vector<1x144x128xf32> to vector<144x128xf32>
    %10 = arith.truncf %9 : vector<144x128xf32> to vector<144x128xbf16>
    %c1_8 = arith.constant 1 : index
    %c0_9 = arith.constant 0 : index
    %c0_10 = arith.constant 0 : index
    %11 = vector.load %arg2[%c1_8, %c0_9, %c0_10] : memref<7x128x64xbf16, #tpu.memory_space<vmem>>, vector<1x128x64xbf16>
    %12 = vector.shape_cast %11 : vector<1x128x64xbf16> to vector<128x64xbf16>
    %cst_11 = arith.constant dense<0.000000e+00> : vector<144x64xf32>
    %13 = tpu.matmul %10, %12, %cst_11 {dimension_numbers = #tpu.dot_dimension_numbers<[1], [0], [0], [1], [0, 0, 1, 1], [], []>} : vector<144x128xbf16>, vector<128x64xbf16>, vector<144x64xf32> -> vector<144x64xf32>
    %14 = arith.addf %7, %13 : vector<144x64xf32>
    %c0_12 = arith.constant 0 : index
    %c2 = arith.constant 2 : index
    %c0_13 = arith.constant 0 : index
    %15 = vector.load %arg1[%c0_12, %c2, %c0_13] : memref<1x150x128xf32, #tpu.memory_space<vmem>>, vector<1x144x128xf32>
    %16 = vector.shape_cast %15 : vector<1x144x128xf32> to vector<144x128xf32>
    %17 = arith.truncf %16 : vector<144x128xf32> to vector<144x128xbf16>
    %c2_14 = arith.constant 2 : index
    %c0_15 = arith.constant 0 : index
    %c0_16 = arith.constant 0 : index
    %18 = vector.load %arg2[%c2_14, %c0_15, %c0_16] : memref<7x128x64xbf16, #tpu.memory_space<vmem>>, vector<1x128x64xbf16>
    %19 = vector.shape_cast %18 : vector<1x128x64xbf16> to vector<128x64xbf16>
    %cst_17 = arith.constant dense<0.000000e+00> : vector<144x64xf32>
    %20 = tpu.matmul %17, %19, %cst_17 {dimension_numbers = #tpu.dot_dimension_numbers<[1], [0], [0], [1], [0, 0, 1, 1], [], []>} : vector<144x128xbf16>, vector<128x64xbf16>, vector<144x64xf32> -> vector<144x64xf32>
    %21 = arith.addf %14, %20 : vector<144x64xf32>
    %c0_18 = arith.constant 0 : index
    %c3 = arith.constant 3 : index
    %c0_19 = arith.constant 0 : index
    %22 = vector.load %arg1[%c0_18, %c3, %c0_19] : memref<1x150x128xf32, #tpu.memory_space<vmem>>, vector<1x144x128xf32>
    %23 = vector.shape_cast %22 : vector<1x144x128xf32> to vector<144x128xf32>
    %24 = arith.truncf %23 : vector<144x128xf32> to vector<144x128xbf16>
    %c3_20 = arith.constant 3 : index
    %c0_21 = arith.constant 0 : index
    %c0_22 = arith.constant 0 : index
    %25 = vector.load %arg2[%c3_20, %c0_21, %c0_22] : memref<7x128x64xbf16, #tpu.memory_space<vmem>>, vector<1x128x64xbf16>
    %26 = vector.shape_cast %25 : vector<1x128x64xbf16> to vector<128x64xbf16>
    %cst_23 = arith.constant dense<0.000000e+00> : vector<144x64xf32>
    %27 = tpu.matmul %24, %26, %cst_23 {dimension_numbers = #tpu.dot_dimension_numbers<[1], [0], [0], [1], [0, 0, 1, 1], [], []>} : vector<144x128xbf16>, vector<128x64xbf16>, vector<144x64xf32> -> vector<144x64xf32>
    %28 = arith.addf %21, %27 : vector<144x64xf32>
    %c0_24 = arith.constant 0 : index
    %c4 = arith.constant 4 : index
    %c0_25 = arith.constant 0 : index
    %29 = vector.load %arg1[%c0_24, %c4, %c0_25] : memref<1x150x128xf32, #tpu.memory_space<vmem>>, vector<1x144x128xf32>
    %30 = vector.shape_cast %29 : vector<1x144x128xf32> to vector<144x128xf32>
    %31 = arith.truncf %30 : vector<144x128xf32> to vector<144x128xbf16>
    %c4_26 = arith.constant 4 : index
    %c0_27 = arith.constant 0 : index
    %c0_28 = arith.constant 0 : index
    %32 = vector.load %arg2[%c4_26, %c0_27, %c0_28] : memref<7x128x64xbf16, #tpu.memory_space<vmem>>, vector<1x128x64xbf16>
    %33 = vector.shape_cast %32 : vector<1x128x64xbf16> to vector<128x64xbf16>
    %cst_29 = arith.constant dense<0.000000e+00> : vector<144x64xf32>
    %34 = tpu.matmul %31, %33, %cst_29 {dimension_numbers = #tpu.dot_dimension_numbers<[1], [0], [0], [1], [0, 0, 1, 1], [], []>} : vector<144x128xbf16>, vector<128x64xbf16>, vector<144x64xf32> -> vector<144x64xf32>
    %35 = arith.addf %28, %34 : vector<144x64xf32>
    %c0_30 = arith.constant 0 : index
    %c5 = arith.constant 5 : index
    %c0_31 = arith.constant 0 : index
    %36 = vector.load %arg1[%c0_30, %c5, %c0_31] : memref<1x150x128xf32, #tpu.memory_space<vmem>>, vector<1x144x128xf32>
    %37 = vector.shape_cast %36 : vector<1x144x128xf32> to vector<144x128xf32>
    %38 = arith.truncf %37 : vector<144x128xf32> to vector<144x128xbf16>
    %c5_32 = arith.constant 5 : index
    %c0_33 = arith.constant 0 : index
    %c0_34 = arith.constant 0 : index
    %39 = vector.load %arg2[%c5_32, %c0_33, %c0_34] : memref<7x128x64xbf16, #tpu.memory_space<vmem>>, vector<1x128x64xbf16>
    %40 = vector.shape_cast %39 : vector<1x128x64xbf16> to vector<128x64xbf16>
    %cst_35 = arith.constant dense<0.000000e+00> : vector<144x64xf32>
    %41 = tpu.matmul %38, %40, %cst_35 {dimension_numbers = #tpu.dot_dimension_numbers<[1], [0], [0], [1], [0, 0, 1, 1], [], []>} : vector<144x128xbf16>, vector<128x64xbf16>, vector<144x64xf32> -> vector<144x64xf32>
    %42 = arith.addf %35, %41 : vector<144x64xf32>
    %c0_36 = arith.constant 0 : index
    %c6 = arith.constant 6 : index
    %c0_37 = arith.constant 0 : index
    %43 = vector.load %arg1[%c0_36, %c6, %c0_37] : memref<1x150x128xf32, #tpu.memory_space<vmem>>, vector<1x144x128xf32>
    %44 = vector.shape_cast %43 : vector<1x144x128xf32> to vector<144x128xf32>
    %45 = arith.truncf %44 : vector<144x128xf32> to vector<144x128xbf16>
    %c6_38 = arith.constant 6 : index
    %c0_39 = arith.constant 0 : index
    %c0_40 = arith.constant 0 : index
    %46 = vector.load %arg2[%c6_38, %c0_39, %c0_40] : memref<7x128x64xbf16, #tpu.memory_space<vmem>>, vector<1x128x64xbf16>
    %47 = vector.shape_cast %46 : vector<1x128x64xbf16> to vector<128x64xbf16>
    %cst_41 = arith.constant dense<0.000000e+00> : vector<144x64xf32>
    %48 = tpu.matmul %45, %47, %cst_41 {dimension_numbers = #tpu.dot_dimension_numbers<[1], [0], [0], [1], [0, 0, 1, 1], [], []>} : vector<144x128xbf16>, vector<128x64xbf16>, vector<144x64xf32> -> vector<144x64xf32>
    %49 = arith.addf %42, %48 : vector<144x64xf32>
    %c0_42 = arith.constant 0 : index
    %c0_43 = arith.constant 0 : index
    %50 = vector.load %arg3[%c0_42, %c0_43] : memref<1x64xf32, #tpu.memory_space<vmem>>, vector<1x64xf32>
    %51 = vector.broadcast %50 : vector<1x64xf32> to vector<144x64xf32>
    %52 = arith.addf %49, %51 : vector<144x64xf32>
    %cst_44 = arith.constant 0.000000e+00 : f32
    %53 = vector.broadcast %cst_44 : f32 to vector<144x64xf32>
    %54 = arith.maximumf %52, %53 : vector<144x64xf32>
    %c0_45 = arith.constant 0 : index
    %c0_46 = arith.constant 0 : index
    %55 = vector.load %arg17[%c0_45, %c0_46] : memref<144x64xf32, #tpu.memory_space<vmem>>, vector<144x64xf32>
    tpu.vector_store %arg17[%c0_45, %c0_46], %54 {strides = array<i32>} : memref<144x64xf32, #tpu.memory_space<vmem>>, vector<144x64xf32>,
    %c0_47 = arith.constant 0 : index
    %c0_48 = arith.constant 0 : index
    %56 = tpu.strided_load %arg17[%c0_47, %c0_48] {strides = array<i32: 3, 1>} : memref<144x64xf32, #tpu.memory_space<vmem>>, vector<48x64xf32>
    %c1_49 = arith.constant 1 : index
    %c0_50 = arith.constant 0 : index
    %57 = tpu.strided_load %arg17[%c1_49, %c0_50] {strides = array<i32: 3, 1>} : memref<144x64xf32, #tpu.memory_space<vmem>>, vector<48x64xf32>
    %58 = arith.maximumf %56, %57 : vector<48x64xf32>
    %c2_51 = arith.constant 2 : index
    %c0_52 = arith.constant 0 : index
    %59 = tpu.strided_load %arg17[%c2_51, %c0_52] {strides = array<i32: 3, 1>} : memref<144x64xf32, #tpu.memory_space<vmem>>, vector<48x64xf32>
    %60 = arith.maximumf %58, %59 : vector<48x64xf32>
    %c0_53 = arith.constant 0 : index
    %c0_54 = arith.constant 0 : index
    %61 = vector.load %arg15[%c0_53, %c0_54] : memref<48x64xf32, #tpu.memory_space<vmem>>, vector<48x64xf32>
    tpu.vector_store %arg15[%c0_53, %c0_54], %60 {strides = array<i32>} : memref<48x64xf32, #tpu.memory_space<vmem>>, vector<48x64xf32>,
    %cst_55 = arith.constant 0.000000e+00 : f32
    %62 = vector.broadcast %cst_55 : f32 to vector<42x64xf32>
    %c0_56 = arith.constant 0 : index
    %c0_57 = arith.constant 0 : index
    %63 = vector.load %arg15[%c0_56, %c0_57] : memref<48x64xf32, #tpu.memory_space<vmem>>, vector<42x64xf32>
    %64 = arith.truncf %63 : vector<42x64xf32> to vector<42x64xbf16>
    %c0_58 = arith.constant 0 : index
    %c0_59 = arith.constant 0 : index
    %c0_60 = arith.constant 0 : index
    %65 = vector.load %arg4[%c0_58, %c0_59, %c0_60] : memref<7x64x64xbf16, #tpu.memory_space<vmem>>, vector<1x64x64xbf16>
    %66 = vector.shape_cast %65 : vector<1x64x64xbf16> to vector<64x64xbf16>
    %cst_61 = arith.constant dense<0.000000e+00> : vector<42x64xf32>
    %67 = tpu.matmul %64, %66, %cst_61 {dimension_numbers = #tpu.dot_dimension_numbers<[1], [0], [0], [1], [0, 0, 1, 1], [], []>} : vector<42x64xbf16>, vector<64x64xbf16>, vector<42x64xf32> -> vector<42x64xf32>
    %68 = arith.addf %62, %67 : vector<42x64xf32>
    %c1_62 = arith.constant 1 : index
    %c0_63 = arith.constant 0 : index
    %69 = vector.load %arg15[%c1_62, %c0_63] : memref<48x64xf32, #tpu.memory_space<vmem>>, vector<42x64xf32>
    %70 = arith.truncf %69 : vector<42x64xf32> to vector<42x64xbf16>
    %c1_64 = arith.constant 1 : index
    %c0_65 = arith.constant 0 : index
    %c0_66 = arith.constant 0 : index
    %71 = vector.load %arg4[%c1_64, %c0_65, %c0_66] : memref<7x64x64xbf16, #tpu.memory_space<vmem>>, vector<1x64x64xbf16>
    %72 = vector.shape_cast %71 : vector<1x64x64xbf16> to vector<64x64xbf16>
    %cst_67 = arith.constant dense<0.000000e+00> : vector<42x64xf32>
    %73 = tpu.matmul %70, %72, %cst_67 {dimension_numbers = #tpu.dot_dimension_numbers<[1], [0], [0], [1], [0, 0, 1, 1], [], []>} : vector<42x64xbf16>, vector<64x64xbf16>, vector<42x64xf32> -> vector<42x64xf32>
    %74 = arith.addf %68, %73 : vector<42x64xf32>
    %c2_68 = arith.constant 2 : index
    %c0_69 = arith.constant 0 : index
    %75 = vector.load %arg15[%c2_68, %c0_69] : memref<48x64xf32, #tpu.memory_space<vmem>>, vector<42x64xf32>
    %76 = arith.truncf %75 : vector<42x64xf32> to vector<42x64xbf16>
    %c2_70 = arith.constant 2 : index
    %c0_71 = arith.constant 0 : index
    %c0_72 = arith.constant 0 : index
    %77 = vector.load %arg4[%c2_70, %c0_71, %c0_72] : memref<7x64x64xbf16, #tpu.memory_space<vmem>>, vector<1x64x64xbf16>
    %78 = vector.shape_cast %77 : vector<1x64x64xbf16> to vector<64x64xbf16>
    %cst_73 = arith.constant dense<0.000000e+00> : vector<42x64xf32>
    %79 = tpu.matmul %76, %78, %cst_73 {dimension_numbers = #tpu.dot_dimension_numbers<[1], [0], [0], [1], [0, 0, 1, 1], [], []>} : vector<42x64xbf16>, vector<64x64xbf16>, vector<42x64xf32> -> vector<42x64xf32>
    %80 = arith.addf %74, %79 : vector<42x64xf32>
    %c3_74 = arith.constant 3 : index
    %c0_75 = arith.constant 0 : index
    %81 = vector.load %arg15[%c3_74, %c0_75] : memref<48x64xf32, #tpu.memory_space<vmem>>, vector<42x64xf32>
    %82 = arith.truncf %81 : vector<42x64xf32> to vector<42x64xbf16>
    %c3_76 = arith.constant 3 : index
    %c0_77 = arith.constant 0 : index
    %c0_78 = arith.constant 0 : index
    %83 = vector.load %arg4[%c3_76, %c0_77, %c0_78] : memref<7x64x64xbf16, #tpu.memory_space<vmem>>, vector<1x64x64xbf16>
    %84 = vector.shape_cast %83 : vector<1x64x64xbf16> to vector<64x64xbf16>
    %cst_79 = arith.constant dense<0.000000e+00> : vector<42x64xf32>
    %85 = tpu.matmul %82, %84, %cst_79 {dimension_numbers = #tpu.dot_dimension_numbers<[1], [0], [0], [1], [0, 0, 1, 1], [], []>} : vector<42x64xbf16>, vector<64x64xbf16>, vector<42x64xf32> -> vector<42x64xf32>
    %86 = arith.addf %80, %85 : vector<42x64xf32>
    %c4_80 = arith.constant 4 : index
    %c0_81 = arith.constant 0 : index
    %87 = vector.load %arg15[%c4_80, %c0_81] : memref<48x64xf32, #tpu.memory_space<vmem>>, vector<42x64xf32>
    %88 = arith.truncf %87 : vector<42x64xf32> to vector<42x64xbf16>
    %c4_82 = arith.constant 4 : index
    %c0_83 = arith.constant 0 : index
    %c0_84 = arith.constant 0 : index
    %89 = vector.load %arg4[%c4_82, %c0_83, %c0_84] : memref<7x64x64xbf16, #tpu.memory_space<vmem>>, vector<1x64x64xbf16>
    %90 = vector.shape_cast %89 : vector<1x64x64xbf16> to vector<64x64xbf16>
    %cst_85 = arith.constant dense<0.000000e+00> : vector<42x64xf32>
    %91 = tpu.matmul %88, %90, %cst_85 {dimension_numbers = #tpu.dot_dimension_numbers<[1], [0], [0], [1], [0, 0, 1, 1], [], []>} : vector<42x64xbf16>, vector<64x64xbf16>, vector<42x64xf32> -> vector<42x64xf32>
    %92 = arith.addf %86, %91 : vector<42x64xf32>
    %c5_86 = arith.constant 5 : index
    %c0_87 = arith.constant 0 : index
    %93 = vector.load %arg15[%c5_86, %c0_87] : memref<48x64xf32, #tpu.memory_space<vmem>>, vector<42x64xf32>
    %94 = arith.truncf %93 : vector<42x64xf32> to vector<42x64xbf16>
    %c5_88 = arith.constant 5 : index
    %c0_89 = arith.constant 0 : index
    %c0_90 = arith.constant 0 : index
    %95 = vector.load %arg4[%c5_88, %c0_89, %c0_90] : memref<7x64x64xbf16, #tpu.memory_space<vmem>>, vector<1x64x64xbf16>
    %96 = vector.shape_cast %95 : vector<1x64x64xbf16> to vector<64x64xbf16>
    %cst_91 = arith.constant dense<0.000000e+00> : vector<42x64xf32>
    %97 = tpu.matmul %94, %96, %cst_91 {dimension_numbers = #tpu.dot_dimension_numbers<[1], [0], [0], [1], [0, 0, 1, 1], [], []>} : vector<42x64xbf16>, vector<64x64xbf16>, vector<42x64xf32> -> vector<42x64xf32>
    %98 = arith.addf %92, %97 : vector<42x64xf32>
    %c6_92 = arith.constant 6 : index
    %c0_93 = arith.constant 0 : index
    %99 = vector.load %arg15[%c6_92, %c0_93] : memref<48x64xf32, #tpu.memory_space<vmem>>, vector<42x64xf32>
    %100 = arith.truncf %99 : vector<42x64xf32> to vector<42x64xbf16>
    %c6_94 = arith.constant 6 : index
    %c0_95 = arith.constant 0 : index
    %c0_96 = arith.constant 0 : index
    %101 = vector.load %arg4[%c6_94, %c0_95, %c0_96] : memref<7x64x64xbf16, #tpu.memory_space<vmem>>, vector<1x64x64xbf16>
    %102 = vector.shape_cast %101 : vector<1x64x64xbf16> to vector<64x64xbf16>
    %cst_97 = arith.constant dense<0.000000e+00> : vector<42x64xf32>
    %103 = tpu.matmul %100, %102, %cst_97 {dimension_numbers = #tpu.dot_dimension_numbers<[1], [0], [0], [1], [0, 0, 1, 1], [], []>} : vector<42x64xbf16>, vector<64x64xbf16>, vector<42x64xf32> -> vector<42x64xf32>
    %104 = arith.addf %98, %103 : vector<42x64xf32>
    %c0_98 = arith.constant 0 : index
    %c0_99 = arith.constant 0 : index
    %105 = vector.load %arg5[%c0_98, %c0_99] : memref<1x64xf32, #tpu.memory_space<vmem>>, vector<1x64xf32>
    %106 = vector.broadcast %105 : vector<1x64xf32> to vector<42x64xf32>
    %107 = arith.addf %104, %106 : vector<42x64xf32>
    %cst_100 = arith.constant 0.000000e+00 : f32
    %108 = vector.broadcast %cst_100 : f32 to vector<42x64xf32>
    %109 = arith.maximumf %107, %108 : vector<42x64xf32>
    %c0_101 = arith.constant 0 : index
    %c0_102 = arith.constant 0 : index
    %110 = vector.load %arg17[%c0_101, %c0_102] : memref<144x64xf32, #tpu.memory_space<vmem>>, vector<42x64xf32>
    tpu.vector_store %arg17[%c0_101, %c0_102], %109 {strides = array<i32>} : memref<144x64xf32, #tpu.memory_space<vmem>>, vector<42x64xf32>,
    %c0_103 = arith.constant 0 : index
    %c0_104 = arith.constant 0 : index
    %111 = tpu.strided_load %arg17[%c0_103, %c0_104] {strides = array<i32: 3, 1>} : memref<144x64xf32, #tpu.memory_space<vmem>>, vector<14x64xf32>
    %c1_105 = arith.constant 1 : index
    %c0_106 = arith.constant 0 : index
    %112 = tpu.strided_load %arg17[%c1_105, %c0_106] {strides = array<i32: 3, 1>} : memref<144x64xf32, #tpu.memory_space<vmem>>, vector<14x64xf32>
    %113 = arith.maximumf %111, %112 : vector<14x64xf32>
    %c2_107 = arith.constant 2 : index
    %c0_108 = arith.constant 0 : index
    %114 = tpu.strided_load %arg17[%c2_107, %c0_108] {strides = array<i32: 3, 1>} : memref<144x64xf32, #tpu.memory_space<vmem>>, vector<14x64xf32>
    %115 = arith.maximumf %113, %114 : vector<14x64xf32>
    %c0_109 = arith.constant 0 : index
    %c0_110 = arith.constant 0 : index
    %116 = vector.load %arg16[%c0_109, %c0_110] : memref<48x64xf32, #tpu.memory_space<vmem>>, vector<14x64xf32>
    tpu.vector_store %arg16[%c0_109, %c0_110], %115 {strides = array<i32>} : memref<48x64xf32, #tpu.memory_space<vmem>>, vector<14x64xf32>,
    %cst_111 = arith.constant 0.000000e+00 : f32
    %117 = vector.broadcast %cst_111 : f32 to vector<12x64xf32>
    %c0_112 = arith.constant 0 : index
    %c0_113 = arith.constant 0 : index
    %118 = vector.load %arg16[%c0_112, %c0_113] : memref<48x64xf32, #tpu.memory_space<vmem>>, vector<12x64xf32>
    %119 = arith.truncf %118 : vector<12x64xf32> to vector<12x64xbf16>
    %c0_114 = arith.constant 0 : index
    %c0_115 = arith.constant 0 : index
    %c0_116 = arith.constant 0 : index
    %120 = vector.load %arg6[%c0_114, %c0_115, %c0_116] : memref<3x64x64xbf16, #tpu.memory_space<vmem>>, vector<1x64x64xbf16>
    %121 = vector.shape_cast %120 : vector<1x64x64xbf16> to vector<64x64xbf16>
    %cst_117 = arith.constant dense<0.000000e+00> : vector<12x64xf32>
    %122 = tpu.matmul %119, %121, %cst_117 {dimension_numbers = #tpu.dot_dimension_numbers<[1], [0], [0], [1], [0, 0, 1, 1], [], []>} : vector<12x64xbf16>, vector<64x64xbf16>, vector<12x64xf32> -> vector<12x64xf32>
    %123 = arith.addf %117, %122 : vector<12x64xf32>
    %c1_118 = arith.constant 1 : index
    %c0_119 = arith.constant 0 : index
    %124 = vector.load %arg16[%c1_118, %c0_119] : memref<48x64xf32, #tpu.memory_space<vmem>>, vector<12x64xf32>
    %125 = arith.truncf %124 : vector<12x64xf32> to vector<12x64xbf16>
    %c1_120 = arith.constant 1 : index
    %c0_121 = arith.constant 0 : index
    %c0_122 = arith.constant 0 : index
    %126 = vector.load %arg6[%c1_120, %c0_121, %c0_122] : memref<3x64x64xbf16, #tpu.memory_space<vmem>>, vector<1x64x64xbf16>
    %127 = vector.shape_cast %126 : vector<1x64x64xbf16> to vector<64x64xbf16>
    %cst_123 = arith.constant dense<0.000000e+00> : vector<12x64xf32>
    %128 = tpu.matmul %125, %127, %cst_123 {dimension_numbers = #tpu.dot_dimension_numbers<[1], [0], [0], [1], [0, 0, 1, 1], [], []>} : vector<12x64xbf16>, vector<64x64xbf16>, vector<12x64xf32> -> vector<12x64xf32>
    %129 = arith.addf %123, %128 : vector<12x64xf32>
    %c2_124 = arith.constant 2 : index
    %c0_125 = arith.constant 0 : index
    %130 = vector.load %arg16[%c2_124, %c0_125] : memref<48x64xf32, #tpu.memory_space<vmem>>, vector<12x64xf32>
    %131 = arith.truncf %130 : vector<12x64xf32> to vector<12x64xbf16>
    %c2_126 = arith.constant 2 : index
    %c0_127 = arith.constant 0 : index
    %c0_128 = arith.constant 0 : index
    %132 = vector.load %arg6[%c2_126, %c0_127, %c0_128] : memref<3x64x64xbf16, #tpu.memory_space<vmem>>, vector<1x64x64xbf16>
    %133 = vector.shape_cast %132 : vector<1x64x64xbf16> to vector<64x64xbf16>
    %cst_129 = arith.constant dense<0.000000e+00> : vector<12x64xf32>
    %134 = tpu.matmul %131, %133, %cst_129 {dimension_numbers = #tpu.dot_dimension_numbers<[1], [0], [0], [1], [0, 0, 1, 1], [], []>} : vector<12x64xbf16>, vector<64x64xbf16>, vector<12x64xf32> -> vector<12x64xf32>
    %135 = arith.addf %129, %134 : vector<12x64xf32>
    %c0_130 = arith.constant 0 : index
    %c0_131 = arith.constant 0 : index
    %136 = vector.load %arg7[%c0_130, %c0_131] : memref<1x64xf32, #tpu.memory_space<vmem>>, vector<1x64xf32>
    %137 = vector.broadcast %136 : vector<1x64xf32> to vector<12x64xf32>
    %138 = arith.addf %135, %137 : vector<12x64xf32>
    %cst_132 = arith.constant 0.000000e+00 : f32
    %139 = vector.broadcast %cst_132 : f32 to vector<12x64xf32>
    %140 = arith.maximumf %138, %139 : vector<12x64xf32>
    %c0_133 = arith.constant 0 : index
    %c0_134 = arith.constant 0 : index
    %141 = vector.load %arg15[%c0_133, %c0_134] : memref<48x64xf32, #tpu.memory_space<vmem>>, vector<12x64xf32>
    tpu.vector_store %arg15[%c0_133, %c0_134], %140 {strides = array<i32>} : memref<48x64xf32, #tpu.memory_space<vmem>>, vector<12x64xf32>,
    %cst_135 = arith.constant 0.000000e+00 : f32
    %142 = vector.broadcast %cst_135 : f32 to vector<10x64xf32>
    %c0_136 = arith.constant 0 : index
    %c0_137 = arith.constant 0 : index
    %143 = vector.load %arg15[%c0_136, %c0_137] : memref<48x64xf32, #tpu.memory_space<vmem>>, vector<10x64xf32>
    %144 = arith.truncf %143 : vector<10x64xf32> to vector<10x64xbf16>
    %c0_138 = arith.constant 0 : index
    %c0_139 = arith.constant 0 : index
    %c0_140 = arith.constant 0 : index
    %145 = vector.load %arg8[%c0_138, %c0_139, %c0_140] : memref<3x64x64xbf16, #tpu.memory_space<vmem>>, vector<1x64x64xbf16>
    %146 = vector.shape_cast %145 : vector<1x64x64xbf16> to vector<64x64xbf16>
    %cst_141 = arith.constant dense<0.000000e+00> : vector<10x64xf32>
    %147 = tpu.matmul %144, %146, %cst_141 {dimension_numbers = #tpu.dot_dimension_numbers<[1], [0], [0], [1], [0, 0, 1, 1], [], []>} : vector<10x64xbf16>, vector<64x64xbf16>, vector<10x64xf32> -> vector<10x64xf32>
    %148 = arith.addf %142, %147 : vector<10x64xf32>
    %c1_142 = arith.constant 1 : index
    %c0_143 = arith.constant 0 : index
    %149 = vector.load %arg15[%c1_142, %c0_143] : memref<48x64xf32, #tpu.memory_space<vmem>>, vector<10x64xf32>
    %150 = arith.truncf %149 : vector<10x64xf32> to vector<10x64xbf16>
    %c1_144 = arith.constant 1 : index
    %c0_145 = arith.constant 0 : index
    %c0_146 = arith.constant 0 : index
    %151 = vector.load %arg8[%c1_144, %c0_145, %c0_146] : memref<3x64x64xbf16, #tpu.memory_space<vmem>>, vector<1x64x64xbf16>
    %152 = vector.shape_cast %151 : vector<1x64x64xbf16> to vector<64x64xbf16>
    %cst_147 = arith.constant dense<0.000000e+00> : vector<10x64xf32>
    %153 = tpu.matmul %150, %152, %cst_147 {dimension_numbers = #tpu.dot_dimension_numbers<[1], [0], [0], [1], [0, 0, 1, 1], [], []>} : vector<10x64xbf16>, vector<64x64xbf16>, vector<10x64xf32> -> vector<10x64xf32>
    %154 = arith.addf %148, %153 : vector<10x64xf32>
    %c2_148 = arith.constant 2 : index
    %c0_149 = arith.constant 0 : index
    %155 = vector.load %arg15[%c2_148, %c0_149] : memref<48x64xf32, #tpu.memory_space<vmem>>, vector<10x64xf32>
    %156 = arith.truncf %155 : vector<10x64xf32> to vector<10x64xbf16>
    %c2_150 = arith.constant 2 : index
    %c0_151 = arith.constant 0 : index
    %c0_152 = arith.constant 0 : index
    %157 = vector.load %arg8[%c2_150, %c0_151, %c0_152] : memref<3x64x64xbf16, #tpu.memory_space<vmem>>, vector<1x64x64xbf16>
    %158 = vector.shape_cast %157 : vector<1x64x64xbf16> to vector<64x64xbf16>
    %cst_153 = arith.constant dense<0.000000e+00> : vector<10x64xf32>
    %159 = tpu.matmul %156, %158, %cst_153 {dimension_numbers = #tpu.dot_dimension_numbers<[1], [0], [0], [1], [0, 0, 1, 1], [], []>} : vector<10x64xbf16>, vector<64x64xbf16>, vector<10x64xf32> -> vector<10x64xf32>
    %160 = arith.addf %154, %159 : vector<10x64xf32>
    %c0_154 = arith.constant 0 : index
    %c0_155 = arith.constant 0 : index
    %161 = vector.load %arg9[%c0_154, %c0_155] : memref<1x64xf32, #tpu.memory_space<vmem>>, vector<1x64xf32>
    %162 = vector.broadcast %161 : vector<1x64xf32> to vector<10x64xf32>
    %163 = arith.addf %160, %162 : vector<10x64xf32>
    %cst_156 = arith.constant 0.000000e+00 : f32
    %164 = vector.broadcast %cst_156 : f32 to vector<10x64xf32>
    %165 = arith.maximumf %163, %164 : vector<10x64xf32>
    %c0_157 = arith.constant 0 : index
    %c0_158 = arith.constant 0 : index
    %166 = vector.load %arg16[%c0_157, %c0_158] : memref<48x64xf32, #tpu.memory_space<vmem>>, vector<10x64xf32>
    tpu.vector_store %arg16[%c0_157, %c0_158], %165 {strides = array<i32>} : memref<48x64xf32, #tpu.memory_space<vmem>>, vector<10x64xf32>,
    %cst_159 = arith.constant 0.000000e+00 : f32
    %167 = vector.broadcast %cst_159 : f32 to vector<8x64xf32>
    %c0_160 = arith.constant 0 : index
    %c0_161 = arith.constant 0 : index
    %168 = vector.load %arg16[%c0_160, %c0_161] : memref<48x64xf32, #tpu.memory_space<vmem>>, vector<8x64xf32>
    %169 = arith.truncf %168 : vector<8x64xf32> to vector<8x64xbf16>
    %c0_162 = arith.constant 0 : index
    %c0_163 = arith.constant 0 : index
    %c0_164 = arith.constant 0 : index
    %170 = vector.load %arg10[%c0_162, %c0_163, %c0_164] : memref<3x64x64xbf16, #tpu.memory_space<vmem>>, vector<1x64x64xbf16>
    %171 = vector.shape_cast %170 : vector<1x64x64xbf16> to vector<64x64xbf16>
    %cst_165 = arith.constant dense<0.000000e+00> : vector<8x64xf32>
    %172 = tpu.matmul %169, %171, %cst_165 {dimension_numbers = #tpu.dot_dimension_numbers<[1], [0], [0], [1], [0, 0, 1, 1], [], []>} : vector<8x64xbf16>, vector<64x64xbf16>, vector<8x64xf32> -> vector<8x64xf32>
    %173 = arith.addf %167, %172 : vector<8x64xf32>
    %c1_166 = arith.constant 1 : index
    %c0_167 = arith.constant 0 : index
    %174 = vector.load %arg16[%c1_166, %c0_167] : memref<48x64xf32, #tpu.memory_space<vmem>>, vector<8x64xf32>
    %175 = arith.truncf %174 : vector<8x64xf32> to vector<8x64xbf16>
    %c1_168 = arith.constant 1 : index
    %c0_169 = arith.constant 0 : index
    %c0_170 = arith.constant 0 : index
    %176 = vector.load %arg10[%c1_168, %c0_169, %c0_170] : memref<3x64x64xbf16, #tpu.memory_space<vmem>>, vector<1x64x64xbf16>
    %177 = vector.shape_cast %176 : vector<1x64x64xbf16> to vector<64x64xbf16>
    %cst_171 = arith.constant dense<0.000000e+00> : vector<8x64xf32>
    %178 = tpu.matmul %175, %177, %cst_171 {dimension_numbers = #tpu.dot_dimension_numbers<[1], [0], [0], [1], [0, 0, 1, 1], [], []>} : vector<8x64xbf16>, vector<64x64xbf16>, vector<8x64xf32> -> vector<8x64xf32>
    %179 = arith.addf %173, %178 : vector<8x64xf32>
    %c2_172 = arith.constant 2 : index
    %c0_173 = arith.constant 0 : index
    %180 = vector.load %arg16[%c2_172, %c0_173] : memref<48x64xf32, #tpu.memory_space<vmem>>, vector<8x64xf32>
    %181 = arith.truncf %180 : vector<8x64xf32> to vector<8x64xbf16>
    %c2_174 = arith.constant 2 : index
    %c0_175 = arith.constant 0 : index
    %c0_176 = arith.constant 0 : index
    %182 = vector.load %arg10[%c2_174, %c0_175, %c0_176] : memref<3x64x64xbf16, #tpu.memory_space<vmem>>, vector<1x64x64xbf16>
    %183 = vector.shape_cast %182 : vector<1x64x64xbf16> to vector<64x64xbf16>
    %cst_177 = arith.constant dense<0.000000e+00> : vector<8x64xf32>
    %184 = tpu.matmul %181, %183, %cst_177 {dimension_numbers = #tpu.dot_dimension_numbers<[1], [0], [0], [1], [0, 0, 1, 1], [], []>} : vector<8x64xbf16>, vector<64x64xbf16>, vector<8x64xf32> -> vector<8x64xf32>
    %185 = arith.addf %179, %184 : vector<8x64xf32>
    %c0_178 = arith.constant 0 : index
    %c0_179 = arith.constant 0 : index
    %186 = vector.load %arg11[%c0_178, %c0_179] : memref<1x64xf32, #tpu.memory_space<vmem>>, vector<1x64xf32>
    %187 = vector.broadcast %186 : vector<1x64xf32> to vector<8x64xf32>
    %188 = arith.addf %185, %187 : vector<8x64xf32>
    %cst_180 = arith.constant 0.000000e+00 : f32
    %189 = vector.broadcast %cst_180 : f32 to vector<8x64xf32>
    %190 = arith.maximumf %188, %189 : vector<8x64xf32>
    %c0_181 = arith.constant 0 : index
    %c0_182 = arith.constant 0 : index
    %191 = vector.load %arg15[%c0_181, %c0_182] : memref<48x64xf32, #tpu.memory_space<vmem>>, vector<8x64xf32>
    tpu.vector_store %arg15[%c0_181, %c0_182], %190 {strides = array<i32>} : memref<48x64xf32, #tpu.memory_space<vmem>>, vector<8x64xf32>,
    %cst_183 = arith.constant 0.000000e+00 : f32
    %192 = vector.broadcast %cst_183 : f32 to vector<6x64xf32>
    %c0_184 = arith.constant 0 : index
    %c0_185 = arith.constant 0 : index
    %193 = vector.load %arg15[%c0_184, %c0_185] : memref<48x64xf32, #tpu.memory_space<vmem>>, vector<6x64xf32>
    %194 = arith.truncf %193 : vector<6x64xf32> to vector<6x64xbf16>
    %c0_186 = arith.constant 0 : index
    %c0_187 = arith.constant 0 : index
    %c0_188 = arith.constant 0 : index
    %195 = vector.load %arg12[%c0_186, %c0_187, %c0_188] : memref<3x64x64xbf16, #tpu.memory_space<vmem>>, vector<1x64x64xbf16>
    %196 = vector.shape_cast %195 : vector<1x64x64xbf16> to vector<64x64xbf16>
    %cst_189 = arith.constant dense<0.000000e+00> : vector<6x64xf32>
    %197 = tpu.matmul %194, %196, %cst_189 {dimension_numbers = #tpu.dot_dimension_numbers<[1], [0], [0], [1], [0, 0, 1, 1], [], []>} : vector<6x64xbf16>, vector<64x64xbf16>, vector<6x64xf32> -> vector<6x64xf32>
    %198 = arith.addf %192, %197 : vector<6x64xf32>
    %c1_190 = arith.constant 1 : index
    %c0_191 = arith.constant 0 : index
    %199 = vector.load %arg15[%c1_190, %c0_191] : memref<48x64xf32, #tpu.memory_space<vmem>>, vector<6x64xf32>
    %200 = arith.truncf %199 : vector<6x64xf32> to vector<6x64xbf16>
    %c1_192 = arith.constant 1 : index
    %c0_193 = arith.constant 0 : index
    %c0_194 = arith.constant 0 : index
    %201 = vector.load %arg12[%c1_192, %c0_193, %c0_194] : memref<3x64x64xbf16, #tpu.memory_space<vmem>>, vector<1x64x64xbf16>
    %202 = vector.shape_cast %201 : vector<1x64x64xbf16> to vector<64x64xbf16>
    %cst_195 = arith.constant dense<0.000000e+00> : vector<6x64xf32>
    %203 = tpu.matmul %200, %202, %cst_195 {dimension_numbers = #tpu.dot_dimension_numbers<[1], [0], [0], [1], [0, 0, 1, 1], [], []>} : vector<6x64xbf16>, vector<64x64xbf16>, vector<6x64xf32> -> vector<6x64xf32>
    %204 = arith.addf %198, %203 : vector<6x64xf32>
    %c2_196 = arith.constant 2 : index
    %c0_197 = arith.constant 0 : index
    %205 = vector.load %arg15[%c2_196, %c0_197] : memref<48x64xf32, #tpu.memory_space<vmem>>, vector<6x64xf32>
    %206 = arith.truncf %205 : vector<6x64xf32> to vector<6x64xbf16>
    %c2_198 = arith.constant 2 : index
    %c0_199 = arith.constant 0 : index
    %c0_200 = arith.constant 0 : index
    %207 = vector.load %arg12[%c2_198, %c0_199, %c0_200] : memref<3x64x64xbf16, #tpu.memory_space<vmem>>, vector<1x64x64xbf16>
    %208 = vector.shape_cast %207 : vector<1x64x64xbf16> to vector<64x64xbf16>
    %cst_201 = arith.constant dense<0.000000e+00> : vector<6x64xf32>
    %209 = tpu.matmul %206, %208, %cst_201 {dimension_numbers = #tpu.dot_dimension_numbers<[1], [0], [0], [1], [0, 0, 1, 1], [], []>} : vector<6x64xbf16>, vector<64x64xbf16>, vector<6x64xf32> -> vector<6x64xf32>
    %210 = arith.addf %204, %209 : vector<6x64xf32>
    %c0_202 = arith.constant 0 : index
    %c0_203 = arith.constant 0 : index
    %211 = vector.load %arg13[%c0_202, %c0_203] : memref<1x64xf32, #tpu.memory_space<vmem>>, vector<1x64xf32>
    %212 = vector.broadcast %211 : vector<1x64xf32> to vector<6x64xf32>
    %213 = arith.addf %210, %212 : vector<6x64xf32>
    %cst_204 = arith.constant 0.000000e+00 : f32
    %214 = vector.broadcast %cst_204 : f32 to vector<6x64xf32>
    %215 = arith.maximumf %213, %214 : vector<6x64xf32>
    %c0_205 = arith.constant 0 : index
    %c0_206 = arith.constant 0 : index
    %216 = vector.load %arg17[%c0_205, %c0_206] : memref<144x64xf32, #tpu.memory_space<vmem>>, vector<6x64xf32>
    tpu.vector_store %arg17[%c0_205, %c0_206], %215 {strides = array<i32>} : memref<144x64xf32, #tpu.memory_space<vmem>>, vector<6x64xf32>,
    %c0_207 = arith.constant 0 : index
    %c0_208 = arith.constant 0 : index
    %217 = tpu.strided_load %arg17[%c0_207, %c0_208] {strides = array<i32: 3, 1>} : memref<144x64xf32, #tpu.memory_space<vmem>>, vector<2x64xf32>
    %c1_209 = arith.constant 1 : index
    %c0_210 = arith.constant 0 : index
    %218 = tpu.strided_load %arg17[%c1_209, %c0_210] {strides = array<i32: 3, 1>} : memref<144x64xf32, #tpu.memory_space<vmem>>, vector<2x64xf32>
    %219 = arith.maximumf %217, %218 : vector<2x64xf32>
    %c2_211 = arith.constant 2 : index
    %c0_212 = arith.constant 0 : index
    %220 = tpu.strided_load %arg17[%c2_211, %c0_212] {strides = array<i32: 3, 1>} : memref<144x64xf32, #tpu.memory_space<vmem>>, vector<2x64xf32>
    %221 = arith.maximumf %219, %220 : vector<2x64xf32>
    %222 = arith.truncf %221 : vector<2x64xf32> to vector<2x64xbf16>
    %c0_213 = arith.constant 0 : index
    %c0_214 = arith.constant 0 : index
    %c0_215 = arith.constant 0 : index
    %223 = vector.load %arg14[%c0_213, %c0_214, %c0_215] : memref<1x2x64xbf16, #tpu.memory_space<vmem>>, vector<1x2x64xbf16>
    %224 = vector.shape_cast %223 : vector<1x2x64xbf16> to vector<2x64xbf16>
    %225 = vector.shape_cast %222 : vector<2x64xbf16> to vector<1x2x64xbf16>
    tpu.vector_store %arg14[%c0_213, %c0_214, %c0_215], %225 {strides = array<i32>} : memref<1x2x64xbf16, #tpu.memory_space<vmem>>, vector<1x2x64xbf16>,
    return
  }
  func.func @transform_0(%arg0: i32) -> (i32, i32, i32) {
    %c0_i32 = arith.constant 0 : i32
    %c0_i32_0 = arith.constant 0 : i32
    %c0_i32_1 = arith.constant 0 : i32
    return %arg0, %c0_i32, %c0_i32_0 : i32, i32, i32
  }
  func.func @transform_1(%arg0: i32) -> (i32, i32, i32) {
    %c0_i32 = arith.constant 0 : i32
    %c0_i32_0 = arith.constant 0 : i32
    %c0_i32_1 = arith.constant 0 : i32
    %c0_i32_2 = arith.constant 0 : i32
    return %c0_i32, %c0_i32_0, %c0_i32_1 : i32, i32, i32
  }
  func.func @transform_2(%arg0: i32) -> (i32, i32) {
    %c0_i32 = arith.constant 0 : i32
    %c0_i32_0 = arith.constant 0 : i32
    %c0_i32_1 = arith.constant 0 : i32
    return %c0_i32, %c0_i32_0 : i32, i32
  }
  func.func @transform_3(%arg0: i32) -> (i32, i32, i32) {
    %c0_i32 = arith.constant 0 : i32
    %c0_i32_0 = arith.constant 0 : i32
    %c0_i32_1 = arith.constant 0 : i32
    %c0_i32_2 = arith.constant 0 : i32
    return %c0_i32, %c0_i32_0, %c0_i32_1 : i32, i32, i32
  }
  func.func @transform_4(%arg0: i32) -> (i32, i32) {
    %c0_i32 = arith.constant 0 : i32
    %c0_i32_0 = arith.constant 0 : i32
    %c0_i32_1 = arith.constant 0 : i32
    return %c0_i32, %c0_i32_0 : i32, i32
  }
  func.func @transform_5(%arg0: i32) -> (i32, i32, i32) {
    %c0_i32 = arith.constant 0 : i32
    %c0_i32_0 = arith.constant 0 : i32
    %c0_i32_1 = arith.constant 0 : i32
    %c0_i32_2 = arith.constant 0 : i32
    return %c0_i32, %c0_i32_0, %c0_i32_1 : i32, i32, i32
  }
  func.func @transform_6(%arg0: i32) -> (i32, i32) {
    %c0_i32 = arith.constant 0 : i32
    %c0_i32_0 = arith.constant 0 : i32
    %c0_i32_1 = arith.constant 0 : i32
    return %c0_i32, %c0_i32_0 : i32, i32
  }
  func.func @transform_7(%arg0: i32) -> (i32, i32, i32) {
    %c0_i32 = arith.constant 0 : i32
    %c0_i32_0 = arith.constant 0 : i32
    %c0_i32_1 = arith.constant 0 : i32
    %c0_i32_2 = arith.constant 0 : i32
    return %c0_i32, %c0_i32_0, %c0_i32_1 : i32, i32, i32
  }
  func.func @transform_8(%arg0: i32) -> (i32, i32) {
    %c0_i32 = arith.constant 0 : i32
    %c0_i32_0 = arith.constant 0 : i32
    %c0_i32_1 = arith.constant 0 : i32
    return %c0_i32, %c0_i32_0 : i32, i32
  }
  func.func @transform_9(%arg0: i32) -> (i32, i32, i32) {
    %c0_i32 = arith.constant 0 : i32
    %c0_i32_0 = arith.constant 0 : i32
    %c0_i32_1 = arith.constant 0 : i32
    %c0_i32_2 = arith.constant 0 : i32
    return %c0_i32, %c0_i32_0, %c0_i32_1 : i32, i32, i32
  }
  func.func @transform_10(%arg0: i32) -> (i32, i32) {
    %c0_i32 = arith.constant 0 : i32
    %c0_i32_0 = arith.constant 0 : i32
    %c0_i32_1 = arith.constant 0 : i32
    return %c0_i32, %c0_i32_0 : i32, i32
  }
  func.func @transform_11(%arg0: i32) -> (i32, i32, i32) {
    %c0_i32 = arith.constant 0 : i32
    %c0_i32_0 = arith.constant 0 : i32
    %c0_i32_1 = arith.constant 0 : i32
    %c0_i32_2 = arith.constant 0 : i32
    return %c0_i32, %c0_i32_0, %c0_i32_1 : i32, i32, i32
  }
  func.func @transform_12(%arg0: i32) -> (i32, i32) {
    %c0_i32 = arith.constant 0 : i32
    %c0_i32_0 = arith.constant 0 : i32
    %c0_i32_1 = arith.constant 0 : i32
    return %c0_i32, %c0_i32_0 : i32, i32
  }
  func.func @transform_13(%arg0: i32) -> (i32, i32, i32) {
    %c0_i32 = arith.constant 0 : i32
    %c0_i32_0 = arith.constant 0 : i32
    %c0_i32_1 = arith.constant 0 : i32
    return %arg0, %c0_i32, %c0_i32_0 : i32, i32, i32
  }
}

module attributes {stable_mosaic.version = 11 : i64} {
  func.func @_fc_tail_kernel(%arg0: memref<2x128xbf16, #tpu.memory_space<vmem>>, %arg1: memref<128x128xbf16, #tpu.memory_space<vmem>>, %arg2: memref<1x128xf32, #tpu.memory_space<vmem>>, %arg3: memref<128x4xbf16, #tpu.memory_space<vmem>>, %arg4: memref<1x4xf32, #tpu.memory_space<vmem>>, %arg5: memref<2x4xf32, #tpu.memory_space<vmem>>) attributes {dimension_semantics = [], scalar_prefetch = 0 : i64, scratch_operands = 0 : i64, tpu.core_type = #tpu.core_type<tc>} {
    %c0 = arith.constant 0 : index
    %c0_0 = arith.constant 0 : index
    %0 = vector.load %arg0[%c0, %c0_0] : memref<2x128xbf16, #tpu.memory_space<vmem>>, vector<2x128xbf16>
    %c0_1 = arith.constant 0 : index
    %c0_2 = arith.constant 0 : index
    %1 = vector.load %arg1[%c0_1, %c0_2] : memref<128x128xbf16, #tpu.memory_space<vmem>>, vector<128x128xbf16>
    %cst = arith.constant dense<0.000000e+00> : vector<2x128xf32>
    %2 = tpu.matmul %0, %1, %cst {dimension_numbers = #tpu.dot_dimension_numbers<[1], [0], [0], [1], [0, 0, 1, 1], [], []>} : vector<2x128xbf16>, vector<128x128xbf16>, vector<2x128xf32> -> vector<2x128xf32>
    %c0_3 = arith.constant 0 : index
    %c0_4 = arith.constant 0 : index
    %3 = vector.load %arg2[%c0_3, %c0_4] : memref<1x128xf32, #tpu.memory_space<vmem>>, vector<1x128xf32>
    %4 = vector.broadcast %3 : vector<1x128xf32> to vector<2x128xf32>
    %5 = arith.addf %2, %4 : vector<2x128xf32>
    %cst_5 = arith.constant 0.000000e+00 : f32
    %6 = vector.broadcast %cst_5 : f32 to vector<2x128xf32>
    %7 = arith.maximumf %5, %6 : vector<2x128xf32>
    %8 = arith.truncf %7 : vector<2x128xf32> to vector<2x128xbf16>
    %c0_6 = arith.constant 0 : index
    %c0_7 = arith.constant 0 : index
    %9 = vector.load %arg3[%c0_6, %c0_7] : memref<128x4xbf16, #tpu.memory_space<vmem>>, vector<128x4xbf16>
    %cst_8 = arith.constant dense<0.000000e+00> : vector<2x4xf32>
    %10 = tpu.matmul %8, %9, %cst_8 {dimension_numbers = #tpu.dot_dimension_numbers<[1], [0], [0], [1], [0, 0, 1, 1], [], []>} : vector<2x128xbf16>, vector<128x4xbf16>, vector<2x4xf32> -> vector<2x4xf32>
    %c0_9 = arith.constant 0 : index
    %c0_10 = arith.constant 0 : index
    %11 = vector.load %arg4[%c0_9, %c0_10] : memref<1x4xf32, #tpu.memory_space<vmem>>, vector<1x4xf32>
    %12 = vector.broadcast %11 : vector<1x4xf32> to vector<2x4xf32>
    %13 = arith.addf %10, %12 : vector<2x4xf32>
    %cst_11 = arith.constant dense<0xFF800000> : vector<2xf32>
    %14 = vector.multi_reduction <maximumf>, %13, %cst_11 [1] : vector<2x4xf32> to vector<2xf32>
    %15 = vector.shape_cast %14 : vector<2xf32> to vector<2x1xf32>
    %16 = vector.broadcast %15 : vector<2x1xf32> to vector<2x4xf32>
    %17 = arith.subf %13, %16 : vector<2x4xf32>
    %18 = math.exp %17 : vector<2x4xf32>
    %cst_12 = arith.constant dense<0.000000e+00> : vector<2xf32>
    %19 = vector.multi_reduction <add>, %18, %cst_12 [1] : vector<2x4xf32> to vector<2xf32>
    %20 = vector.shape_cast %19 : vector<2xf32> to vector<2x1xf32>
    %21 = math.log %20 : vector<2x1xf32>
    %22 = vector.broadcast %21 : vector<2x1xf32> to vector<2x4xf32>
    %23 = arith.subf %17, %22 : vector<2x4xf32>
    %c0_13 = arith.constant 0 : index
    %c0_14 = arith.constant 0 : index
    %24 = vector.load %arg5[%c0_13, %c0_14] : memref<2x4xf32, #tpu.memory_space<vmem>>, vector<2x4xf32>
    tpu.vector_store %arg5[%c0_13, %c0_14], %23 {strides = array<i32>} : memref<2x4xf32, #tpu.memory_space<vmem>>, vector<2x4xf32>,
    return
  }
}

module attributes {stable_mosaic.version = 11 : i64} {
  func.func @_fc1_kernel(%arg0: i32, %arg1: memref<2x128xbf16, #tpu.memory_space<vmem>>, %arg2: memref<128x128xbf16, #tpu.memory_space<vmem>>, %arg3: memref<1x128xf32, #tpu.memory_space<vmem>>, %arg4: memref<2x128xbf16, #tpu.memory_space<vmem>>, %arg5: memref<2x128xf32, #tpu.memory_space<vmem>>) attributes {dimension_semantics = [#tpu.dimension_semantics<arbitrary>], iteration_bounds = array<i64: 1>, scalar_prefetch = 0 : i64, scratch_operands = 1 : i64, tpu.core_type = #tpu.core_type<tc>, window_params = [{transform_indices = @transform_0, window_bounds = array<i64: 2, 128>}, {transform_indices = @transform_1, window_bounds = array<i64: 128, 128>}, {pipeline_mode = #tpu.pipeline_mode<synchronous>, transform_indices = @transform_2, window_bounds = array<i64: 1, 128>}, {pipeline_mode = #tpu.pipeline_mode<synchronous>, transform_indices = @transform_3, window_bounds = array<i64: 2, 128>}]} {
    %c0_i32 = arith.constant 0 : i32
    %0 = arith.cmpi eq, %arg0, %c0_i32 : i32
    %1 = arith.extui %0 : i1 to i32
    %c0_i32_0 = arith.constant 0 : i32
    %2 = arith.cmpi ne, %1, %c0_i32_0 : i32
    scf.if %2 {
      %cst_10 = arith.constant 0.000000e+00 : f32
      %12 = vector.broadcast %cst_10 : f32 to vector<2x128xf32>
      %c0_11 = arith.constant 0 : index
      %c0_12 = arith.constant 0 : index
      %13 = vector.load %arg5[%c0_11, %c0_12] : memref<2x128xf32, #tpu.memory_space<vmem>>, vector<2x128xf32>
      tpu.vector_store %arg5[%c0_11, %c0_12], %12 {strides = array<i32>} : memref<2x128xf32, #tpu.memory_space<vmem>>, vector<2x128xf32>,
    } else {
    }
    %c0 = arith.constant 0 : index
    %c0_1 = arith.constant 0 : index
    %3 = vector.load %arg5[%c0, %c0_1] : memref<2x128xf32, #tpu.memory_space<vmem>>, vector<2x128xf32>
    %c0_2 = arith.constant 0 : index
    %c0_3 = arith.constant 0 : index
    %4 = vector.load %arg1[%c0_2, %c0_3] : memref<2x128xbf16, #tpu.memory_space<vmem>>, vector<2x128xbf16>
    %c0_4 = arith.constant 0 : index
    %c0_5 = arith.constant 0 : index
    %5 = vector.load %arg2[%c0_4, %c0_5] : memref<128x128xbf16, #tpu.memory_space<vmem>>, vector<128x128xbf16>
    %cst = arith.constant dense<0.000000e+00> : vector<2x128xf32>
    %6 = tpu.matmul %4, %5, %cst {dimension_numbers = #tpu.dot_dimension_numbers<[1], [0], [0], [1], [0, 0, 1, 1], [], []>} : vector<2x128xbf16>, vector<128x128xbf16>, vector<2x128xf32> -> vector<2x128xf32>
    %7 = arith.addf %3, %6 : vector<2x128xf32>
    %c0_6 = arith.constant 0 : index
    %c0_7 = arith.constant 0 : index
    %8 = vector.load %arg5[%c0_6, %c0_7] : memref<2x128xf32, #tpu.memory_space<vmem>>, vector<2x128xf32>
    tpu.vector_store %arg5[%c0_6, %c0_7], %7 {strides = array<i32>} : memref<2x128xf32, #tpu.memory_space<vmem>>, vector<2x128xf32>,
    %c0_i32_8 = arith.constant 0 : i32
    %9 = arith.cmpi eq, %arg0, %c0_i32_8 : i32
    %10 = arith.extui %9 : i1 to i32
    %c0_i32_9 = arith.constant 0 : i32
    %11 = arith.cmpi ne, %10, %c0_i32_9 : i32
    scf.if %11 {
      %c0_10 = arith.constant 0 : index
      %c0_11 = arith.constant 0 : index
      %12 = vector.load %arg5[%c0_10, %c0_11] : memref<2x128xf32, #tpu.memory_space<vmem>>, vector<2x128xf32>
      %c0_12 = arith.constant 0 : index
      %c0_13 = arith.constant 0 : index
      %13 = vector.load %arg3[%c0_12, %c0_13] : memref<1x128xf32, #tpu.memory_space<vmem>>, vector<1x128xf32>
      %14 = vector.broadcast %13 : vector<1x128xf32> to vector<2x128xf32>
      %15 = arith.addf %12, %14 : vector<2x128xf32>
      %cst_14 = arith.constant 0.000000e+00 : f32
      %16 = vector.broadcast %cst_14 : f32 to vector<2x128xf32>
      %17 = arith.maximumf %15, %16 : vector<2x128xf32>
      %18 = arith.truncf %17 : vector<2x128xf32> to vector<2x128xbf16>
      %c0_15 = arith.constant 0 : index
      %c0_16 = arith.constant 0 : index
      %19 = vector.load %arg4[%c0_15, %c0_16] : memref<2x128xbf16, #tpu.memory_space<vmem>>, vector<2x128xbf16>
      tpu.vector_store %arg4[%c0_15, %c0_16], %18 {strides = array<i32>} : memref<2x128xbf16, #tpu.memory_space<vmem>>, vector<2x128xbf16>,
    } else {
    }
    return
  }
  func.func @transform_0(%arg0: i32) -> (i32, i32) {
    %c0_i32 = arith.constant 0 : i32
    %c0_i32_0 = arith.constant 0 : i32
    return %c0_i32, %arg0 : i32, i32
  }
  func.func @transform_1(%arg0: i32) -> (i32, i32) {
    %c0_i32 = arith.constant 0 : i32
    %c0_i32_0 = arith.constant 0 : i32
    return %arg0, %c0_i32 : i32, i32
  }
  func.func @transform_2(%arg0: i32) -> (i32, i32) {
    %c0_i32 = arith.constant 0 : i32
    %c0_i32_0 = arith.constant 0 : i32
    %c0_i32_1 = arith.constant 0 : i32
    return %c0_i32, %c0_i32_0 : i32, i32
  }
  func.func @transform_3(%arg0: i32) -> (i32, i32) {
    %c0_i32 = arith.constant 0 : i32
    %c0_i32_0 = arith.constant 0 : i32
    %c0_i32_1 = arith.constant 0 : i32
    return %c0_i32, %c0_i32_0 : i32, i32
  }
}

</mosaic_0001>

<bundles_post_ra>
// kernel: _forward_impl.4
= control target key start
LH: loop header
LB: loop body
LE: loop exit
PB: predicated region body
PF: predicated region fallthrough
CT: control target
= control target key end

     0   :  { %v195_v0 = vmov 0.0   ;;  %vm196_vm0 = vmmov 0   ;;  %s250_s1 = inlined_call_operand.vmem [shape: bf16[128,128], index: 1, kind: input, shape index: {}]   ;;  %s251_s0 = inlined_call_operand.vmem [shape: bf16[2,128], index: 0, kind: input, shape index: {}]   ;;  %s252_s2 = inlined_call_operand.vmem [shape: f32[1,128], index: 2, kind: input, shape index: {}]   ;;  %s253_s3 = inlined_call_operand.vmem [shape: bf16[2,128], index: 3, kind: output, shape index: {}]  }
   0x1   :  { %165 = vmatprep.subr.bf16.mxu0 %v195_v0  ;;  %19 = vst [vmem:[#allocation2] sm:$0x3] %v195_v0  ;;  %v187_v1 = vld [vmem:[%s250_s1] sm:$0xff]   ;;  %181 = vmatprep.mubr.msk.bf16.mxu0 %vm196_vm0, %v195_v0  ;;  %v188_v2 = vld [vmem:[%s250_s1 + $0x8] sm:$0xff]   ;;  %v189_v3 = vld [vmem:[%s250_s1 + $0x10] sm:$0xff]  }
   0x2   :  { %166 = vmatpush3.bf16.msra.mxu0 %v187_v1  ;;  %v190_v4 = vld [vmem:[%s250_s1 + $0x18] sm:$0xff]   ;;  %v191_v5 = vld [vmem:[%s250_s1 + $0x20] sm:$0xff]   ;;  %v192_v6 = vld [vmem:[%s250_s1 + $0x28] sm:$0xff]  }
   0x3   :  { %167 = vmatprep.subr.bf16.mxu0 %v195_v0  ;;  %v193_v7 = vld [vmem:[%s250_s1 + $0x30] sm:$0xff]   ;;  %v194_v8 = vld [vmem:[%s250_s1 + $0x38] sm:$0xff]   ;;  %v21_v9 = vld [vmem:[%s251_s0] sm:$0x1] }
   0x4   :  { %v155_v16 = vld [vmem:[%s252_s2] ss:$0 sm:$0xff] }
   0x6   :  { %168 = vmatpush3.bf16.msra.mxu0 %v188_v2 }
   0x7   :  { %169 = vmatprep.subr.bf16.mxu0 %v195_v0 }
   0x8   :  { %v20_v10 = vld [vmem:[#allocation2] sm:$0x3] }
   0xa   :  { %170 = vmatpush3.bf16.msra.mxu0 %v189_v3 }
   0xb   :  { %171 = vmatprep.subr.bf16.mxu0 %v195_v0 }
   0xe   :  { %172 = vmatpush3.bf16.msra.mxu0 %v190_v4 }
   0xf   :  { %173 = vmatprep.subr.bf16.mxu0 %v195_v0 }
  0x12   :  { %174 = vmatpush3.bf16.msra.mxu0 %v191_v5 }
  0x13   :  { %175 = vmatprep.subr.bf16.mxu0 %v195_v0 }
  0x16   :  { %176 = vmatpush3.bf16.msra.mxu0 %v192_v6 }
  0x17   :  { %177 = vmatprep.subr.bf16.mxu0 %v195_v0 }
  0x1a   :  { %178 = vmatpush3.bf16.msra.mxu0 %v193_v7 }
  0x1b   :  { %179 = vmatprep.subr.bf16.mxu0 %v195_v0 }
  0x1e   :  { %180 = vmatpush3.bf16.msra.mxu0 %v194_v8 }
  0x21   :  { %182 = vmatmul.mubr.bf16.vlgmr.msra.gmra.mrb[0].mxu0 %v21_v9 }
  0xf4   :  { %v120_v11 = vpop.f32.mrb[0].mxu0 }
  0xf5   :  { %v126_v12 = vadd.f32 %v120_v11, %v20_v10  ;;  %v183_v13 = vpop.f32.mrb[1].mxu0 }
  0xf6   :  { %v123_v14 = vpop.f32.mrb[2].mxu0 }
  0xf7   :  { %127 = vst [vmem:[#allocation2] sm:$0x3] %v126_v12  ;;  %v184_v15 = vpop.f32.mrb[3].mxu0 }
  0xfe   :  { %v131_v17 = vld [vmem:[#allocation2] sm:$0x3] }
  0xff   :  { %v139_v18 = vadd.f32 %v155_v16, %v131_v17 }
 0x101   :  { %v140_v19 = vmax.f32 %v139_v18, 0.0 }
 0x103   :  { %v141_v20 = vpack.c.bf16 %v140_v19, %v140_v19 }
 0x105   :  { %142 = vst [vmem:[%s253_s3] sm:$0x1] %v141_v20 }

// kernel: _forward_impl.5
= control target key start
LH: loop header
LB: loop body
LE: loop exit
PB: predicated region body
PF: predicated region fallthrough
CT: control target
= control target key end

     0   :  { %v398_v1 = vmov 0.0   ;;  %vm399_vm0 = vmmov 0   ;;  %s503_s0 = inlined_call_operand.vmem [shape: bf16[2,128], index: 0, kind: input, shape index: {}]   ;;  %s504_s1 = inlined_call_operand.vmem [shape: bf16[128,128], index: 1, kind: input, shape index: {}]   ;;  %s505_s2 = inlined_call_operand.vmem [shape: f32[1,128], index: 2, kind: input, shape index: {}]   ;;  %s506_s3 = inlined_call_operand.vmem [shape: bf16[128,4], index: 3, kind: input, shape index: {}]   ;;  %s507_s4 = inlined_call_operand.vmem [shape: f32[1,4], index: 4, kind: input, shape index: {}]   ;;  %s508_s5 = inlined_call_operand.hbm [shape: f32[2,4], index: 5, kind: output, shape index: {}]  }
   0x1   :  { %v354_v0 = vld [vmem:[%s504_s1] sm:$0xff]   ;;  %311 = vmatprep.subr.bf16.mxu0 %v398_v1  ;;  %331 = vmatprep.subr.bf16.mxu1 %v398_v1  ;;  %v355_v2 = vld [vmem:[%s504_s1 + $0x8] sm:$0xff]   ;;  %v356_v3 = vld [vmem:[%s504_s1 + $0x10] sm:$0xff]  }
   0x2   :  { %312 = vmatpush3.bf16.msra.mxu0 %v354_v0  ;;  %327 = vmatprep.mubr.msk.bf16.mxu0 %vm399_vm0, %v398_v1  ;;  %v362_v4 = vld [vmem:[%s506_s3] sm:$0xff]   ;;  %v357_v5 = vld [vmem:[%s504_s1 + $0x18] sm:$0xff]   ;;  %v363_v6 = vld [vmem:[%s506_s3 + $0x8] sm:$0xff]  }
   0x3   :  { %313 = vmatprep.subr.bf16.mxu0 %v398_v1  ;;  %347 = vmatprep.mubr.msk.bf16.mxu1 %vm399_vm0, %v398_v1  ;;  %v358_v7 = vld [vmem:[%s504_s1 + $0x20] sm:$0xff]   ;;  %v364_v8 = vld [vmem:[%s506_s3 + $0x10] sm:$0xff]  }
   0x4   :  { %332 = vmatpush3.bf16.msra.mxu1 %v362_v4 }
   0x5   :  { %333 = vmatprep.subr.bf16.mxu1 %v398_v1 }
   0x6   :  { %314 = vmatpush3.bf16.msra.mxu0 %v355_v2 }
   0x7   :  { %315 = vmatprep.subr.bf16.mxu0 %v398_v1 }
   0x8   :  { %334 = vmatpush3.bf16.msra.mxu1 %v363_v6 }
   0x9   :  { %335 = vmatprep.subr.bf16.mxu1 %v398_v1 }
   0xa   :  { %316 = vmatpush3.bf16.msra.mxu0 %v356_v3 }
   0xb   :  { %317 = vmatprep.subr.bf16.mxu0 %v398_v1 }
   0xe   :  { %318 = vmatpush3.bf16.msra.mxu0 %v357_v5 }
   0xf   :  { %319 = vmatprep.subr.bf16.mxu0 %v398_v1 }
  0x10   :  { %10 = vsyncpa [#allocation3], 0  ;;  %v359_v9 = vld [vmem:[%s504_s1 + $0x28] sm:$0xff]   ;;  %336 = vmatpush3.bf16.msra.mxu1 %v364_v8  ;;  %v365_v10 = vld [vmem:[%s506_s3 + $0x18] sm:$0xff]   ;;  %vm247_vm1 = vcmask 25600  }
  0x11   :  { %337 = vmatprep.subr.bf16.mxu1 %v398_v1  ;;  %v360_v11 = vld [vmem:[%s504_s1 + $0x30] sm:$0xff]   ;;  %v366_v12 = vld [vmem:[%s506_s3 + $0x20] sm:$0xff]   ;;  %v361_v13 = vld [vmem:[%s504_s1 + $0x38] sm:$0xff]  }
  0x12   :  { %320 = vmatpush3.bf16.msra.mxu0 %v358_v7  ;;  %v367_v14 = vld [vmem:[%s506_s3 + $0x28] sm:$0xff]   ;;  %v22_v15 = vld [vmem:[%s503_s0] sm:$0x1]  ;;  %v368_v16 = vld [vmem:[%s506_s3 + $0x30] sm:$0xff]  }
  0x13   :  { %321 = vmatprep.subr.bf16.mxu0 %v398_v1  ;;  %v369_v17 = vld [vmem:[%s506_s3 + $0x38] sm:$0xff]   ;;  %v275_v18 = vld [vmem:[%s505_s2] ss:$0 sm:$0xff]  ;;  %s400_s2 = smov [#allocation2]  }
  0x14   :  { %338 = vmatpush3.bf16.msra.mxu1 %v365_v10  ;;  %v284_v26 = vld [vmem:[%s507_s4] ss:$0 sm:$0xff]  ;;  %s267_s3 = sshll.u32 %s400_s2, 4  ;;  %s268_s3 = int_to_ptr.vmem [resolvable:$true] %s267_s3 }
  0x15   :  { %339 = vmatprep.subr.bf16.mxu1 %v398_v1  ;;  %s374_s4 = scalar_lea.vmem %s268_s3, 32  ;;  %p379_p1 = scmp.lt.s32.totalorder %s268_s3, %s268_s3 }
  0x16   :  { %322 = vmatpush3.bf16.msra.mxu0 %v359_v9  ;;  %p375_p0 = scmp.ne.s32.totalorder %s268_s3, %s374_s4  ;;  %p380_p2 = scmp.lt.s32.totalorder %s374_s4, %s374_s4 }
  0x17   :  { %323 = vmatprep.subr.bf16.mxu0 %v398_v1 }
  0x18   :  { %340 = vmatpush3.bf16.msra.mxu1 %v366_v12  ;;  %p381_p3 = por %p380_p2, %p379_p1 }
  0x19   :  { %341 = vmatprep.subr.bf16.mxu1 %v398_v1 }
  0x1a   :  { %324 = vmatpush3.bf16.msra.mxu0 %v360_v11  ;;  %p382_p4 = pnand %p381_p3, %p375_p0 }
  0x1b   :  { %325 = vmatprep.subr.bf16.mxu0 %v398_v1 }
  0x1c   :  { %342 = vmatpush3.bf16.msra.mxu1 %v367_v14 }
  0x1d   :  { %343 = vmatprep.subr.bf16.mxu1 %v398_v1 }
  0x1e   :  { %326 = vmatpush3.bf16.msra.mxu0 %v361_v13 }
  0x20   :  { %344 = vmatpush3.bf16.msra.mxu1 %v368_v16 }
  0x21   :  { %328 = vmatmul.mubr.bf16.vlgmr.msra.gmra.mrb[0].mxu0 %v22_v15  ;;  %345 = vmatprep.subr.bf16.mxu1 %v398_v1 }
  0x24   :  { %346 = vmatpush3.bf16.msra.mxu1 %v369_v17 }
  0xf4   :  { %v128_v19 = vpop.f32.mrb[0].mxu0 }
  0xf5   :  { %v129_v20 = vadd.f32 %v275_v18, %v128_v19  ;;  %v329_v21 = vpop.f32.mrb[1].mxu0 }
  0xf6   :  { %v131_v22 = vpop.f32.mrb[2].mxu0 }
  0xf7   :  { %v134_v23 = vmax.f32 %v129_v20, 0.0  ;;  %v330_v24 = vpop.f32.mrb[3].mxu0 }
  0xf9   :  { %v135_v25 = vpack.c.bf16 %v134_v23, %v134_v23 }
  0xfb   :  { %348 = vmatmul.mubr.bf16.vlgmr.msra.gmra.mrb[0].mxu1 %v135_v25 }
 0x1ce   :  { %v241_v27 = vpop.f32.mrb[0].mxu1 }
 0x1cf   :  { %v242_v28 = vadd.f32 %v284_v26, %v241_v27  ;;  %v349_v29 = vpop.f32.mrb[1].mxu1 }
 0x1d0   :  { %v244_v30 = vpop.f32.mrb[2].mxu1 }
 0x1d1   :  { %v350_v31 = vpop.f32.mrb[3].mxu1  ;;  %v248_v32 = vsel %vm247_vm1, %v242_v28, -inf }
 0x1d2   :  { %249 = vmax.xlane.f32.xlu0 %v248_v32 }
 0x25f   :  { %v250_v33 = vpop.xlane.xlu0 %249 }
 0x260   :  { %v251_v34 = vsub.f32 %v242_v28, %v250_v33 }
 0x262   :  { %v252_v35 = vmul.f32 1.442695, %v251_v34 }
 0x264   :  { %370 = vpow2.f32 %v252_v35 }
 0x26e   :  { %v371_v36 = vpop.eup %370 }
 0x26f   :  { %v254_v37 = vsel %vm247_vm1, %v371_v36, 0.0 }
 0x270   :  { %255 = vadd.xlane.f32.xlu0 %v254_v37 }
 0x2fd   :  { %v256_v38 = vpop.xlane.xlu0 %255 }
 0x2fe   :  { %372 = vlog2.f32 %v256_v38 }
 0x308   :  { %v373_v39 = vpop.eup %372 }
 0x309   :  { %v258_v40 = vmul.f32 0.6931472, %v373_v39 }
 0x30b   :  { %v259_v41 = vsub.f32 %v251_v34, %v258_v40 }
 0x30d   :  { %260 = vst.msk [vmem:[#allocation2] sm:$0x3] %vm247_vm1, %v259_v41 }
 0x30e   :  { %385 = shalt.err (!%p382_p4)
}
 0x30f   :  { %s386_s6 = scalar_lea.hbm %s508_s5, 32 }
 0x310   :  { %p387_p5 = scmp.ne.s32.totalorder %s508_s5, %s386_s6  ;;  %p390_p6 = scmp.lt.u32.totalorder %s386_s6, %s508_s5 }
 0x312   :  { %p392_p7 = pnand %p390_p6, %p387_p5 }
 0x314   :  { %395 = shalt.err (!%p392_p7)
}
 0x315   :  { %270 = dma.vmem_to_hbm [thread:$0]  %s268_s3, 32, %s508_s5, [#allocation3]  }
 0x316   :  { %396 = dma.done.wait [#allocation3], 32  }
 0x317   :  { %397 = vsyncadd [#allocation3], 4294967264 }
 0x318   :  { %274 = vsyncpa [#allocation3], 1 }

// kernel: _forward_impl.3
= control target key start
LH: loop header
LB: loop body
LE: loop exit
PB: predicated region body
PF: predicated region fallthrough
CT: control target
= control target key end

     0   :  { %s5383_s25 = smov 0   ;;  %s6538_s0 = inlined_call_operand.vmem [shape: f32[2,150,128], index: 0, kind: input, shape index: {}]   ;;  %s6539_s1 = inlined_call_operand.vmem [shape: bf16[7,128,64], index: 1, kind: input, shape index: {}]   ;;  %s6540_s2 = inlined_call_operand.vmem [shape: f32[1,64], index: 2, kind: input, shape index: {}]   ;;  %s6541_s3 = inlined_call_operand.vmem [shape: bf16[7,64,64], index: 3, kind: input, shape index: {}]   ;;  %s6542_s4 = inlined_call_operand.vmem [shape: f32[1,64], index: 4, kind: input, shape index: {}]   ;;  %s6543_s5 = inlined_call_operand.vmem [shape: bf16[3,64,64], index: 5, kind: input, shape index: {}]   ;;  %s6544_s6 = inlined_call_operand.vmem [shape: f32[1,64], index: 6, kind: input, shape index: {}]   ;;  %s6545_s7 = inlined_call_operand.vmem [shape: bf16[3,64,64], index: 7, kind: input, shape index: {}]   ;;  %s6546_s8 = inlined_call_operand.vmem [shape: f32[1,64], index: 8, kind: input, shape index: {}]   ;;  %s6547_s9 = inlined_call_operand.vmem [shape: bf16[3,64,64], index: 9, kind: input, shape index: {}]   ;;  %s6548_s10 = inlined_call_operand.vmem [shape: f32[1,64], index: 10, kind: input, shape index: {}]   ;;  %s6549_s11 = inlined_call_operand.vmem [shape: bf16[3,64,64], index: 11, kind: input, shape index: {}]   ;;  %s6550_s12 = inlined_call_operand.vmem [shape: f32[1,64], index: 12, kind: input, shape index: {}]   ;;  %s6551_s13 = inlined_call_operand.vmem [shape: bf16[2,2,64], index: 13, kind: output, shape index: {}]  }
   0x1 LB: > { %s3897_s26 = sadd.s32 4294967295, %s5309_s25   ;;  %p3901_p0 = scmp.ge.s32.totalorder %s5309_s25, 1  ;;  %s5309_s25 = sphi %s5383_s25, %s23_s25  }
   0x2   : > { %p387_p1 = scmp.lt.s32.totalorder %s5309_s25, 3 }
   0x4   : > { %p388_p2 = pnand %p3901_p0, %p387_p1 }
   0x5   : > { %v5171_v0 = vld [vmem:[%s6539_s1 + $0x40] sm:$0xff] (!%p388_p2)   ;;  %v5311_v1 = vmov (!%p388_p2), 0.0   ;;  %v5173_v3 = vld [vmem:[%s6539_s1 + $0x48] sm:$0xff] (!%p388_p2)   ;;  %vm5312_vm0 = vmmov (!%p388_p2), 0   ;;  %v5175_v5 = vld [vmem:[%s6539_s1 + $0x50] sm:$0xff] (!%p388_p2)   ;;  %p429_p3 = scmp.lt.s32.totalorder (!%p388_p2), %s3897_s26, 1 }
   0x6   : > { %391 = sbr.rel (%p388_p2) target bundleno = 1883 (0x75b), region = 72  ;;  %4512 = vmatprep.subr.bf16.mxu0 (!%p388_p2), %v5311_v1  ;;  %4564 = vmatprep.subr.bf16.mxu1 (!%p388_p2), %v5311_v1  ;;  %v5172_v2 = vld [vmem:[%s6539_s1] sm:$0xff] (!%p388_p2)   ;;  %v5174_v4 = vld [vmem:[%s6539_s1 + $0x8] sm:$0xff] (!%p388_p2)   ;;  %v5176_v6 = vld [vmem:[%s6539_s1 + $0x10] sm:$0xff] (!%p388_p2)   ;;  %vm1949_vm1 = vcmask (!%p388_p2), 523264   ;;  %vm2830_vm2 = vcmask (!%p388_p2), 517120  }
   0x7   : > { %4513 = vmatpush3.bf16.msra.mxu0 (!%p388_p2), %v5171_v0  ;;  %4528 = vmatprep.mubr.msk.bf16.mxu0 (!%p388_p2), %vm5312_vm0, %v5311_v1  ;;  %v5177_v7 = vld [vmem:[%s6539_s1 + $0x58] sm:$0xff] (!%p388_p2)   ;;  %v5179_v9 = vld [vmem:[%s6539_s1 + $0x60] sm:$0xff] (!%p388_p2)   ;;  %v5181_v11 = vld [vmem:[%s6539_s1 + $0x68] sm:$0xff] (!%p388_p2)   ;;  %vm2843_vm3 = vcmask (!%p388_p2), 521216   ;;  %vm3098_vm4 = vcmask (!%p388_p2), 519168   ;;  %vm3848_vm5 = vcmask (!%p388_p2), 516096  }
   0x8   : > { %4565 = vmatpush3.bf16.msra.mxu1 (!%p388_p2), %v5172_v2  ;;  %4514 = vmatprep.subr.bf16.mxu0 (!%p388_p2), %v5311_v1  ;;  %v5178_v8 = vld [vmem:[%s6539_s1 + $0x18] sm:$0xff] (!%p388_p2)   ;;  %v5180_v10 = vld [vmem:[%s6539_s1 + $0x20] sm:$0xff] (!%p388_p2)   ;;  %v5182_v12 = vld [vmem:[%s6539_s1 + $0x28] sm:$0xff] (!%p388_p2)  }
   0x9   : > { %4566 = vmatprep.subr.bf16.mxu1 (!%p388_p2), %v5311_v1  ;;  %4580 = vmatprep.mubr.msk.bf16.mxu1 (!%p388_p2), %vm5312_vm0, %v5311_v1  ;;  %v5183_v13 = vld [vmem:[%s6539_s1 + $0x70] sm:$0xff] (!%p388_p2)   ;;  %v5185_v15 = vld [vmem:[%s6539_s1 + $0x78] sm:$0xff] (!%p388_p2)   ;;  %v5187_v23 = vld [vmem:[%s6539_s1 + $0x80] sm:$0xff] (!%p388_p2)  }
   0xa   : > { %v5184_v14 = vld [vmem:[%s6539_s1 + $0x30] sm:$0xff] (!%p388_p2)   ;;  %v5186_v16 = vld [vmem:[%s6539_s1 + $0x38] sm:$0xff] (!%p388_p2)   ;;  %v5192_v26 = vld [vmem:[%s6539_s1 + $0xc0] sm:$0xff] (!%p388_p2)  }
   0xb   : > { %4515 = vmatpush3.bf16.msra.mxu0 (!%p388_p2), %v5173_v3  ;;  %v5188_v28 = vld [vmem:[%s6539_s1 + $0x88] sm:$0xff] (!%p388_p2)   ;;  %v5189_v33 = vld [vmem:[%s6539_s1 + $0x90] sm:$0xff] (!%p388_p2)   ;;  %v5190_v39 = vld [vmem:[%s6539_s1 + $0x98] sm:$0xff] (!%p388_p2)  }
   0xc   : > { %4567 = vmatpush3.bf16.msra.mxu1 (!%p388_p2), %v5174_v4  ;;  %4516 = vmatprep.subr.bf16.mxu0 (!%p388_p2), %v5311_v1  ;;  %v5194_v30 = vld [vmem:[%s6539_s1 + $0xc8] sm:$0xff] (!%p388_p2)   ;;  %v5195_v36 = vld [vmem:[%s6539_s1 + $0xd0] sm:$0xff] (!%p388_p2)   ;;  %v5197_v40 = vld [vmem:[%s6539_s1 + $0xd8] sm:$0xff] (!%p388_p2)  }
   0xd   : > { %4568 = vmatprep.subr.bf16.mxu1 %v5311_v1  ;;  %s6553_s26 = smov (!%p429_p3, %s3897_s26), 1  ;;  %v5191_v43 = vld [vmem:[%s6539_s1 + $0xa0] sm:$0xff]   ;;  %v5193_v49 = vld [vmem:[%s6539_s1 + $0xa8] sm:$0xff]   ;;  %v5196_v53 = vld [vmem:[%s6539_s1 + $0xb0] sm:$0xff]  }
   0xe   : > { %s5160_s19 = smul.u32 152, %s6553_s26  ;;  %v5198_v44 = vld [vmem:[%s6539_s1 + $0xe0] sm:$0xff]   ;;  %v5199_v50 = vld [vmem:[%s6539_s1 + $0xe8] sm:$0xff]   ;;  %v5201_v56 = vld [vmem:[%s6539_s1 + $0xf0] sm:$0xff]   ;;  %s436_s29 = scalar_lea.vmem %s6551_s13, %s6553_s26 }
   0xf   : > { %4517 = vmatpush3.bf16.msra.mxu0 %v5175_v5  ;;  %v5200_v59 = vld [vmem:[%s6539_s1 + $0xb8] sm:$0xff]  }
  0x10   : > { %4569 = vmatpush3.bf16.msra.mxu1 %v5176_v6  ;;  %4518 = vmatprep.subr.bf16.mxu0 %v5311_v1  ;;  %s5460_s28 = scalar_lea.vmem %s6538_s0, %s5160_s19  ;;  %v5202_v60 = vld [vmem:[%s6539_s1 + $0xf8] sm:$0xff]  }
  0x11   : > { %4570 = vmatprep.subr.bf16.mxu1 %v5311_v1  ;;  %v481_v17 = vld [vmem:[%s5460_s28 + $0x1] sm:$0xff]  ;;  %v482_v18 = vld [vmem:[%s5460_s28 + $0x9] sm:$0xff]  ;;  %v483_v24 = vld [vmem:[%s5460_s28 + $0x11] sm:$0xff] }
  0x12   : > { %v438_v19 = vld [vmem:[%s5460_s28] sm:$0xff]  ;;  %v439_v20 = vld [vmem:[%s5460_s28 + $0x8] sm:$0xff]  ;;  %v499_v21 = vpack.c.bf16 %v482_v18, %v481_v17  ;;  %v440_v27 = vld [vmem:[%s5460_s28 + $0x10] sm:$0xff] }
  0x13   : > { %4519 = vmatpush3.bf16.msra.mxu0 %v5177_v7  ;;  %v456_v22 = vpack.c.bf16 %v439_v20, %v438_v19  ;;  %v484_v25 = vld [vmem:[%s5460_s28 + $0x19] sm:$0xff]  ;;  %v485_v34 = vld [vmem:[%s5460_s28 + $0x21] sm:$0xff]  ;;  %v486_v35 = vld [vmem:[%s5460_s28 + $0x29] sm:$0xff] }
  0x14   : > { %4571 = vmatpush3.bf16.msra.mxu1 %v5178_v8  ;;  %4520 = vmatprep.subr.bf16.mxu0 %v5311_v1  ;;  %v441_v29 = vld [vmem:[%s5460_s28 + $0x18] sm:$0xff]  ;;  %v500_v31 = vpack.c.bf16 %v484_v25, %v483_v24  ;;  %v442_v37 = vld [vmem:[%s5460_s28 + $0x20] sm:$0xff]  ;;  %v443_v38 = vld [vmem:[%s5460_s28 + $0x28] sm:$0xff]  ;;  %v501_v41 = vpack.c.bf16 %v486_v35, %v485_v34 }
  0x15   : > { %4572 = vmatprep.subr.bf16.mxu1 %v5311_v1  ;;  %v457_v32 = vpack.c.bf16 %v441_v29, %v440_v27  ;;  %v458_v42 = vpack.c.bf16 %v443_v38, %v442_v37  ;;  %v487_v45 = vld [vmem:[%s5460_s28 + $0x31] sm:$0xff]  ;;  %v488_v46 = vld [vmem:[%s5460_s28 + $0x39] sm:$0xff]  ;;  %v489_v54 = vld [vmem:[%s5460_s28 + $0x41] sm:$0xff] }
  0x16   : > { %v444_v47 = vld [vmem:[%s5460_s28 + $0x30] sm:$0xff]  ;;  %v445_v48 = vld [vmem:[%s5460_s28 + $0x38] sm:$0xff]  ;;  %v502_v51 = vpack.c.bf16 %v488_v46, %v487_v45  ;;  %v446_v57 = vld [vmem:[%s5460_s28 + $0x40] sm:$0xff] }
  0x17   : > { %4521 = vmatpush3.bf16.msra.mxu0 %v5179_v9  ;;  %v459_v52 = vpack.c.bf16 %v445_v48, %v444_v47  ;;  %v490_v55 = vld [vmem:[%s5460_s28 + $0x49] sm:$0xff]  ;;  %v491_v63 = vld [vmem:[%s5460_s28 + $0x51] sm:$0xff]  ;;  %v492_v0 = vld [vmem:[%s5460_s28 + $0x59] sm:$0xff] }
  0x18   : > { %4573 = vmatpush3.bf16.msra.mxu1 %v5180_v10  ;;  %4522 = vmatprep.subr.bf16.mxu0 %v5311_v1  ;;  %v447_v58 = vld [vmem:[%s5460_s28 + $0x48] sm:$0xff]  ;;  %v503_v61 = vpack.c.bf16 %v490_v55, %v489_v54  ;;  %v448_v2 = vld [vmem:[%s5460_s28 + $0x50] sm:$0xff]  ;;  %v449_v3 = vld [vmem:[%s5460_s28 + $0x58] sm:$0xff]  ;;  %v504_v4 = vpack.c.bf16 %v492_v0, %v491_v63 }
  0x19   : > { %4574 = vmatprep.subr.bf16.mxu1 %v5311_v1  ;;  %v460_v62 = vpack.c.bf16 %v447_v58, %v446_v57  ;;  %v461_v5 = vpack.c.bf16 %v449_v3, %v448_v2  ;;  %v493_v6 = vld [vmem:[%s5460_s28 + $0x61] sm:$0xff]  ;;  %v494_v7 = vld [vmem:[%s5460_s28 + $0x69] sm:$0xff]  ;;  %v1048_v34 = vld [vmem:[%s5460_s28 + $0x13] sm:$0xff] }
  0x1a   : > { %v450_v8 = vld [vmem:[%s5460_s28 + $0x60] sm:$0xff]  ;;  %v451_v9 = vld [vmem:[%s5460_s28 + $0x68] sm:$0xff]  ;;  %v505_v10 = vpack.c.bf16 %v494_v7, %v493_v6  ;;  %v5206_v46 = vld [vmem:[%s6539_s1 + $0x118] sm:$0xff]  }
  0x1b   : > { %4523 = vmatpush3.bf16.msra.mxu0 %v5181_v11  ;;  %v462_v11 = vpack.c.bf16 %v451_v9, %v450_v8  ;;  %v497_v18 = vld [vmem:[%s5460_s28 + $0x81] sm:$0xff]  ;;  %v498_v19 = vld [vmem:[%s5460_s28 + $0x89] sm:$0xff]  ;;  %v5213_v47 = vld [vmem:[%s6539_s1 + $0x158] sm:$0xff]  }
  0x1c   : > { %4575 = vmatpush3.bf16.msra.mxu1 %v5182_v12  ;;  %4524 = vmatprep.subr.bf16.mxu0 %v5311_v1  ;;  %v495_v12 = vld [vmem:[%s5460_s28 + $0x71] sm:$0xff]  ;;  %v454_v20 = vld [vmem:[%s5460_s28 + $0x80] sm:$0xff]  ;;  %v5210_v37 = vld [vmem:[%s6539_s1 + $0x148] sm:$0xff]  }
  0x1d   : > { %4576 = vmatprep.subr.bf16.mxu1 %v5311_v1  ;;  %v831_v24 = vld [vmem:[%s5460_s28 + $0x2] sm:$0xff]  ;;  %v832_v25 = vld [vmem:[%s5460_s28 + $0xa] sm:$0xff]  ;;  %v1052_v54 = vld [vmem:[%s5460_s28 + $0x33] sm:$0xff] }
  0x1e   : > { %v1047_v27 = vld [vmem:[%s5460_s28 + $0xb] sm:$0xff]  ;;  %v849_v29 = vpack.c.bf16 %v832_v25, %v831_v24  ;;  %v1049_v35 = vld [vmem:[%s5460_s28 + $0x1b] sm:$0xff]  ;;  %v1054_v0 = vld [vmem:[%s5460_s28 + $0x43] sm:$0xff] }
  0x1f   : > { %4525 = vmatpush3.bf16.msra.mxu0 %v5183_v13  ;;  %v496_v13 = vld [vmem:[%s5460_s28 + $0x79] sm:$0xff]  ;;  %v1051_v45 = vld [vmem:[%s5460_s28 + $0x2b] sm:$0xff]  ;;  %v847_v25 = vld [vmem:[%s5460_s28 + $0x82] sm:$0xff] }
  0x20   : > { %4577 = vmatpush3.bf16.msra.mxu1 %v5184_v14  ;;  %4526 = vmatprep.subr.bf16.mxu0 %v5311_v1  ;;  %v452_v14 = vld [vmem:[%s5460_s28 + $0x70] sm:$0xff]  ;;  %v1053_v55 = vld [vmem:[%s5460_s28 + $0x3b] sm:$0xff]  ;;  %v5215_v57 = vld [vmem:[%s6539_s1 + $0x168] sm:$0xff]  }
  0x21   : > { %4578 = vmatprep.subr.bf16.mxu1 %v5311_v1  ;;  %v840_v63 = vld [vmem:[%s5460_s28 + $0x4a] sm:$0xff]  ;;  %v5216_v3 = vld [vmem:[%s6539_s1 + $0x138] sm:$0xff]  }
  0x22   : > { %v1055_v2 = vld [vmem:[%s5460_s28 + $0x4b] sm:$0xff]  ;;  %v842_v8 = vld [vmem:[%s5460_s28 + $0x5a] sm:$0xff] }
  0x23   : > { %4527 = vmatpush3.bf16.msra.mxu0 %v5185_v15  ;;  %v453_v15 = vld [vmem:[%s5460_s28 + $0x78] sm:$0xff]  ;;  %v1068_v6 = vpack.c.bf16 %v1055_v2, %v1054_v0  ;;  %v1484_v0 = vld [vmem:[%s5460_s28 + $0x45] sm:$0xff]  ;;  %v1485_v2 = vld [vmem:[%s5460_s28 + $0x4d] sm:$0xff] }
  0x24   : > { %4579 = vmatpush3.bf16.msra.mxu1 %v5186_v16  ;;  %4616 = vmatprep.subr.bf16.mxu0 %v5311_v1  ;;  %v506_v16 = vpack.c.bf16 %v496_v13, %v495_v12  ;;  %v463_v17 = vpack.c.bf16 %v453_v15, %v452_v14  ;;  %v841_v7 = vld [vmem:[%s5460_s28 + $0x52] sm:$0xff]  ;;  %v843_v13 = vld [vmem:[%s5460_s28 + $0x62] sm:$0xff]  ;;  %v844_v14 = vld [vmem:[%s5460_s28 + $0x6a] sm:$0xff] }
  0x25   : > { %4668 = vmatprep.subr.bf16.mxu1 %v5311_v1  ;;  %v1056_v9 = vld [vmem:[%s5460_s28 + $0x53] sm:$0xff]  ;;  %v1058_v15 = vld [vmem:[%s5460_s28 + $0x63] sm:$0xff] }
  0x26   : > { %4529 = vmatmul.mubr.bf16.vlgmr.msra.gmra.mrb[0].mxu0 %v499_v21  ;;  %v455_v21 = vld [vmem:[%s5460_s28 + $0x88] sm:$0xff] }
  0x27   : > { %4581 = vmatmul.mubr.bf16.vlgmr.msra.gmra.mrb[0].mxu1 %v456_v22  ;;  %4617 = vmatpush3.bf16.msra.mxu0 %v5187_v23  ;;  %v507_v22 = vpack.c.bf16 %v498_v19, %v497_v18  ;;  %v464_v23 = vpack.c.bf16 %v455_v21, %v454_v20  ;;  %v845_v19 = vld [vmem:[%s5460_s28 + $0x72] sm:$0xff]  ;;  %v846_v20 = vld [vmem:[%s5460_s28 + $0x7a] sm:$0xff] }
  0x28   : > { %4532 = vmatprep.mubr.msk.bf16.mxu0 %vm5312_vm0, %v5311_v1  ;;  %4584 = vmatprep.mubr.msk.bf16.mxu1 %vm5312_vm0, %v5311_v1  ;;  %v1060_v21 = vld [vmem:[%s5460_s28 + $0x73] sm:$0xff] }
  0x29   : > { %4618 = vmatprep.subr.bf16.mxu0 %v5311_v1  ;;  %4669 = vmatpush3.bf16.msra.mxu1 %v5192_v26  ;;  %v1046_v26 = vld [vmem:[%s5460_s28 + $0x3] sm:$0xff] }
  0x2a   : > { %4670 = vmatprep.subr.bf16.mxu1 %v5311_v1 }
  0x2b   : > { %4619 = vmatpush3.bf16.msra.mxu0 %v5188_v28  ;;  %v5203_v28 = vld [vmem:[%s6539_s1 + $0x100] sm:$0xff]  }
  0x2c   : > { %4620 = vmatprep.subr.bf16.mxu0 %v5311_v1 }
  0x2d   : > { %4671 = vmatpush3.bf16.msra.mxu1 %v5194_v30  ;;  %v1064_v30 = vpack.c.bf16 %v1047_v27, %v1046_v26  ;;  %v848_v26 = vld [vmem:[%s5460_s28 + $0x8a] sm:$0xff] }
  0x2e   : > { %4533 = vmatmul.mubr.bf16.gmra.mrb[4].mxu0 %v500_v31  ;;  %4672 = vmatprep.subr.bf16.mxu1 %v5311_v1  ;;  %v5208_v31 = vld [vmem:[%s6539_s1 + $0x140] sm:$0xff]  }
  0x2f   : > { %4585 = vmatmul.mubr.bf16.gmra.mrb[4].mxu1 %v457_v32  ;;  %4536 = vmatprep.mubr.msk.bf16.mxu0 %vm5312_vm0, %v5311_v1  ;;  %v833_v32 = vld [vmem:[%s5460_s28 + $0x12] sm:$0xff]  ;;  %v1062_v27 = vld [vmem:[%s5460_s28 + $0x83] sm:$0xff] }
  0x30   : > { %4588 = vmatprep.mubr.msk.bf16.mxu1 %vm5312_vm0, %v5311_v1  ;;  %4621 = vmatpush3.bf16.msra.mxu0 %v5189_v33  ;;  %v834_v33 = vld [vmem:[%s5460_s28 + $0x1a] sm:$0xff] }
  0x31   : > { %4622 = vmatprep.subr.bf16.mxu0 %v5311_v1  ;;  %4673 = vmatpush3.bf16.msra.mxu1 %v5195_v36  ;;  %v5204_v36 = vld [vmem:[%s6539_s1 + $0x108] sm:$0xff]   ;;  %v850_v38 = vpack.c.bf16 %v834_v33, %v833_v32 }
  0x32   : > { %4674 = vmatprep.subr.bf16.mxu1 %v5311_v1  ;;  %v1262_v32 = vld [vmem:[%s5460_s28 + $0xc] sm:$0xff] }
  0x33   : > { %v1476_v33 = vld [vmem:[%s5460_s28 + $0x5] sm:$0xff] }
  0x34   : > { %4623 = vmatpush3.bf16.msra.mxu0 %v5190_v39  ;;  %v5205_v39 = vld [vmem:[%s6539_s1 + $0x110] sm:$0xff]  }
  0x35   : > { %4624 = vmatprep.subr.bf16.mxu0 %v5311_v1  ;;  %4675 = vmatpush3.bf16.msra.mxu1 %v5197_v40  ;;  %v1065_v40 = vpack.c.bf16 %v1049_v35, %v1048_v34  ;;  %v1477_v34 = vld [vmem:[%s5460_s28 + $0xd] sm:$0xff] }
  0x36   : > { %4537 = vmatmul.mubr.bf16.gmra.mrb[8].mxu0 %v501_v41  ;;  %4676 = vmatprep.subr.bf16.mxu1 %v5311_v1  ;;  %v5211_v41 = vld [vmem:[%s6539_s1 + $0x150] sm:$0xff]  }
  0x37   : > { %4589 = vmatmul.mubr.bf16.gmra.mrb[8].mxu1 %v458_v42  ;;  %4540 = vmatprep.mubr.msk.bf16.mxu0 %vm5312_vm0, %v5311_v1  ;;  %v835_v42 = vld [vmem:[%s5460_s28 + $0x22] sm:$0xff] }
  0x38   : > { %4592 = vmatprep.mubr.msk.bf16.mxu1 %vm5312_vm0, %v5311_v1  ;;  %4625 = vmatpush3.bf16.msra.mxu0 %v5191_v43  ;;  %v836_v43 = vld [vmem:[%s5460_s28 + $0x2a] sm:$0xff] }
  0x39   : > { %4626 = vmatprep.subr.bf16.mxu0 %v5311_v1  ;;  %4677 = vmatpush3.bf16.msra.mxu1 %v5198_v44  ;;  %v1050_v44 = vld [vmem:[%s5460_s28 + $0x23] sm:$0xff]  ;;  %v851_v48 = vpack.c.bf16 %v836_v43, %v835_v42 }
  0x3a   : > { %4678 = vmatprep.subr.bf16.mxu1 %v5311_v1  ;;  %v1479_v42 = vld [vmem:[%s5460_s28 + $0x1d] sm:$0xff] }
  0x3c   : > { %4627 = vmatpush3.bf16.msra.mxu0 %v5193_v49  ;;  %v1066_v49 = vpack.c.bf16 %v1051_v45, %v1050_v44  ;;  %v5221_v45 = vld [vmem:[%s6539_s1 + $0x190] sm:$0xff]  }
  0x3d   : > { %4628 = vmatprep.subr.bf16.mxu0 %v5311_v1  ;;  %4679 = vmatpush3.bf16.msra.mxu1 %v5199_v50  ;;  %v5207_v50 = vld [vmem:[%s6539_s1 + $0x120] sm:$0xff]  }
  0x3e   : > { %4541 = vmatmul.mubr.bf16.gmra.mrb[12].mxu0 %v502_v51  ;;  %4680 = vmatprep.subr.bf16.mxu1 %v5311_v1  ;;  %v5214_v51 = vld [vmem:[%s6539_s1 + $0x160] sm:$0xff]  }
  0x3f   : > { %4593 = vmatmul.mubr.bf16.gmra.mrb[12].mxu1 %v459_v52  ;;  %4544 = vmatprep.mubr.msk.bf16.mxu0 %vm5312_vm0, %v5311_v1  ;;  %v837_v52 = vld [vmem:[%s5460_s28 + $0x32] sm:$0xff] }
  0x40   : > { %4596 = vmatprep.mubr.msk.bf16.mxu1 %vm5312_vm0, %v5311_v1  ;;  %4629 = vmatpush3.bf16.msra.mxu0 %v5196_v53  ;;  %v838_v53 = vld [vmem:[%s5460_s28 + $0x3a] sm:$0xff] }
  0x41   : > { %4630 = vmatprep.subr.bf16.mxu0 %v5311_v1  ;;  %4681 = vmatpush3.bf16.msra.mxu1 %v5201_v56  ;;  %v5209_v56 = vld [vmem:[%s6539_s1 + $0x128] sm:$0xff]   ;;  %v852_v58 = vpack.c.bf16 %v838_v53, %v837_v52  ;;  %v5223_v53 = vld [vmem:[%s6539_s1 + $0x1a0] sm:$0xff]  }
  0x42   : > { %4682 = vmatprep.subr.bf16.mxu1 %v5311_v1 }
  0x44   : > { %4631 = vmatpush3.bf16.msra.mxu0 %v5200_v59  ;;  %v1067_v59 = vpack.c.bf16 %v1053_v55, %v1052_v54  ;;  %v1267_v54 = vld [vmem:[%s5460_s28 + $0x34] sm:$0xff]  ;;  %v1268_v55 = vld [vmem:[%s5460_s28 + $0x3c] sm:$0xff] }
  0x45   : > { %4683 = vmatpush3.bf16.msra.mxu1 %v5202_v60  ;;  %4720 = vmatprep.subr.bf16.mxu0 %v5311_v1  ;;  %v5212_v60 = vld [vmem:[%s6539_s1 + $0x130] sm:$0xff]  }
  0x46   : > { %4545 = vmatmul.mubr.bf16.gmra.mrb[16].mxu0 %v503_v61  ;;  %4772 = vmatprep.subr.bf16.mxu1 %v5311_v1  ;;  %v5217_v61 = vld [vmem:[%s6539_s1 + $0x170] sm:$0xff]  }
  0x47   : > { %4597 = vmatmul.mubr.bf16.gmra.mrb[16].mxu1 %v460_v62  ;;  %4548 = vmatprep.mubr.msk.bf16.mxu0 %vm5312_vm0, %v5311_v1  ;;  %v839_v62 = vld [vmem:[%s5460_s28 + $0x42] sm:$0xff] }
  0x48   : > { %4600 = vmatprep.mubr.msk.bf16.mxu1 %vm5312_vm0, %v5311_v1 }
  0x4e   : > { %4549 = vmatmul.mubr.bf16.gmra.mrb[20].mxu0 %v504_v4  ;;  %v5218_v4 = vld [vmem:[%s6539_s1 + $0x178] sm:$0xff]  }
  0x4f   : > { %4601 = vmatmul.mubr.bf16.gmra.mrb[20].mxu1 %v461_v5  ;;  %4552 = vmatprep.mubr.msk.bf16.mxu0 %vm5312_vm0, %v5311_v1  ;;  %v853_v5 = vpack.c.bf16 %v840_v63, %v839_v62  ;;  %v1269_v62 = vld [vmem:[%s5460_s28 + $0x44] sm:$0xff]  ;;  %v1270_v63 = vld [vmem:[%s5460_s28 + $0x4c] sm:$0xff] }
  0x50   : > { %4604 = vmatprep.mubr.msk.bf16.mxu1 %vm5312_vm0, %v5311_v1 }
  0x56   : > { %4553 = vmatmul.mubr.bf16.gmra.mrb[24].mxu0 %v505_v10  ;;  %v1057_v10 = vld [vmem:[%s5460_s28 + $0x5b] sm:$0xff] }
  0x57   : > { %4605 = vmatmul.mubr.bf16.gmra.mrb[24].mxu1 %v462_v11  ;;  %4556 = vmatprep.mubr.msk.bf16.mxu0 %vm5312_vm0, %v5311_v1  ;;  %v854_v11 = vpack.c.bf16 %v842_v8, %v841_v7  ;;  %v1069_v12 = vpack.c.bf16 %v1057_v10, %v1056_v9  ;;  %v1272_v7 = vld [vmem:[%s5460_s28 + $0x5c] sm:$0xff] }
  0x58   : > { %4608 = vmatprep.mubr.msk.bf16.mxu1 %vm5312_vm0, %v5311_v1  ;;  %v1486_v8 = vld [vmem:[%s5460_s28 + $0x55] sm:$0xff]  ;;  %v1487_v9 = vld [vmem:[%s5460_s28 + $0x5d] sm:$0xff] }
  0x5e   : > { %4557 = vmatmul.mubr.bf16.gmra.mrb[28].mxu0 %v506_v16  ;;  %v1059_v16 = vld [vmem:[%s5460_s28 + $0x6b] sm:$0xff] }
  0x5f   : > { %4609 = vmatmul.mubr.bf16.gmra.mrb[28].mxu1 %v463_v17  ;;  %4560 = vmatprep.mubr.msk.bf16.mxu0 %vm5312_vm0, %v5311_v1  ;;  %v855_v17 = vpack.c.bf16 %v844_v14, %v843_v13  ;;  %v1070_v18 = vpack.c.bf16 %v1059_v16, %v1058_v15  ;;  %v1274_v13 = vld [vmem:[%s5460_s28 + $0x6c] sm:$0xff] }
  0x60   : > { %4612 = vmatprep.mubr.msk.bf16.mxu1 %vm5312_vm0, %v5311_v1  ;;  %v1488_v14 = vld [vmem:[%s5460_s28 + $0x65] sm:$0xff]  ;;  %v1489_v15 = vld [vmem:[%s5460_s28 + $0x6d] sm:$0xff] }
  0x66   : > { %4561 = vmatmul.mubr.bf16.gmra.mrb[32].mxu0 %v507_v22  ;;  %v1061_v22 = vld [vmem:[%s5460_s28 + $0x7b] sm:$0xff] }
  0x67   : > { %4613 = vmatmul.mubr.bf16.gmra.mrb[32].mxu1 %v464_v23  ;;  %4632 = vmatprep.mubr.msk.bf16.mxu0 %vm5312_vm0, %v5311_v1  ;;  %v856_v23 = vpack.c.bf16 %v846_v20, %v845_v19  ;;  %v1071_v24 = vpack.c.bf16 %v1061_v22, %v1060_v21  ;;  %v1276_v19 = vld [vmem:[%s5460_s28 + $0x7c] sm:$0xff] }
  0x68   : > { %4684 = vmatprep.mubr.msk.bf16.mxu1 %vm5312_vm0, %v5311_v1  ;;  %v1490_v20 = vld [vmem:[%s5460_s28 + $0x75] sm:$0xff]  ;;  %v1491_v21 = vld [vmem:[%s5460_s28 + $0x7d] sm:$0xff] }
  0x6e   : > { %4633 = vmatmul.mubr.bf16.vlgmr.msra.gmra.mrb[36].mxu0 %v849_v29  ;;  %v857_v29 = vpack.c.bf16 %v848_v26, %v847_v25  ;;  %v1278_v25 = vld [vmem:[%s5460_s28 + $0x8c] sm:$0xff] }
  0x6f   : > { %4721 = vmatpush3.bf16.msra.mxu0 %v5203_v28  ;;  %4685 = vmatmul.mubr.bf16.vlgmr.msra.gmra.mrb[36].mxu1 %v1064_v30  ;;  %v1063_v28 = vld [vmem:[%s5460_s28 + $0x8b] sm:$0xff] }
  0x70   : > { %4636 = vmatprep.mubr.msk.bf16.mxu0 %vm5312_vm0, %v5311_v1  ;;  %4688 = vmatprep.mubr.msk.bf16.mxu1 %vm5312_vm0, %v5311_v1  ;;  %v1072_v30 = vpack.c.bf16 %v1063_v28, %v1062_v27  ;;  %v1492_v26 = vld [vmem:[%s5460_s28 + $0x85] sm:$0xff]  ;;  %v1493_v27 = vld [vmem:[%s5460_s28 + $0x8d] sm:$0xff] }
  0x71   : > { %4722 = vmatprep.subr.bf16.mxu0 %v5311_v1  ;;  %4773 = vmatpush3.bf16.msra.mxu1 %v5208_v31  ;;  %v1261_v31 = vld [vmem:[%s5460_s28 + $0x4] sm:$0xff] }
  0x72   : > { %4774 = vmatprep.subr.bf16.mxu1 %v5311_v1  ;;  %v1279_v35 = vpack.c.bf16 %v1262_v32, %v1261_v31  ;;  %v1692_v31 = vld [vmem:[%s5460_s28 + $0xe] sm:$0xff] }
  0x73   : > { %4723 = vmatpush3.bf16.msra.mxu0 %v5204_v36  ;;  %v5219_v36 = vld [vmem:[%s6539_s1 + $0x180] sm:$0xff]  }
  0x74   : > { %4724 = vmatprep.subr.bf16.mxu0 %v5311_v1 }
  0x75   : > { %4775 = vmatpush3.bf16.msra.mxu1 %v5210_v37  ;;  %v1494_v37 = vpack.c.bf16 %v1477_v34, %v1476_v33 }
  0x76   : > { %4637 = vmatmul.mubr.bf16.gmra.mrb[40].mxu0 %v850_v38  ;;  %4776 = vmatprep.subr.bf16.mxu1 %v5311_v1  ;;  %v1263_v38 = vld [vmem:[%s5460_s28 + $0x14] sm:$0xff] }
  0x77   : > { %4689 = vmatmul.mubr.bf16.gmra.mrb[40].mxu1 %v1065_v40  ;;  %4640 = vmatprep.mubr.msk.bf16.mxu0 %vm5312_vm0, %v5311_v1  ;;  %v5220_v40 = vld [vmem:[%s6539_s1 + $0x188] sm:$0xff]  }
  0x78   : > { %4692 = vmatprep.mubr.msk.bf16.mxu1 %vm5312_vm0, %v5311_v1  ;;  %4725 = vmatpush3.bf16.msra.mxu0 %v5205_v39  ;;  %v1264_v39 = vld [vmem:[%s5460_s28 + $0x1c] sm:$0xff] }
  0x79   : > { %4726 = vmatprep.subr.bf16.mxu0 %v5311_v1  ;;  %4777 = vmatpush3.bf16.msra.mxu1 %v5211_v41  ;;  %v1478_v41 = vld [vmem:[%s5460_s28 + $0x15] sm:$0xff]  ;;  %v1280_v43 = vpack.c.bf16 %v1264_v39, %v1263_v38 }
  0x7a   : > { %4778 = vmatprep.subr.bf16.mxu1 %v5311_v1  ;;  %v1495_v44 = vpack.c.bf16 %v1479_v42, %v1478_v41 }
  0x7c   : > { %4727 = vmatpush3.bf16.msra.mxu0 %v5206_v46  ;;  %v1265_v46 = vld [vmem:[%s5460_s28 + $0x24] sm:$0xff] }
  0x7d   : > { %4728 = vmatprep.subr.bf16.mxu0 %v5311_v1  ;;  %4779 = vmatpush3.bf16.msra.mxu1 %v5213_v47  ;;  %v1266_v47 = vld [vmem:[%s5460_s28 + $0x2c] sm:$0xff] }
  0x7e   : > { %4641 = vmatmul.mubr.bf16.gmra.mrb[44].mxu0 %v851_v48  ;;  %4780 = vmatprep.subr.bf16.mxu1 %v5311_v1  ;;  %v1480_v48 = vld [vmem:[%s5460_s28 + $0x25] sm:$0xff] }
  0x7f   : > { %4693 = vmatmul.mubr.bf16.gmra.mrb[44].mxu1 %v1066_v49  ;;  %4644 = vmatprep.mubr.msk.bf16.mxu0 %vm5312_vm0, %v5311_v1  ;;  %v1481_v49 = vld [vmem:[%s5460_s28 + $0x2d] sm:$0xff] }
  0x80   : > { %4696 = vmatprep.mubr.msk.bf16.mxu1 %vm5312_vm0, %v5311_v1  ;;  %4729 = vmatpush3.bf16.msra.mxu0 %v5207_v50  ;;  %v5222_v50 = vld [vmem:[%s6539_s1 + $0x198] sm:$0xff]   ;;  %v1496_v52 = vpack.c.bf16 %v1481_v49, %v1480_v48 }
  0x81   : > { %4730 = vmatprep.subr.bf16.mxu0 %v5311_v1  ;;  %4781 = vmatpush3.bf16.msra.mxu1 %v5214_v51  ;;  %v1281_v51 = vpack.c.bf16 %v1266_v47, %v1265_v46 }
  0x82   : > { %4782 = vmatprep.subr.bf16.mxu1 %v5311_v1 }
  0x84   : > { %4731 = vmatpush3.bf16.msra.mxu0 %v5209_v56  ;;  %v1482_v56 = vld [vmem:[%s5460_s28 + $0x35] sm:$0xff] }
  0x85   : > { %4732 = vmatprep.subr.bf16.mxu0 %v5311_v1  ;;  %4783 = vmatpush3.bf16.msra.mxu1 %v5215_v57  ;;  %v1483_v57 = vld [vmem:[%s5460_s28 + $0x3d] sm:$0xff] }
  0x86   : > { %4645 = vmatmul.mubr.bf16.gmra.mrb[48].mxu0 %v852_v58  ;;  %4784 = vmatprep.subr.bf16.mxu1 %v5311_v1  ;;  %v5224_v58 = vld [vmem:[%s6539_s1 + $0x1a8] sm:$0xff]  }
  0x87   : > { %4697 = vmatmul.mubr.bf16.gmra.mrb[48].mxu1 %v1067_v59  ;;  %4648 = vmatprep.mubr.msk.bf16.mxu0 %vm5312_vm0, %v5311_v1  ;;  %v1282_v59 = vpack.c.bf16 %v1268_v55, %v1267_v54 }
  0x88   : > { %4700 = vmatprep.mubr.msk.bf16.mxu1 %vm5312_vm0, %v5311_v1  ;;  %4733 = vmatpush3.bf16.msra.mxu0 %v5212_v60  ;;  %v1497_v60 = vpack.c.bf16 %v1483_v57, %v1482_v56  ;;  %v1695_v56 = vld [vmem:[%s5460_s28 + $0x26] sm:$0xff]  ;;  %v1696_v57 = vld [vmem:[%s5460_s28 + $0x2e] sm:$0xff] }
  0x89   : > { %4734 = vmatprep.subr.bf16.mxu0 %v5311_v1  ;;  %4785 = vmatpush3.bf16.msra.mxu1 %v5217_v61  ;;  %v5225_v61 = vld [vmem:[%s6539_s1 + $0x1b0] sm:$0xff]  }
  0x8a   : > { %4786 = vmatprep.subr.bf16.mxu1 %v5311_v1 }
  0x8c   : > { %4735 = vmatpush3.bf16.msra.mxu0 %v5216_v3  ;;  %v5226_v3 = vld [vmem:[%s6539_s1 + $0x1b8] sm:$0xff]  }
  0x8d   : > { %4787 = vmatpush3.bf16.msra.mxu1 %v5218_v4  ;;  %4824 = vmatprep.subr.bf16.mxu0 %v5311_v1  ;;  %v1283_v4 = vpack.c.bf16 %v1270_v63, %v1269_v62 }
  0x8e   : > { %4649 = vmatmul.mubr.bf16.gmra.mrb[52].mxu0 %v853_v5  ;;  %4876 = vmatprep.subr.bf16.mxu1 %v5311_v1  ;;  %v1498_v5 = vpack.c.bf16 %v1485_v2, %v1484_v0 }
  0x8f   : > { %4701 = vmatmul.mubr.bf16.gmra.mrb[52].mxu1 %v1068_v6  ;;  %4652 = vmatprep.mubr.msk.bf16.mxu0 %vm5312_vm0, %v5311_v1  ;;  %v1271_v6 = vld [vmem:[%s5460_s28 + $0x54] sm:$0xff] }
  0x90   : > { %4704 = vmatprep.mubr.msk.bf16.mxu1 %vm5312_vm0, %v5311_v1  ;;  %v1284_v10 = vpack.c.bf16 %v1272_v7, %v1271_v6  ;;  %v1697_v6 = vld [vmem:[%s5460_s28 + $0x36] sm:$0xff]  ;;  %v1698_v7 = vld [vmem:[%s5460_s28 + $0x3e] sm:$0xff] }
  0x96   : > { %4653 = vmatmul.mubr.bf16.gmra.mrb[56].mxu0 %v854_v11  ;;  %v1499_v11 = vpack.c.bf16 %v1487_v9, %v1486_v8 }
  0x97   : > { %4705 = vmatmul.mubr.bf16.gmra.mrb[56].mxu1 %v1069_v12  ;;  %4656 = vmatprep.mubr.msk.bf16.mxu0 %vm5312_vm0, %v5311_v1  ;;  %v1273_v12 = vld [vmem:[%s5460_s28 + $0x64] sm:$0xff] }
  0x98   : > { %4708 = vmatprep.mubr.msk.bf16.mxu1 %vm5312_vm0, %v5311_v1  ;;  %v1285_v16 = vpack.c.bf16 %v1274_v13, %v1273_v12 }
  0x9e   : > { %4657 = vmatmul.mubr.bf16.gmra.mrb[60].mxu0 %v855_v17  ;;  %v1500_v17 = vpack.c.bf16 %v1489_v15, %v1488_v14 }
  0x9f   : > { %4709 = vmatmul.mubr.bf16.gmra.mrb[60].mxu1 %v1070_v18  ;;  %4660 = vmatprep.mubr.msk.bf16.mxu0 %vm5312_vm0, %v5311_v1  ;;  %v1275_v18 = vld [vmem:[%s5460_s28 + $0x74] sm:$0xff] }
  0xa0   : > { %4712 = vmatprep.mubr.msk.bf16.mxu1 %vm5312_vm0, %v5311_v1  ;;  %v1286_v22 = vpack.c.bf16 %v1276_v19, %v1275_v18  ;;  %v1699_v19 = vld [vmem:[%s5460_s28 + $0x46] sm:$0xff] }
  0xa6   : > { %4661 = vmatmul.mubr.bf16.gmra.mrb[64].mxu0 %v856_v23  ;;  %v1501_v23 = vpack.c.bf16 %v1491_v21, %v1490_v20  ;;  %v1700_v20 = vld [vmem:[%s5460_s28 + $0x4e] sm:$0xff] }
  0xa7   : > { %4713 = vmatmul.mubr.bf16.gmra.mrb[64].mxu1 %v1071_v24  ;;  %4664 = vmatprep.mubr.msk.bf16.mxu0 %vm5312_vm0, %v5311_v1  ;;  %v1277_v24 = vld [vmem:[%s5460_s28 + $0x84] sm:$0xff] }
  0xa8   : > { %4716 = vmatprep.mubr.msk.bf16.mxu1 %vm5312_vm0, %v5311_v1  ;;  %v1287_v28 = vpack.c.bf16 %v1278_v25, %v1277_v24  ;;  %v1713_v24 = vpack.c.bf16 %v1700_v20, %v1699_v19 }
  0xae   : > { %4665 = vmatmul.mubr.bf16.gmra.mrb[68].mxu0 %v857_v29  ;;  %v1502_v29 = vpack.c.bf16 %v1493_v27, %v1492_v26 }
  0xaf   : > { %4717 = vmatmul.mubr.bf16.gmra.mrb[68].mxu1 %v1072_v30  ;;  %4736 = vmatprep.mubr.msk.bf16.mxu0 %vm5312_vm0, %v5311_v1  ;;  %v1691_v30 = vld [vmem:[%s5460_s28 + $0x6] sm:$0xff] }
  0xb0   : > { %4788 = vmatprep.mubr.msk.bf16.mxu1 %vm5312_vm0, %v5311_v1 }
  0xb6   : > { %4737 = vmatmul.mubr.bf16.vlgmr.msra.gmra.mrb[72].mxu0 %v1279_v35  ;;  %v1709_v35 = vpack.c.bf16 %v1692_v31, %v1691_v30 }
  0xb7   : > { %4825 = vmatpush3.bf16.msra.mxu0 %v5219_v36  ;;  %4789 = vmatmul.mubr.bf16.vlgmr.msra.gmra.mrb[72].mxu1 %v1494_v37 }
  0xb8   : > { %4740 = vmatprep.mubr.msk.bf16.mxu0 %vm5312_vm0, %v5311_v1  ;;  %4792 = vmatprep.mubr.msk.bf16.mxu1 %vm5312_vm0, %v5311_v1 }
  0xb9   : > { %4826 = vmatprep.subr.bf16.mxu0 %v5311_v1 }
  0xbb   : > { %4827 = vmatpush3.bf16.msra.mxu0 %v5220_v40 }
  0xbc   : > { %4828 = vmatprep.subr.bf16.mxu0 %v5311_v1 }
  0xbe   : > { %4741 = vmatmul.mubr.bf16.gmra.mrb[76].mxu0 %v1280_v43  ;;  %v1693_v43 = vld [vmem:[%s5460_s28 + $0x16] sm:$0xff] }
  0xbf   : > { %4793 = vmatmul.mubr.bf16.gmra.mrb[76].mxu1 %v1495_v44  ;;  %4744 = vmatprep.mubr.msk.bf16.mxu0 %vm5312_vm0, %v5311_v1  ;;  %v1694_v44 = vld [vmem:[%s5460_s28 + $0x1e] sm:$0xff] }
  0xc0   : > { %4796 = vmatprep.mubr.msk.bf16.mxu1 %vm5312_vm0, %v5311_v1  ;;  %4829 = vmatpush3.bf16.msra.mxu0 %v5221_v45  ;;  %v1710_v48 = vpack.c.bf16 %v1694_v44, %v1693_v43 }
  0xc1   : > { %4830 = vmatprep.subr.bf16.mxu0 %v5311_v1 }
  0xc4   : > { %4831 = vmatpush3.bf16.msra.mxu0 %v5222_v50 }
  0xc5   : > { %4832 = vmatprep.subr.bf16.mxu0 %v5311_v1 }
  0xc6   : > { %4745 = vmatmul.mubr.bf16.gmra.mrb[80].mxu0 %v1281_v51 }
  0xc7   : > { %4797 = vmatmul.mubr.bf16.gmra.mrb[80].mxu1 %v1496_v52  ;;  %4748 = vmatprep.mubr.msk.bf16.mxu0 %vm5312_vm0, %v5311_v1 }
  0xc8   : > { %4800 = vmatprep.mubr.msk.bf16.mxu1 %vm5312_vm0, %v5311_v1  ;;  %4833 = vmatpush3.bf16.msra.mxu0 %v5223_v53 }
  0xc9   : > { %4834 = vmatprep.subr.bf16.mxu0 %v5311_v1 }
  0xcc   : > { %4835 = vmatpush3.bf16.msra.mxu0 %v5224_v58 }
  0xcd   : > { %4836 = vmatprep.subr.bf16.mxu0 %v5311_v1 }
  0xce   : > { %4749 = vmatmul.mubr.bf16.gmra.mrb[84].mxu0 %v1282_v59 }
  0xcf   : > { %4801 = vmatmul.mubr.bf16.gmra.mrb[84].mxu1 %v1497_v60  ;;  %4752 = vmatprep.mubr.msk.bf16.mxu0 %vm5312_vm0, %v5311_v1 }
  0xd0   : > { %4804 = vmatprep.mubr.msk.bf16.mxu1 %vm5312_vm0, %v5311_v1  ;;  %4837 = vmatpush3.bf16.msra.mxu0 %v5225_v61  ;;  %v1711_v61 = vpack.c.bf16 %v1696_v57, %v1695_v56 }
  0xd1   : > { %4838 = vmatprep.subr.bf16.mxu0 %v5311_v1 }
  0xd4   : > { %4839 = vmatpush3.bf16.msra.mxu0 %v5226_v3 }
  0xd5   : > { %4936 = vmatprep.subr.bf16.mxu0 %v5311_v1 }
  0xd6   : > { %4753 = vmatmul.mubr.bf16.gmra.mrb[88].mxu0 %v1283_v4 }
  0xd7   : > { %4805 = vmatmul.mubr.bf16.gmra.mrb[88].mxu1 %v1498_v5  ;;  %4756 = vmatprep.mubr.msk.bf16.mxu0 %vm5312_vm0, %v5311_v1 }
  0xd8   : > { %4808 = vmatprep.mubr.msk.bf16.mxu1 %vm5312_vm0, %v5311_v1 }
  0xde   : > { %4757 = vmatmul.mubr.bf16.gmra.mrb[92].mxu0 %v1284_v10 }
  0xdf   : > { %4809 = vmatmul.mubr.bf16.gmra.mrb[92].mxu1 %v1499_v11  ;;  %4760 = vmatprep.mubr.msk.bf16.mxu0 %vm5312_vm0, %v5311_v1  ;;  %v1712_v11 = vpack.c.bf16 %v1698_v7, %v1697_v6 }
  0xe0   : > { %4812 = vmatprep.mubr.msk.bf16.mxu1 %vm5312_vm0, %v5311_v1 }
  0xe6   : > { %4761 = vmatmul.mubr.bf16.gmra.mrb[96].mxu0 %v1285_v16 }
  0xe7   : > { %4813 = vmatmul.mubr.bf16.gmra.mrb[96].mxu1 %v1500_v17  ;;  %4764 = vmatprep.mubr.msk.bf16.mxu0 %vm5312_vm0, %v5311_v1 }
  0xe8   : > { %4816 = vmatprep.mubr.msk.bf16.mxu1 %vm5312_vm0, %v5311_v1 }
  0xee   : > { %4765 = vmatmul.mubr.bf16.gmra.mrb[100].mxu0 %v1286_v22 }
  0xef   : > { %4817 = vmatmul.mubr.bf16.gmra.mrb[100].mxu1 %v1501_v23  ;;  %4768 = vmatprep.mubr.msk.bf16.mxu0 %vm5312_vm0, %v5311_v1 }
  0xf0   : > { %4820 = vmatprep.mubr.msk.bf16.mxu1 %vm5312_vm0, %v5311_v1 }
  0xf6   : > { %4769 = vmatmul.mubr.bf16.gmra.mrb[104].mxu0 %v1287_v28 }
  0xf7   : > { %4821 = vmatmul.mubr.bf16.gmra.mrb[104].mxu1 %v1502_v29  ;;  %4840 = vmatprep.mubr.msk.bf16.mxu0 %vm5312_vm0, %v5311_v1 }
  0xf8   : > { %4884 = vmatprep.mubr.msk.bf16.mxu1 %vm5312_vm0, %v5311_v1 }
  0xf9   : > { %v607_v32 = vpop.f32.mrb[0].mxu0 }
  0xfa   : > { %v760_v33 = vpop.f32.mrb[0].mxu1  ;;  %v4530_v34 = vpop.f32.mrb[1].mxu0 }
  0xfb   : > { %v5851_v36 = vadd.f32 %v760_v33, %v607_v32  ;;  %v4582_v37 = vpop.f32.mrb[1].mxu1  ;;  %v610_v38 = vpop.f32.mrb[2].mxu0  ;;  %v1701_v32 = vld [vmem:[%s5460_s28 + $0x56] sm:$0xff]  ;;  %v1702_v33 = vld [vmem:[%s5460_s28 + $0x5e] sm:$0xff] }
  0xfc   : > { %v763_v39 = vpop.f32.mrb[2].mxu1  ;;  %v4531_v40 = vpop.f32.mrb[3].mxu0 }
  0xfd   : > { %v5853_v41 = vadd.f32 %v763_v39, %v610_v38  ;;  %v4583_v42 = vpop.f32.mrb[3].mxu1  ;;  %v1714_v38 = vpack.c.bf16 %v1702_v33, %v1701_v32 }
  0xfe   : > { %4841 = vmatmul.mubr.bf16.vlgmr.msra.gmra.mrb[108].mxu0 %v1709_v35 }
  0xff   : > { %4844 = vmatprep.mubr.msk.bf16.mxu0 %vm5312_vm0, %v5311_v1 }
 0x101   : > { %v615_v45 = vpop.f32.mrb[4].mxu0 }
 0x102   : > { %v768_v46 = vpop.f32.mrb[4].mxu1  ;;  %v4534_v47 = vpop.f32.mrb[5].mxu0 }
 0x103   : > { %v5859_v49 = vadd.f32 %v768_v46, %v615_v45  ;;  %v4586_v50 = vpop.f32.mrb[5].mxu1  ;;  %v618_v51 = vpop.f32.mrb[6].mxu0  ;;  %v1703_v47 = vld [vmem:[%s5460_s28 + $0x66] sm:$0xff] }
 0x104   : > { %v771_v52 = vpop.f32.mrb[6].mxu1  ;;  %v4535_v53 = vpop.f32.mrb[7].mxu0 }
 0x105   : > { %v5861_v54 = vadd.f32 %v771_v52, %v618_v51  ;;  %v4587_v55 = vpop.f32.mrb[7].mxu1 }
 0x106   : > { %4845 = vmatmul.mubr.bf16.gmra.mrb[112].mxu0 %v1710_v48  ;;  %v1704_v48 = vld [vmem:[%s5460_s28 + $0x6e] sm:$0xff] }
 0x107   : > { %4848 = vmatprep.mubr.msk.bf16.mxu0 %vm5312_vm0, %v5311_v1  ;;  %v1715_v53 = vpack.c.bf16 %v1704_v48, %v1703_v47 }
 0x109   : > { %v623_v58 = vpop.f32.mrb[8].mxu0 }
 0x10a   : > { %v776_v59 = vpop.f32.mrb[8].mxu1  ;;  %v4538_v60 = vpop.f32.mrb[9].mxu0 }
 0x10b   : > { %v5867_v62 = vadd.f32 %v776_v59, %v623_v58  ;;  %v4590_v63 = vpop.f32.mrb[9].mxu1  ;;  %v626_v0 = vpop.f32.mrb[10].mxu0 }
 0x10c   : > { %v779_v2 = vpop.f32.mrb[10].mxu1  ;;  %v4539_v3 = vpop.f32.mrb[11].mxu0  ;;  %v1705_v63 = vld [vmem:[%s5460_s28 + $0x76] sm:$0xff] }
 0x10d   : > { %v5869_v4 = vadd.f32 %v779_v2, %v626_v0  ;;  %v4591_v5 = vpop.f32.mrb[11].mxu1  ;;  %v1706_v0 = vld [vmem:[%s5460_s28 + $0x7e] sm:$0xff] }
 0x10e   : > { %4849 = vmatmul.mubr.bf16.gmra.mrb[116].mxu0 %v1711_v61  ;;  %v1716_v6 = vpack.c.bf16 %v1706_v0, %v1705_v63 }
 0x10f   : > { %4852 = vmatprep.mubr.msk.bf16.mxu0 %vm5312_vm0, %v5311_v1 }
 0x111   : > { %v631_v8 = vpop.f32.mrb[12].mxu0 }
 0x112   : > { %v784_v9 = vpop.f32.mrb[12].mxu1  ;;  %v4542_v10 = vpop.f32.mrb[13].mxu0 }
 0x113   : > { %v5875_v12 = vadd.f32 %v784_v9, %v631_v8  ;;  %v4594_v13 = vpop.f32.mrb[13].mxu1  ;;  %v634_v14 = vpop.f32.mrb[14].mxu0 }
 0x114   : > { %v787_v15 = vpop.f32.mrb[14].mxu1  ;;  %v4543_v16 = vpop.f32.mrb[15].mxu0 }
 0x115   : > { %v5877_v17 = vadd.f32 %v787_v15, %v634_v14  ;;  %v4595_v18 = vpop.f32.mrb[15].mxu1  ;;  %v1707_v15 = vld [vmem:[%s5460_s28 + $0x86] sm:$0xff]  ;;  %v1708_v16 = vld [vmem:[%s5460_s28 + $0x8e] sm:$0xff] }
 0x116   : > { %4853 = vmatmul.mubr.bf16.gmra.mrb[120].mxu0 %v1712_v11 }
 0x117   : > { %4856 = vmatprep.mubr.msk.bf16.mxu0 %vm5312_vm0, %v5311_v1 }
 0x119   : > { %v639_v21 = vpop.f32.mrb[16].mxu0 }
 0x11a   : > { %v792_v22 = vpop.f32.mrb[16].mxu1  ;;  %v4546_v23 = vpop.f32.mrb[17].mxu0 }
 0x11b   : > { %v5883_v25 = vadd.f32 %v792_v22, %v639_v21  ;;  %v4598_v26 = vpop.f32.mrb[17].mxu1  ;;  %v642_v27 = vpop.f32.mrb[18].mxu0  ;;  %v1717_v21 = vpack.c.bf16 %v1708_v16, %v1707_v15 }
 0x11c   : > { %v795_v28 = vpop.f32.mrb[18].mxu1  ;;  %v4547_v29 = vpop.f32.mrb[19].mxu0 }
 0x11d   : > { %v5885_v30 = vadd.f32 %v795_v28, %v642_v27  ;;  %v4599_v31 = vpop.f32.mrb[19].mxu1 }
 0x11e   : > { %4857 = vmatmul.mubr.bf16.gmra.mrb[124].mxu0 %v1713_v24 }
 0x11f   : > { %4860 = vmatprep.mubr.msk.bf16.mxu0 %vm5312_vm0, %v5311_v1 }
 0x121   : > { %v647_v34 = vpop.f32.mrb[20].mxu0 }
 0x122   : > { %v800_v35 = vpop.f32.mrb[20].mxu1  ;;  %v4550_v37 = vpop.f32.mrb[21].mxu0 }
 0x123   : > { %v5891_v39 = vadd.f32 %v800_v35, %v647_v34  ;;  %v4602_v40 = vpop.f32.mrb[21].mxu1  ;;  %v650_v42 = vpop.f32.mrb[22].mxu0 }
 0x124   : > { %v803_v43 = vpop.f32.mrb[22].mxu1  ;;  %v4551_v44 = vpop.f32.mrb[23].mxu0 }
 0x125   : > { %v5893_v45 = vadd.f32 %v803_v43, %v650_v42  ;;  %v4603_v46 = vpop.f32.mrb[23].mxu1 }
 0x126   : > { %4861 = vmatmul.mubr.bf16.gmra.mrb[128].mxu0 %v1714_v38 }
 0x127   : > { %4864 = vmatprep.mubr.msk.bf16.mxu0 %vm5312_vm0, %v5311_v1 }
 0x129   : > { %v655_v50 = vpop.f32.mrb[24].mxu0 }
 0x12a   : > { %v808_v51 = vpop.f32.mrb[24].mxu1  ;;  %v4554_v52 = vpop.f32.mrb[25].mxu0 }
 0x12b   : > { %v5899_v55 = vadd.f32 %v808_v51, %v655_v50  ;;  %v4606_v56 = vpop.f32.mrb[25].mxu1  ;;  %v658_v57 = vpop.f32.mrb[26].mxu0 }
 0x12c   : > { %v811_v58 = vpop.f32.mrb[26].mxu1  ;;  %v4555_v59 = vpop.f32.mrb[27].mxu0 }
 0x12d   : > { %v5901_v60 = vadd.f32 %v811_v58, %v658_v57  ;;  %v4607_v61 = vpop.f32.mrb[27].mxu1 }
 0x12e   : > { %4865 = vmatmul.mubr.bf16.gmra.mrb[132].mxu0 %v1715_v53 }
 0x12f   : > { %4868 = vmatprep.mubr.msk.bf16.mxu0 %vm5312_vm0, %v5311_v1 }
 0x131   : > { %v663_v2 = vpop.f32.mrb[28].mxu0 }
 0x132   : > { %v816_v3 = vpop.f32.mrb[28].mxu1  ;;  %v4558_v5 = vpop.f32.mrb[29].mxu0 }
 0x133   : > { %v5907_v7 = vadd.f32 %v816_v3, %v663_v2  ;;  %v4610_v8 = vpop.f32.mrb[29].mxu1  ;;  %v666_v9 = vpop.f32.mrb[30].mxu0 }
 0x134   : > { %v819_v10 = vpop.f32.mrb[30].mxu1  ;;  %v4559_v11 = vpop.f32.mrb[31].mxu0 }
 0x135   : > { %v5909_v13 = vadd.f32 %v819_v10, %v666_v9  ;;  %v4611_v14 = vpop.f32.mrb[31].mxu1 }
 0x136   : > { %4869 = vmatmul.mubr.bf16.gmra.mrb[136].mxu0 %v1716_v6 }
 0x137   : > { %4872 = vmatprep.mubr.msk.bf16.mxu0 %vm5312_vm0, %v5311_v1 }
 0x139   : > { %v671_v18 = vpop.f32.mrb[32].mxu0 }
 0x13a   : > { %v824_v19 = vpop.f32.mrb[32].mxu1  ;;  %v4562_v20 = vpop.f32.mrb[33].mxu0 }
 0x13b   : > { %v5915_v22 = vadd.f32 %v824_v19, %v671_v18  ;;  %v4614_v23 = vpop.f32.mrb[33].mxu1  ;;  %v674_v24 = vpop.f32.mrb[34].mxu0 }
 0x13c   : > { %v827_v26 = vpop.f32.mrb[34].mxu1  ;;  %v4563_v27 = vpop.f32.mrb[35].mxu0 }
 0x13d   : > { %v5917_v28 = vadd.f32 %v827_v26, %v674_v24  ;;  %v4615_v29 = vpop.f32.mrb[35].mxu1 }
 0x13e   : > { %4873 = vmatmul.mubr.bf16.gmra.mrb[140].mxu0 %v1717_v21 }
 0x13f   : > { %4944 = vmatprep.mubr.msk.bf16.mxu0 %vm5312_vm0, %v5311_v1 }
 0x141   : > { %v957_v31 = vpop.f32.mrb[36].mxu0 }
 0x142   : > { %v1028_v32 = vadd.f32 %v957_v31, %v5851_v36  ;;  %v4634_v33 = vpop.f32.mrb[37].mxu0  ;;  %v1172_v34 = vpop.f32.mrb[36].mxu1 }
 0x143   : > { %v960_v35 = vpop.f32.mrb[38].mxu0  ;;  %v4686_v37 = vpop.f32.mrb[37].mxu1 }
 0x144   : > { %v1029_v38 = vadd.f32 %v960_v35, %v5853_v41  ;;  %v5923_v40 = vadd.f32 %v1172_v34, %v1028_v32  ;;  %v4635_v42 = vpop.f32.mrb[39].mxu0  ;;  %v1175_v43 = vpop.f32.mrb[38].mxu1 }
 0x145   : > { %v4687_v44 = vpop.f32.mrb[39].mxu1 }
 0x146   : > { %v5925_v46 = vadd.f32 %v1175_v43, %v1029_v38 }
 0x149   : > { %v965_v47 = vpop.f32.mrb[40].mxu0 }
 0x14a   : > { %v1030_v48 = vadd.f32 %v965_v47, %v5859_v49  ;;  %v4638_v50 = vpop.f32.mrb[41].mxu0  ;;  %v1180_v51 = vpop.f32.mrb[40].mxu1 }
 0x14b   : > { %v968_v52 = vpop.f32.mrb[42].mxu0  ;;  %v4690_v36 = vpop.f32.mrb[41].mxu1 }
 0x14c   : > { %v1031_v53 = vadd.f32 %v968_v52, %v5861_v54  ;;  %v5929_v56 = vadd.f32 %v1180_v51, %v1030_v48  ;;  %v4639_v57 = vpop.f32.mrb[43].mxu0  ;;  %v1183_v41 = vpop.f32.mrb[42].mxu1  ;;  %v5227_v36 = vld [vmem:[%s6541_s3 + $0x20] sm:$0xff]  }
 0x14d   : > { %v4691_v58 = vpop.f32.mrb[43].mxu1  ;;  %4877 = vmatpush3.bf16.msra.mxu1 %v5227_v36 }
 0x14e   : > { %v5931_v59 = vadd.f32 %v1183_v41, %v1031_v53  ;;  %4878 = vmatprep.subr.bf16.mxu1 %v5311_v1 }
 0x151   : > { %v973_v61 = vpop.f32.mrb[44].mxu0 }
 0x152   : > { %v1032_v63 = vadd.f32 %v973_v61, %v5867_v62  ;;  %v4642_v0 = vpop.f32.mrb[45].mxu0  ;;  %v1188_v2 = vpop.f32.mrb[44].mxu1 }
 0x153   : > { %v976_v3 = vpop.f32.mrb[46].mxu0  ;;  %v4694_v49 = vpop.f32.mrb[45].mxu1 }
 0x154   : > { %v1033_v5 = vadd.f32 %v976_v3, %v5869_v4  ;;  %v5935_v6 = vadd.f32 %v1188_v2, %v1032_v63  ;;  %v4643_v8 = vpop.f32.mrb[47].mxu0  ;;  %v1191_v54 = vpop.f32.mrb[46].mxu1 }
 0x155   : > { %v4695_v9 = vpop.f32.mrb[47].mxu1 }
 0x156   : > { %v5937_v10 = vadd.f32 %v1191_v54, %v1033_v5  ;;  %v5228_v54 = vld [vmem:[%s6541_s3 + $0x28] sm:$0xff]  }
 0x157   : > { %4879 = vmatpush3.bf16.msra.mxu1 %v5228_v54 }
 0x158   : > { %4880 = vmatprep.subr.bf16.mxu1 %v5311_v1 }
 0x159   : > { %v981_v11 = vpop.f32.mrb[48].mxu0 }
 0x15a   : > { %v1034_v14 = vadd.f32 %v981_v11, %v5875_v12  ;;  %v4646_v15 = vpop.f32.mrb[49].mxu0  ;;  %v1196_v16 = vpop.f32.mrb[48].mxu1 }
 0x15b   : > { %v984_v18 = vpop.f32.mrb[50].mxu0  ;;  %v4698_v62 = vpop.f32.mrb[49].mxu1 }
 0x15c   : > { %v1035_v19 = vadd.f32 %v984_v18, %v5877_v17  ;;  %v5941_v20 = vadd.f32 %v1196_v16, %v1034_v14  ;;  %v4647_v21 = vpop.f32.mrb[51].mxu0  ;;  %v1199_v4 = vpop.f32.mrb[50].mxu1 }
 0x15d   : > { %v4699_v23 = vpop.f32.mrb[51].mxu1 }
 0x15e   : > { %v5943_v24 = vadd.f32 %v1199_v4, %v1035_v19  ;;  %v5230_v23 = vld [vmem:[%s6541_s3 + $0x60] sm:$0xff]  }
 0x15f   : > { %4937 = vmatpush3.bf16.msra.mxu0 %v5230_v23 }
 0x160   : > { %4938 = vmatprep.subr.bf16.mxu0 %v5311_v1 }
 0x161   : > { %v989_v26 = vpop.f32.mrb[52].mxu0 }
 0x162   : > { %v1036_v27 = vadd.f32 %v989_v26, %v5883_v25  ;;  %v4650_v29 = vpop.f32.mrb[53].mxu0  ;;  %v1204_v31 = vpop.f32.mrb[52].mxu1 }
 0x163   : > { %v992_v32 = vpop.f32.mrb[54].mxu0  ;;  %v4702_v12 = vpop.f32.mrb[53].mxu1 }
 0x164   : > { %v1037_v33 = vadd.f32 %v992_v32, %v5885_v30  ;;  %v5947_v34 = vadd.f32 %v1204_v31, %v1036_v27  ;;  %v4651_v35 = vpop.f32.mrb[55].mxu0  ;;  %v1207_v17 = vpop.f32.mrb[54].mxu1 }
 0x165   : > { %v4703_v37 = vpop.f32.mrb[55].mxu1 }
 0x166   : > { %v5949_v38 = vadd.f32 %v1207_v17, %v1037_v33 }
 0x169   : > { %v997_v42 = vpop.f32.mrb[56].mxu0 }
 0x16a   : > { %v1038_v43 = vadd.f32 %v997_v42, %v5891_v39  ;;  %v4654_v44 = vpop.f32.mrb[57].mxu0  ;;  %v1212_v47 = vpop.f32.mrb[56].mxu1 }
 0x16b   : > { %v1000_v48 = vpop.f32.mrb[58].mxu0  ;;  %v4706_v25 = vpop.f32.mrb[57].mxu1 }
 0x16c   : > { %v1039_v50 = vadd.f32 %v1000_v48, %v5893_v45  ;;  %v5953_v51 = vadd.f32 %v1212_v47, %v1038_v43  ;;  %v4655_v52 = vpop.f32.mrb[59].mxu0  ;;  %v1215_v30 = vpop.f32.mrb[58].mxu1  ;;  %v5232_v43 = vld [vmem:[%s6541_s3 + $0x70] sm:$0xff]   ;;  %v5233_v25 = vld [vmem:[%s6541_s3 + $0x38] sm:$0xff]  }
 0x16d   : > { %v4707_v53 = vpop.f32.mrb[59].mxu1 }
 0x16e   : > { %v5958_v57 = vadd.f32 %v1215_v30, %v1039_v50  ;;  %v5234_v50 = vld [vmem:[%s6541_s3 + $0x78] sm:$0xff]  }
 0x171   : > { %v1005_v39 = vpop.f32.mrb[60].mxu0 }
 0x172   : > { %v1040_v41 = vadd.f32 %v1005_v39, %v5899_v55  ;;  %v4658_v58 = vpop.f32.mrb[61].mxu0  ;;  %v1220_v61 = vpop.f32.mrb[60].mxu1 }
 0x173   : > { %v1008_v45 = vpop.f32.mrb[62].mxu0  ;;  %v4710_v63 = vpop.f32.mrb[61].mxu1 }
 0x174   : > { %v1041_v0 = vadd.f32 %v1008_v45, %v5901_v60  ;;  %v5963_v2 = vadd.f32 %v1220_v61, %v1040_v41  ;;  %v4659_v3 = vpop.f32.mrb[63].mxu0  ;;  %v1223_v49 = vpop.f32.mrb[62].mxu1 }
 0x175   : > { %v4711_v5 = vpop.f32.mrb[63].mxu1 }
 0x176   : > { %v5965_v8 = vadd.f32 %v1223_v49, %v1041_v0 }
 0x179   : > { %v1013_v9 = vpop.f32.mrb[64].mxu0 }
 0x17a   : > { %v1042_v55 = vadd.f32 %v1013_v9, %v5907_v7  ;;  %v4662_v11 = vpop.f32.mrb[65].mxu0  ;;  %v1228_v14 = vpop.f32.mrb[64].mxu1 }
 0x17b   : > { %v1016_v60 = vpop.f32.mrb[66].mxu0  ;;  %v4714_v15 = vpop.f32.mrb[65].mxu1 }
 0x17c   : > { %v1043_v16 = vadd.f32 %v1016_v60, %v5909_v13  ;;  %v5973_v18 = vadd.f32 %v1228_v14, %v1042_v55  ;;  %v4663_v62 = vpop.f32.mrb[67].mxu0  ;;  %v1231_v19 = vpop.f32.mrb[66].mxu1  ;;  %v5231_v13 = vld [vmem:[%s6541_s3 + $0x68] sm:$0xff]  }
 0x17d   : > { %v4715_v21 = vpop.f32.mrb[67].mxu1  ;;  %4939 = vmatpush3.bf16.msra.mxu0 %v5231_v13 }
 0x17e   : > { %v5975_v4 = vadd.f32 %v1231_v19, %v1043_v16  ;;  %4940 = vmatprep.subr.bf16.mxu0 %v5311_v1 }
 0x181   : > { %v1021_v26 = vpop.f32.mrb[68].mxu0  ;;  %4941 = vmatpush3.bf16.msra.mxu0 %v5232_v43 }
 0x182   : > { %v1044_v7 = vadd.f32 %v1021_v26, %v5915_v22  ;;  %v4666_v27 = vpop.f32.mrb[69].mxu0  ;;  %v1236_v29 = vpop.f32.mrb[68].mxu1  ;;  %v5229_v22 = vld [vmem:[%s6541_s3 + $0x30] sm:$0xff]   ;;  %4942 = vmatprep.subr.bf16.mxu0 %v5311_v1 }
 0x183   : > { %v1024_v31 = vpop.f32.mrb[70].mxu0  ;;  %v4718_v32 = vpop.f32.mrb[69].mxu1  ;;  %4881 = vmatpush3.bf16.msra.mxu1 %v5229_v22 }
 0x184   : > { %v1045_v12 = vadd.f32 %v1024_v31, %v5917_v28  ;;  %v5986_v33 = vadd.f32 %v1236_v29, %v1044_v7  ;;  %v4667_v35 = vpop.f32.mrb[71].mxu0  ;;  %v1239_v17 = vpop.f32.mrb[70].mxu1  ;;  %4882 = vmatprep.subr.bf16.mxu1 %v5311_v1 }
 0x185   : > { %v4719_v37 = vpop.f32.mrb[71].mxu1  ;;  %4943 = vmatpush3.bf16.msra.mxu0 %v5234_v50 }
 0x186   : > { %v5989_v42 = vadd.f32 %v1239_v17, %v1045_v12  ;;  %4976 = vmatprep.subr.bf16.mxu0 %v5311_v1 }
 0x187   : > { %4883 = vmatpush3.bf16.msra.mxu1 %v5233_v25 }
 0x188   : > { %4896 = vmatprep.subr.bf16.mxu1 %v5311_v1 }
 0x189   : > { %v1387_v28 = vpop.f32.mrb[72].mxu0 }
 0x18a   : > { %v1458_v44 = vadd.f32 %v1387_v28, %v5923_v40  ;;  %v4738_v47 = vpop.f32.mrb[73].mxu0  ;;  %v1602_v48 = vpop.f32.mrb[72].mxu1 }
 0x18b   : > { %v1390_v52 = vpop.f32.mrb[74].mxu0  ;;  %v4790_v30 = vpop.f32.mrb[73].mxu1 }
 0x18c   : > { %v1459_v36 = vadd.f32 %v1390_v52, %v5925_v46  ;;  %v6007_v53 = vadd.f32 %v1602_v48, %v1458_v44  ;;  %v4739_v39 = vpop.f32.mrb[75].mxu0  ;;  %v1605_v41 = vpop.f32.mrb[74].mxu1 }
 0x18d   : > { %v4791_v40 = vpop.f32.mrb[75].mxu1 }
 0x18e   : > { %v6011_v58 = vadd.f32 %v1605_v41, %v1459_v36 }
 0x191   : > { %v1395_v61 = vpop.f32.mrb[76].mxu0 }
 0x192   : > { %v1460_v45 = vadd.f32 %v1395_v61, %v5929_v56  ;;  %v4742_v63 = vpop.f32.mrb[77].mxu0  ;;  %v1610_v0 = vpop.f32.mrb[76].mxu1 }
 0x193   : > { %v1398_v3 = vpop.f32.mrb[78].mxu0  ;;  %v4794_v46 = vpop.f32.mrb[77].mxu1 }
 0x194   : > { %v1461_v49 = vadd.f32 %v1398_v3, %v5931_v59  ;;  %v6015_v5 = vadd.f32 %v1610_v0, %v1460_v45  ;;  %v4743_v54 = vpop.f32.mrb[79].mxu0  ;;  %v1613_v9 = vpop.f32.mrb[78].mxu1 }
 0x195   : > { %v4795_v55 = vpop.f32.mrb[79].mxu1 }
 0x196   : > { %v6017_v11 = vadd.f32 %v1613_v9, %v1461_v49 }
 0x199   : > { %v1403_v14 = vpop.f32.mrb[80].mxu0 }
 0x19a   : > { %v1462_v60 = vadd.f32 %v1403_v14, %v5935_v6  ;;  %v4746_v15 = vpop.f32.mrb[81].mxu0  ;;  %v1618_v16 = vpop.f32.mrb[80].mxu1 }
 0x19b   : > { %v1406_v62 = vpop.f32.mrb[82].mxu0  ;;  %v4798_v56 = vpop.f32.mrb[81].mxu1 }
 0x19c   : > { %v1463_v19 = vadd.f32 %v1406_v62, %v5937_v10  ;;  %v6021_v21 = vadd.f32 %v1618_v16, %v1462_v60  ;;  %v4747_v23 = vpop.f32.mrb[83].mxu0  ;;  %v1621_v59 = vpop.f32.mrb[82].mxu1 }
 0x19d   : > { %v4799_v26 = vpop.f32.mrb[83].mxu1 }
 0x19e   : > { %v6023_v7 = vadd.f32 %v1621_v59, %v1463_v19 }
 0x1a1   : > { %v1411_v27 = vpop.f32.mrb[84].mxu0 }
 0x1a2   : > { %v1464_v29 = vadd.f32 %v1411_v27, %v5941_v20  ;;  %v4750_v13 = vpop.f32.mrb[85].mxu0  ;;  %v1626_v31 = vpop.f32.mrb[84].mxu1 }
 0x1a3   : > { %v1414_v32 = vpop.f32.mrb[86].mxu0  ;;  %v4802_v6 = vpop.f32.mrb[85].mxu1 }
 0x1a4   : > { %v1465_v12 = vadd.f32 %v1414_v32, %v5943_v24  ;;  %v6027_v35 = vadd.f32 %v1626_v31, %v1464_v29  ;;  %v4751_v17 = vpop.f32.mrb[87].mxu0  ;;  %v1629_v10 = vpop.f32.mrb[86].mxu1 }
 0x1a5   : > { %v4803_v37 = vpop.f32.mrb[87].mxu1 }
 0x1a6   : > { %v6029_v22 = vadd.f32 %v1629_v10, %v1465_v12 }
 0x1a9   : > { %v1419_v43 = vpop.f32.mrb[88].mxu0 }
 0x1aa   : > { %v1466_v28 = vadd.f32 %v1419_v43, %v5947_v34  ;;  %v4754_v44 = vpop.f32.mrb[89].mxu0  ;;  %v1634_v47 = vpop.f32.mrb[88].mxu1 }
 0x1ab   : > { %v1422_v48 = vpop.f32.mrb[90].mxu0  ;;  %v4806_v20 = vpop.f32.mrb[89].mxu1 }
 0x1ac   : > { %v1467_v25 = vadd.f32 %v1422_v48, %v5949_v38  ;;  %v6033_v50 = vadd.f32 %v1634_v47, %v1466_v28  ;;  %v4755_v52 = vpop.f32.mrb[91].mxu0  ;;  %v1637_v24 = vpop.f32.mrb[90].mxu1 }
 0x1ad   : > { %v4807_v30 = vpop.f32.mrb[91].mxu1 }
 0x1ae   : > { %v6035_v36 = vadd.f32 %v1637_v24, %v1467_v25  ;;  %v6064_v24 = vld [vmem:[%s6540_s2] ss:$0 sm:$0xff] }
 0x1b1   : > { %v1427_v39 = vpop.f32.mrb[92].mxu0 }
 0x1b2   : > { %v1468_v41 = vadd.f32 %v1427_v39, %v5953_v51  ;;  %v4758_v40 = vpop.f32.mrb[93].mxu0  ;;  %v1642_v61 = vpop.f32.mrb[92].mxu1 }
 0x1b3   : > { %v1430_v45 = vpop.f32.mrb[94].mxu0  ;;  %v4810_v34 = vpop.f32.mrb[93].mxu1 }
 0x1b4   : > { %v1469_v63 = vadd.f32 %v1430_v45, %v5958_v57  ;;  %v6039_v0 = vadd.f32 %v1642_v61, %v1468_v41  ;;  %v4759_v3 = vpop.f32.mrb[95].mxu0  ;;  %v1645_v38 = vpop.f32.mrb[94].mxu1 }
 0x1b5   : > { %v4811_v46 = vpop.f32.mrb[95].mxu1 }
 0x1b6   : > { %v6041_v49 = vadd.f32 %v1645_v38, %v1469_v63 }
 0x1b9   : > { %v1435_v54 = vpop.f32.mrb[96].mxu0 }
 0x1ba   : > { %v1470_v9 = vadd.f32 %v1435_v54, %v5963_v2  ;;  %v4762_v55 = vpop.f32.mrb[97].mxu0  ;;  %v1650_v14 = vpop.f32.mrb[96].mxu1 }
 0x1bb   : > { %v1438_v60 = vpop.f32.mrb[98].mxu0  ;;  %v4814_v51 = vpop.f32.mrb[97].mxu1 }
 0x1bc   : > { %v1471_v15 = vadd.f32 %v1438_v60, %v5965_v8  ;;  %v6045_v16 = vadd.f32 %v1650_v14, %v1470_v9  ;;  %v4763_v62 = vpop.f32.mrb[99].mxu0  ;;  %v1653_v57 = vpop.f32.mrb[98].mxu1 }
 0x1bd   : > { %v4815_v56 = vpop.f32.mrb[99].mxu1 }
 0x1be   : > { %v6047_v19 = vadd.f32 %v1653_v57, %v1471_v15 }
 0x1c1   : > { %v1443_v23 = vpop.f32.mrb[100].mxu0 }
 0x1c2   : > { %v1472_v59 = vadd.f32 %v1443_v23, %v5973_v18  ;;  %v4766_v26 = vpop.f32.mrb[101].mxu0  ;;  %v1658_v27 = vpop.f32.mrb[100].mxu1 }
 0x1c3   : > { %v1446_v29 = vpop.f32.mrb[102].mxu0  ;;  %v4818_v2 = vpop.f32.mrb[101].mxu1 }
 0x1c4   : > { %v1473_v13 = vadd.f32 %v1446_v29, %v5975_v4  ;;  %v6051_v31 = vadd.f32 %v1658_v27, %v1472_v59  ;;  %v4767_v32 = vpop.f32.mrb[103].mxu0  ;;  %v1661_v8 = vpop.f32.mrb[102].mxu1 }
 0x1c5   : > { %v4819_v6 = vpop.f32.mrb[103].mxu1 }
 0x1c6   : > { %v6053_v12 = vadd.f32 %v1661_v8, %v1473_v13 }
 0x1c9   : > { %v1451_v17 = vpop.f32.mrb[104].mxu0 }
 0x1ca   : > { %v1474_v10 = vadd.f32 %v1451_v17, %v5986_v33  ;;  %v4770_v37 = vpop.f32.mrb[105].mxu0  ;;  %v1666_v43 = vpop.f32.mrb[104].mxu1 }
 0x1cb   : > { %v1454_v28 = vpop.f32.mrb[106].mxu0  ;;  %v4822_v18 = vpop.f32.mrb[105].mxu1 }
 0x1cc   : > { %v1475_v44 = vadd.f32 %v1454_v28, %v5989_v42  ;;  %v6057_v47 = vadd.f32 %v1666_v43, %v1474_v10  ;;  %v4771_v48 = vpop.f32.mrb[107].mxu0  ;;  %v1669_v4 = vpop.f32.mrb[106].mxu1 }
 0x1cd   : > { %v4823_v20 = vpop.f32.mrb[107].mxu1 }
 0x1ce   : > { %v6059_v25 = vadd.f32 %v1669_v4, %v1475_v44 }
 0x1d1   : > { %v1817_v52 = vpop.f32.mrb[108].mxu0 }
 0x1d2   : > { %v1888_v33 = vadd.f32 %v1817_v52, %v6007_v53  ;;  %v4842_v30 = vpop.f32.mrb[109].mxu0 }
 0x1d3   : > { %v1820_v39 = vpop.f32.mrb[110].mxu0 }
 0x1d4   : > { %v1913_v41 = vadd.f32 %v6064_v24, %v1888_v33  ;;  %v1889_v42 = vadd.f32 %v1820_v39, %v6011_v58  ;;  %v4843_v40 = vpop.f32.mrb[111].mxu0 }
 0x1d6   : > { %v1931_v61 = vmax.f32 %v1913_v41, 0.0  ;;  %v1914_v45 = vadd.f32 %v6064_v24, %v1889_v42 }
 0x1d8   : > { %1950 = vst.msk [vmem:[#allocation4] sm:$0xff] %vm1949_vm1, %v1931_v61  ;;  %v1932_v34 = vmax.f32 %v1914_v45, 0.0 }
 0x1d9   : > { %v1825_v63 = vpop.f32.mrb[112].mxu0 }
 0x1da   : > { %1951 = vst.msk [vmem:[#allocation4 + $0x8] sm:$0xff] %vm1949_vm1, %v1932_v34  ;;  %v1890_v3 = vadd.f32 %v1825_v63, %v6015_v5  ;;  %v4846_v53 = vpop.f32.mrb[113].mxu0 }
 0x1db   : > { %v1828_v38 = vpop.f32.mrb[114].mxu0 }
 0x1dc   : > { %v1915_v46 = vadd.f32 %v6064_v24, %v1890_v3  ;;  %v1891_v54 = vadd.f32 %v1828_v38, %v6017_v11  ;;  %v4847_v58 = vpop.f32.mrb[115].mxu0 }
 0x1de   : > { %v1933_v9 = vmax.f32 %v1915_v46, 0.0  ;;  %v1916_v55 = vadd.f32 %v6064_v24, %v1891_v54 }
 0x1e0   : > { %1952 = vst.msk [vmem:[#allocation4 + $0x10] sm:$0xff] %vm1949_vm1, %v1933_v9  ;;  %v1934_v14 = vmax.f32 %v1916_v55, 0.0 }
 0x1e1   : > { %v1833_v60 = vpop.f32.mrb[116].mxu0 }
 0x1e2   : > { %1953 = vst.msk [vmem:[#allocation4 + $0x18] sm:$0xff] %vm1949_vm1, %v1934_v14  ;;  %v1892_v51 = vadd.f32 %v1833_v60, %v6021_v21  ;;  %v4850_v15 = vpop.f32.mrb[117].mxu0 }
 0x1e3   : > { %v1836_v5 = vpop.f32.mrb[118].mxu0 }
 0x1e4   : > { %v1917_v62 = vadd.f32 %v6064_v24, %v1892_v51  ;;  %v1893_v57 = vadd.f32 %v1836_v5, %v6023_v7  ;;  %v4851_v56 = vpop.f32.mrb[119].mxu0 }
 0x1e6   : > { %v1935_v11 = vmax.f32 %v1917_v62, 0.0  ;;  %v1918_v23 = vadd.f32 %v6064_v24, %v1893_v57 }
 0x1e7   : > { %v1968_v59 = vld [vmem:[#allocation4] ss:$3 sm:$0xff]  ;;  %v1980_v26 = vld [vmem:[#allocation4 + $0x1] ss:$3 sm:$0xff]  ;;  %v1998_v2 = vld [vmem:[#allocation4 + $0x2] ss:$3 sm:$0xff] }
 0x1e8   : > { %v1991_v27 = vmax.f32 %v1968_v59, %v1980_v26  ;;  %1954 = vst.msk [vmem:[#allocation4 + $0x20] sm:$0xff] %vm1949_vm1, %v1935_v11  ;;  %v1936_v29 = vmax.f32 %v1918_v23, 0.0 }
 0x1e9   : > { %v1841_v13 = vpop.f32.mrb[120].mxu0 }
 0x1ea   : > { %v2009_v32 = vmax.f32 %v1991_v27, %v1998_v2  ;;  %1955 = vst.msk [vmem:[#allocation4 + $0x28] sm:$0xff] %vm1949_vm1, %v1936_v29  ;;  %v1894_v21 = vadd.f32 %v1841_v13, %v6027_v35  ;;  %v4854_v8 = vpop.f32.mrb[121].mxu0 }
 0x1eb   : > { %v1844_v6 = vpop.f32.mrb[122].mxu0 }
 0x1ec   : > { %2015 = vst.msk [vmem:[#allocation2] sm:$0xff] %vm1949_vm1, %v2009_v32  ;;  %v1919_v7 = vadd.f32 %v6064_v24, %v1894_v21  ;;  %v1895_v17 = vadd.f32 %v1844_v6, %v6029_v22  ;;  %v4855_v10 = vpop.f32.mrb[123].mxu0  ;;  %v5235_v32 = vld [vmem:[%s6541_s3] sm:$0xff]  }
 0x1ee   : > { %v1937_v37 = vmax.f32 %v1919_v7, 0.0  ;;  %v1920_v43 = vadd.f32 %v6064_v24, %v1895_v17 }
 0x1f0   : > { %1956 = vst.msk [vmem:[#allocation4 + $0x30] sm:$0xff] %vm1949_vm1, %v1937_v37  ;;  %v1938_v28 = vmax.f32 %v1920_v43, 0.0 }
 0x1f1   : > { %v1970_v18 = vld [vmem:[#allocation4 + $0x18] ss:$3 sm:$0xff]  ;;  %v1982_v44 = vld [vmem:[#allocation4 + $0x19] ss:$3 sm:$0xff]  ;;  %v1849_v35 = vpop.f32.mrb[124].mxu0 }
 0x1f2   : > { %v1992_v48 = vmax.f32 %v1970_v18, %v1982_v44  ;;  %1957 = vst.msk [vmem:[#allocation4 + $0x38] sm:$0xff] %vm1949_vm1, %v1938_v28  ;;  %v2000_v4 = vld [vmem:[#allocation4 + $0x1a] ss:$3 sm:$0xff]  ;;  %v1896_v20 = vadd.f32 %v1849_v35, %v6033_v50  ;;  %v4858_v52 = vpop.f32.mrb[125].mxu0 }
 0x1f3   : > { %v1852_v30 = vpop.f32.mrb[126].mxu0  ;;  %v5237_v44 = vld [vmem:[%s6541_s3 + $0xa0] sm:$0xff]  }
 0x1f4   : > { %v2010_v33 = vmax.f32 %v1992_v48, %v2000_v4  ;;  %v1921_v22 = vadd.f32 %v6064_v24, %v1896_v20  ;;  %v1897_v39 = vadd.f32 %v1852_v30, %v6035_v36  ;;  %v4859_v41 = vpop.f32.mrb[127].mxu0 }
 0x1f6   : > { %2016 = vst.msk [vmem:[#allocation2 + $0x8] sm:$0xff] %vm1949_vm1, %v2010_v33  ;;  %v1939_v42 = vmax.f32 %v1921_v22, 0.0  ;;  %v1922_v40 = vadd.f32 %v6064_v24, %v1897_v39  ;;  %v5239_v33 = vld [vmem:[%s6541_s3 + $0xa8] sm:$0xff]  }
 0x1f8   : > { %1958 = vst.msk [vmem:[#allocation4 + $0x40] sm:$0xff] %vm1949_vm1, %v1939_v42  ;;  %v1940_v61 = vmax.f32 %v1922_v40, 0.0 }
 0x1f9   : > { %v1857_v45 = vpop.f32.mrb[128].mxu0 }
 0x1fa   : > { %v1898_v34 = vadd.f32 %v1857_v45, %v6039_v0  ;;  %v4862_v50 = vpop.f32.mrb[129].mxu0  ;;  %1959 = vst.msk [vmem:[#allocation4 + $0x48] sm:$0xff] %vm1949_vm1, %v1940_v61  ;;  %v5240_v61 = vld [vmem:[%s6541_s3 + $0xb0] sm:$0xff]  }
 0x1fb   : > { %v1860_v63 = vpop.f32.mrb[130].mxu0 }
 0x1fc   : > { %v1923_v3 = vadd.f32 %v6064_v24, %v1898_v34  ;;  %v1899_v36 = vadd.f32 %v1860_v63, %v6041_v49  ;;  %v4863_v53 = vpop.f32.mrb[131].mxu0  ;;  %v5241_v63 = vld [vmem:[%s6541_s3 + $0x18] sm:$0xff]  }
 0x1fd   : > { %v2038_v13 = vld [vmem:[#allocation2 + $0x1] sm:$0xff] }
 0x1fe   : > { %v1941_v38 = vmax.f32 %v1923_v3, 0.0  ;;  %v1924_v46 = vadd.f32 %v6064_v24, %v1899_v36  ;;  %v5242_v36 = vld [vmem:[%s6541_s3 + $0xb8] sm:$0xff]  }
 0x1ff   : > { %v1972_v54 = vld [vmem:[#allocation4 + $0x30] ss:$3 sm:$0xff]  ;;  %v1984_v58 = vld [vmem:[#allocation4 + $0x31] ss:$3 sm:$0xff]  ;;  %v2002_v0 = vld [vmem:[#allocation4 + $0x32] ss:$3 sm:$0xff] }
 0x200   : > { %1960 = vst.msk [vmem:[#allocation4 + $0x50] sm:$0xff] %vm1949_vm1, %v1941_v38  ;;  %v1993_v9 = vmax.f32 %v1972_v54, %v1984_v58  ;;  %v1942_v55 = vmax.f32 %v1924_v46, 0.0 }
 0x201   : > { %v1865_v14 = vpop.f32.mrb[132].mxu0 }
 0x202   : > { %v1900_v60 = vadd.f32 %v1865_v14, %v6045_v16  ;;  %v4866_v51 = vpop.f32.mrb[133].mxu0  ;;  %v2011_v15 = vmax.f32 %v1993_v9, %v2002_v0  ;;  %1961 = vst.msk [vmem:[#allocation4 + $0x58] sm:$0xff] %vm1949_vm1, %v1942_v55 }
 0x203   : > { %v1868_v5 = vpop.f32.mrb[134].mxu0 }
 0x204   : > { %v1925_v49 = vadd.f32 %v6064_v24, %v1900_v60  ;;  %v1901_v62 = vadd.f32 %v1868_v5, %v6047_v19  ;;  %v4867_v57 = vpop.f32.mrb[135].mxu0  ;;  %2017 = vst.msk [vmem:[#allocation2 + $0x10] sm:$0xff] %vm1949_vm1, %v2011_v15  ;;  %v2350_v19 = vld [vmem:[#allocation2 + $0x3] sm:$0xff] }
 0x206   : > { %v1943_v56 = vmax.f32 %v1925_v49, 0.0  ;;  %v1926_v11 = vadd.f32 %v6064_v24, %v1901_v62 }
 0x208   : > { %1962 = vst.msk [vmem:[#allocation4 + $0x60] sm:$0xff] %vm1949_vm1, %v1943_v56  ;;  %v1944_v23 = vmax.f32 %v1926_v11, 0.0  ;;  %v2022_v11 = vld [vmem:[#allocation2 + $0x8] sm:$0xff] }
 0x209   : > { %v1873_v59 = vpop.f32.mrb[136].mxu0  ;;  %v1974_v16 = vld [vmem:[#allocation4 + $0x48] ss:$3 sm:$0xff]  ;;  %v1986_v26 = vld [vmem:[#allocation4 + $0x49] ss:$3 sm:$0xff] }
 0x20a   : > { %1963 = vst.msk [vmem:[#allocation4 + $0x68] sm:$0xff] %vm1949_vm1, %v1944_v23  ;;  %v1902_v27 = vadd.f32 %v1873_v59, %v6051_v31  ;;  %v1994_v29 = vmax.f32 %v1974_v16, %v1986_v26  ;;  %v4870_v2 = vpop.f32.mrb[137].mxu0  ;;  %v2004_v21 = vld [vmem:[#allocation4 + $0x4a] ss:$3 sm:$0xff]  ;;  %v2021_v59 = vld [vmem:[#allocation2] sm:$0xff] }
 0x20b   : > { %v1876_v6 = vpop.f32.mrb[138].mxu0  ;;  %v2039_v7 = vld [vmem:[#allocation2 + $0x9] sm:$0xff]  ;;  %v5243_v16 = vld [vmem:[%s6541_s3 + $0x40] sm:$0xff]   ;;  %v2027_v26 = vpack.c.bf16 %v2022_v11, %v2021_v59 }
 0x20c   : > { %v1927_v8 = vadd.f32 %v6064_v24, %v1902_v27  ;;  %v2351_v17 = vld [vmem:[#allocation2 + $0xb] sm:$0xff]  ;;  %v2012_v10 = vmax.f32 %v1994_v29, %v2004_v21  ;;  %v1903_v37 = vadd.f32 %v1876_v6, %v6053_v12  ;;  %v4871_v43 = vpop.f32.mrb[139].mxu0  ;;  %v2044_v28 = vpack.c.bf16 %v2039_v7, %v2038_v13  ;;  %v5255_v59 = vld [vmem:[%s6543_s5 + $0x20] sm:$0xff]  }
 0x20d   : > { %v2356_v31 = vpack.c.bf16 %v2351_v17, %v2350_v19  ;;  %v5236_v12 = vld [vmem:[%s6541_s3 + $0x8] sm:$0xff]   ;;  %v5245_v21 = vld [vmem:[%s6541_s3 + $0x50] sm:$0xff]   ;;  %v5246_v17 = vld [vmem:[%s6541_s3 + $0x58] sm:$0xff]  }
 0x20e   : > { %v1945_v18 = vmax.f32 %v1927_v8, 0.0  ;;  %2018 = vst.msk [vmem:[#allocation2 + $0x18] sm:$0xff] %vm1949_vm1, %v2012_v10  ;;  %v1928_v48 = vadd.f32 %v6064_v24, %v1903_v37  ;;  %4885 = vmatmul.mubr.msk.bf16.vlgmr.msra.gmra.mrb[108].mxu1 %vm1949_vm1, %v2044_v28  ;;  %v2579_v23 = vld [vmem:[#allocation2 + $0xd] sm:$0xff]  ;;  %v2578_v27 = vld [vmem:[#allocation2 + $0x5] sm:$0xff] }
 0x20f   : > { %4945 = vmatmul.mubr.msk.bf16.vlgmr.msra.gmra.mrb[144].mxu0 %vm1949_vm1, %v2356_v31  ;;  %4897 = vmatpush3.bf16.msra.mxu1 %v5235_v32  ;;  %v2584_v29 = vpack.c.bf16 %v2579_v23, %v2578_v27  ;;  %v5244_v2 = vld [vmem:[%s6541_s3 + $0x48] sm:$0xff]   ;;  %v2023_v32 = vld [vmem:[#allocation2 + $0x10] sm:$0xff] }
 0x210   : > { %1964 = vst.msk [vmem:[#allocation4 + $0x70] sm:$0xff] %vm1949_vm1, %v1945_v18  ;;  %4888 = vmatprep.mubr.msk.bf16.mxu1 %vm5312_vm0, %v5311_v1  ;;  %v1946_v35 = vmax.f32 %v1928_v48, 0.0  ;;  %4948 = vmatprep.mubr.msk.bf16.mxu0 %vm5312_vm0, %v5311_v1  ;;  %v2236_v48 = vld [vmem:[#allocation2 + $0x2] sm:$0xff] }
 0x211   : > { %v1881_v4 = vpop.f32.mrb[140].mxu0  ;;  %4898 = vmatprep.subr.bf16.mxu1 %v5311_v1  ;;  %4977 = vmatpush3.bf16.msra.mxu0 %v5237_v44  ;;  %v2237_v44 = vld [vmem:[#allocation2 + $0xa] sm:$0xff] }
 0x212   : > { %v1904_v20 = vadd.f32 %v1881_v4, %v6057_v47  ;;  %v4874_v52 = vpop.f32.mrb[141].mxu0  ;;  %1965 = vst.msk [vmem:[#allocation4 + $0x78] sm:$0xff] %vm1949_vm1, %v1946_v35  ;;  %4978 = vmatprep.subr.bf16.mxu0 %v5311_v1  ;;  %v5238_v47 = vld [vmem:[%s6541_s3 + $0x10] sm:$0xff]   ;;  %v2242_v35 = vpack.c.bf16 %v2237_v44, %v2236_v48  ;;  %v5248_v4 = vld [vmem:[%s6541_s3 + $0x88] sm:$0xff]  }
 0x213   : > { %v1884_v30 = vpop.f32.mrb[142].mxu0  ;;  %4899 = vmatpush3.bf16.msra.mxu1 %v5236_v12  ;;  %v5247_v12 = vld [vmem:[%s6541_s3 + $0x80] sm:$0xff]   ;;  %v5259_v27 = vld [vmem:[%s6543_s5 + $0x8] sm:$0xff]  }
 0x214   : > { %v1929_v22 = vadd.f32 %v6064_v24, %v1904_v20  ;;  %v1905_v39 = vadd.f32 %v1884_v30, %v6059_v25  ;;  %v4875_v41 = vpop.f32.mrb[143].mxu0  ;;  %4900 = vmatprep.subr.bf16.mxu1 %v5311_v1 }
 0x215   : > { %4979 = vmatpush3.bf16.msra.mxu0 %v5239_v33  ;;  %v2040_v54 = vld [vmem:[#allocation2 + $0x11] sm:$0xff] }
 0x216   : > { %v1947_v42 = vmax.f32 %v1929_v22, 0.0  ;;  %v1930_v40 = vadd.f32 %v6064_v24, %v1905_v39  ;;  %4980 = vmatprep.subr.bf16.mxu0 %v5311_v1  ;;  %v2352_v58 = vld [vmem:[#allocation2 + $0x13] sm:$0xff] }
 0x217   : > { %v1976_v45 = vld [vmem:[#allocation4 + $0x60] ss:$3 sm:$0xff]  ;;  %v1988_v34 = vld [vmem:[#allocation4 + $0x61] ss:$3 sm:$0xff]  ;;  %4901 = vmatpush3.bf16.msra.mxu1 %v5238_v47  ;;  %v2006_v3 = vld [vmem:[#allocation4 + $0x62] ss:$3 sm:$0xff] }
 0x218   : > { %v1995_v25 = vmax.f32 %v1976_v45, %v1988_v34  ;;  %1966 = vst.msk [vmem:[#allocation4 + $0x80] sm:$0xff] %vm1949_vm1, %v1947_v42  ;;  %v1948_v50 = vmax.f32 %v1930_v40, 0.0  ;;  %4902 = vmatprep.subr.bf16.mxu1 %v5311_v1  ;;  %v2024_v13 = vld [vmem:[#allocation2 + $0x18] sm:$0xff]  ;;  %v5249_v33 = vld [vmem:[%s6541_s3 + $0x90] sm:$0xff]   ;;  %v2464_v40 = vld [vmem:[#allocation2 + $0x4] sm:$0xff] }
 0x219   : > { %4981 = vmatpush3.bf16.msra.mxu0 %v5240_v61  ;;  %v2028_v8 = vpack.c.bf16 %v2024_v13, %v2023_v32  ;;  %v2580_v6 = vld [vmem:[#allocation2 + $0x15] sm:$0xff]  ;;  %v2465_v42 = vld [vmem:[#allocation2 + $0xc] sm:$0xff]  ;;  %v5251_v61 = vld [vmem:[%s6541_s3 + $0xc0] sm:$0xff]  }
 0x21a   : > { %v2013_v24 = vmax.f32 %v1995_v25, %v2006_v3  ;;  %1967 = vst.msk [vmem:[#allocation4 + $0x88] sm:$0xff] %vm1949_vm1, %v1948_v50  ;;  %4982 = vmatprep.subr.bf16.mxu0 %v5311_v1  ;;  %v2238_v52 = vld [vmem:[#allocation2 + $0x12] sm:$0xff]  ;;  %v2470_v45 = vpack.c.bf16 %v2465_v42, %v2464_v40  ;;  %v5252_v34 = vld [vmem:[%s6541_s3 + $0xc8] sm:$0xff]  }
 0x21b   : > { %4903 = vmatpush3.bf16.msra.mxu1 %v5241_v63  ;;  %v5250_v22 = vld [vmem:[%s6541_s3 + $0x98] sm:$0xff]   ;;  %v5253_v63 = vld [vmem:[%s6541_s3 + $0xd0] sm:$0xff]  }
 0x21c   : > { %2019 = vst.msk [vmem:[#allocation2 + $0x20] sm:$0xff] %vm1949_vm1, %v2013_v24  ;;  %4916 = vmatprep.subr.bf16.mxu1 %v5311_v1  ;;  %v2466_v50 = vld [vmem:[#allocation2 + $0x14] sm:$0xff] }
 0x21d   : > { %4983 = vmatpush3.bf16.msra.mxu0 %v5242_v36  ;;  %v5254_v24 = vld [vmem:[%s6541_s3 + $0xd8] sm:$0xff]   ;;  %v5258_v32 = vld [vmem:[%s6543_s5 + $0x30] sm:$0xff]  }
 0x21e   : > { %5016 = vmatprep.subr.bf16.mxu0 %v5311_v1 }
 0x221   : > { %v1978_v53 = vld [vmem:[#allocation4 + $0x78] ss:$3 sm:$0xff]  ;;  %v1990_v38 = vld [vmem:[#allocation4 + $0x79] ss:$3 sm:$0xff]  ;;  %v2008_v9 = vld [vmem:[#allocation4 + $0x7a] ss:$3 sm:$0xff] }
 0x222   : > { %v1996_v46 = vmax.f32 %v1978_v53, %v1990_v38 }
 0x223   : > { %v2041_v55 = vld [vmem:[#allocation2 + $0x19] sm:$0xff] }
 0x224   : > { %v2353_v14 = vld [vmem:[#allocation2 + $0x1b] sm:$0xff]  ;;  %v2014_v0 = vmax.f32 %v1996_v46, %v2008_v9  ;;  %v2045_v60 = vpack.c.bf16 %v2041_v55, %v2040_v54  ;;  %v2693_v46 = vld [vmem:[#allocation2 + $0xe] sm:$0xff]  ;;  %v2692_v54 = vld [vmem:[#allocation2 + $0x6] sm:$0xff] }
 0x225   : > { %v2357_v51 = vpack.c.bf16 %v2353_v14, %v2352_v58  ;;  %v2581_v19 = vld [vmem:[#allocation2 + $0x1d] sm:$0xff]  ;;  %v2698_v58 = vpack.c.bf16 %v2693_v46, %v2692_v54 }
 0x226   : > { %2020 = vst.msk [vmem:[#allocation2 + $0x28] sm:$0xff] %vm1949_vm1, %v2014_v0  ;;  %4889 = vmatmul.mubr.msk.bf16.gmra.mrb[112].mxu1 %vm1949_vm1, %v2045_v60  ;;  %v2585_v7 = vpack.c.bf16 %v2581_v19, %v2580_v6  ;;  %v2025_v28 = vld [vmem:[#allocation2 + $0x20] sm:$0xff]  ;;  %v2694_v55 = vld [vmem:[#allocation2 + $0x16] sm:$0xff] }
 0x227   : > { %4949 = vmatmul.mubr.msk.bf16.gmra.mrb[148].mxu0 %vm1949_vm1, %v2357_v51  ;;  %4892 = vmatprep.mubr.msk.bf16.mxu1 %vm5312_vm0, %v5311_v1  ;;  %v2239_v20 = vld [vmem:[#allocation2 + $0x1a] sm:$0xff]  ;;  %v5260_v6 = vld [vmem:[%s6543_s5 + $0x10] sm:$0xff]  }
 0x228   : > { %4952 = vmatprep.mubr.msk.bf16.mxu0 %vm5312_vm0, %v5311_v1  ;;  %v2243_v30 = vpack.c.bf16 %v2239_v20, %v2238_v52  ;;  %v2467_v25 = vld [vmem:[#allocation2 + $0x1c] sm:$0xff] }
 0x229   : > { %v2471_v3 = vpack.c.bf16 %v2467_v25, %v2466_v50  ;;  %v2695_v9 = vld [vmem:[#allocation2 + $0x1e] sm:$0xff] }
 0x22a   : > { %v2699_v14 = vpack.c.bf16 %v2695_v9, %v2694_v55 }
 0x22d   : > { %v2042_v15 = vld [vmem:[#allocation2 + $0x21] sm:$0xff]  ;;  %v2043_v5 = vld [vmem:[#allocation2 + $0x29] sm:$0x3]  ;;  %v2355_v57 = vld [vmem:[#allocation2 + $0x2b] sm:$0x3] }
 0x22e   : > { %v2354_v49 = vld [vmem:[#allocation2 + $0x23] sm:$0xff]  ;;  %v2046_v62 = vpack.c.bf16 %v2043_v5, %v2042_v15  ;;  %v2583_v43 = vld [vmem:[#allocation2 + $0x2d] sm:$0x3] }
 0x22f   : > { %v2358_v56 = vpack.c.bf16 %v2355_v57, %v2354_v49  ;;  %v2026_v10 = vld [vmem:[#allocation2 + $0x28] sm:$0x3]  ;;  %v2241_v41 = vld [vmem:[#allocation2 + $0x2a] sm:$0x3]  ;;  %v2469_v53 = vld [vmem:[#allocation2 + $0x2c] sm:$0x3] }
 0x230   : > { %4893 = vmatmul.mubr.msk.bf16.gmra.mrb[116].mxu1 %vm1949_vm1, %v2046_v62  ;;  %v2582_v37 = vld [vmem:[#allocation2 + $0x25] sm:$0xff]  ;;  %v2029_v31 = vpack.c.bf16 %v2026_v10, %v2025_v28  ;;  %v2697_v60 = vld [vmem:[#allocation2 + $0x2e] sm:$0x3]  ;;  %v5261_v10 = vld [vmem:[%s6543_s5 + $0x38] sm:$0xff]  }
 0x231   : > { %4953 = vmatmul.mubr.msk.bf16.gmra.mrb[152].mxu0 %vm1949_vm1, %v2358_v56  ;;  %4904 = vmatprep.mubr.msk.bf16.mxu1 %vm5312_vm0, %v5311_v1  ;;  %v2586_v18 = vpack.c.bf16 %v2583_v43, %v2582_v37  ;;  %v2240_v39 = vld [vmem:[#allocation2 + $0x22] sm:$0xff]  ;;  %v5262_v37 = vld [vmem:[%s6543_s5 + $0x18] sm:$0xff]  }
 0x232   : > { %4984 = vmatprep.mubr.msk.bf16.mxu0 %vm5312_vm0, %v5311_v1  ;;  %v2244_v47 = vpack.c.bf16 %v2241_v41, %v2240_v39  ;;  %v2468_v36 = vld [vmem:[#allocation2 + $0x24] sm:$0xff] }
 0x233   : > { %v2472_v38 = vpack.c.bf16 %v2469_v53, %v2468_v36  ;;  %v2696_v0 = vld [vmem:[#allocation2 + $0x26] sm:$0xff] }
 0x234   : > { %v2700_v51 = vpack.c.bf16 %v2697_v60, %v2696_v0 }
 0x238   : > { %4905 = vmatmul.mubr.msk.bf16.vlgmr.msra.gmra.mrb[120].mxu1 %vm1949_vm1, %v2027_v26  ;;  %v5256_v26 = vld [vmem:[%s6543_s5 + $0x28] sm:$0xff]  }
 0x239   : > { %4985 = vmatmul.mubr.msk.bf16.vlgmr.msra.gmra.mrb[156].mxu0 %vm1949_vm1, %v2584_v29  ;;  %4917 = vmatpush3.bf16.msra.mxu1 %v5243_v16  ;;  %v5257_v16 = vld [vmem:[%s6543_s5] sm:$0xff]  }
 0x23a   : > { %4918 = vmatprep.subr.bf16.mxu1 %v5311_v1  ;;  %4908 = vmatprep.mubr.msk.bf16.mxu1 %vm5312_vm0, %v5311_v1 }
 0x23b   : > { %4988 = vmatprep.mubr.msk.bf16.mxu0 %vm5312_vm0, %v5311_v1  ;;  %5017 = vmatpush3.bf16.msra.mxu0 %v5255_v59 }
 0x23c   : > { %5018 = vmatprep.subr.bf16.mxu0 %v5311_v1 }
 0x23d   : > { %4919 = vmatpush3.bf16.msra.mxu1 %v5244_v2 }
 0x23e   : > { %4920 = vmatprep.subr.bf16.mxu1 %v5311_v1 }
 0x23f   : > { %5019 = vmatpush3.bf16.msra.mxu0 %v5256_v26 }
 0x240   : > { %4909 = vmatmul.mubr.msk.bf16.gmra.mrb[124].mxu1 %vm1949_vm1, %v2028_v8  ;;  %5020 = vmatprep.subr.bf16.mxu0 %v5311_v1 }
 0x241   : > { %4989 = vmatmul.mubr.msk.bf16.gmra.mrb[160].mxu0 %vm1949_vm1, %v2585_v7  ;;  %4921 = vmatpush3.bf16.msra.mxu1 %v5245_v21 }
 0x242   : > { %4912 = vmatprep.mubr.msk.bf16.mxu1 %vm5312_vm0, %v5311_v1  ;;  %4992 = vmatprep.mubr.msk.bf16.mxu0 %vm5312_vm0, %v5311_v1 }
 0x243   : > { %4922 = vmatprep.subr.bf16.mxu1 %v5311_v1  ;;  %5021 = vmatpush3.bf16.msra.mxu0 %v5258_v32 }
 0x244   : > { %5022 = vmatprep.subr.bf16.mxu0 %v5311_v1 }
 0x245   : > { %4923 = vmatpush3.bf16.msra.mxu1 %v5246_v17 }
 0x246   : > { %4956 = vmatprep.subr.bf16.mxu1 %v5311_v1 }
 0x247   : > { %5023 = vmatpush3.bf16.msra.mxu0 %v5261_v10 }
 0x248   : > { %4913 = vmatmul.mubr.msk.bf16.gmra.mrb[128].mxu1 %vm1949_vm1, %v2029_v31  ;;  %5040 = vmatprep.subr.bf16.mxu0 %v5311_v1 }
 0x249   : > { %4993 = vmatmul.mubr.msk.bf16.gmra.mrb[164].mxu0 %vm1949_vm1, %v2586_v18  ;;  %4924 = vmatprep.mubr.msk.bf16.mxu1 %vm5312_vm0, %v5311_v1 }
 0x24a   : > { %5024 = vmatprep.mubr.msk.bf16.mxu0 %vm5312_vm0, %v5311_v1 }
 0x250   : > { %4925 = vmatmul.mubr.msk.bf16.vlgmr.msra.gmra.mrb[132].mxu1 %vm1949_vm1, %v2242_v35 }
 0x251   : > { %4957 = vmatpush3.bf16.msra.mxu1 %v5247_v12  ;;  %4928 = vmatprep.mubr.msk.bf16.mxu1 %vm5312_vm0, %v5311_v1 }
 0x252   : > { %4958 = vmatprep.subr.bf16.mxu1 %v5311_v1 }
 0x255   : > { %4959 = vmatpush3.bf16.msra.mxu1 %v5248_v4 }
 0x256   : > { %4960 = vmatprep.subr.bf16.mxu1 %v5311_v1 }
 0x258   : > { %4929 = vmatmul.mubr.msk.bf16.gmra.mrb[136].mxu1 %vm1949_vm1, %v2243_v30 }
 0x259   : > { %4961 = vmatpush3.bf16.msra.mxu1 %v5249_v33  ;;  %4932 = vmatprep.mubr.msk.bf16.mxu1 %vm5312_vm0, %v5311_v1 }
 0x25a   : > { %4962 = vmatprep.subr.bf16.mxu1 %v5311_v1 }
 0x25d   : > { %4963 = vmatpush3.bf16.msra.mxu1 %v5250_v22 }
 0x25e   : > { %4996 = vmatprep.subr.bf16.mxu1 %v5311_v1 }
 0x260   : > { %4933 = vmatmul.mubr.msk.bf16.gmra.mrb[140].mxu1 %vm1949_vm1, %v2244_v47 }
 0x261   : > { %4964 = vmatprep.mubr.msk.bf16.mxu1 %vm5312_vm0, %v5311_v1 }
 0x268   : > { %4965 = vmatmul.mubr.msk.bf16.vlgmr.msra.gmra.mrb[144].mxu1 %vm1949_vm1, %v2470_v45 }
 0x269   : > { %4997 = vmatpush3.bf16.msra.mxu1 %v5251_v61  ;;  %4968 = vmatprep.mubr.msk.bf16.mxu1 %vm5312_vm0, %v5311_v1 }
 0x26a   : > { %4998 = vmatprep.subr.bf16.mxu1 %v5311_v1 }
 0x26d   : > { %4999 = vmatpush3.bf16.msra.mxu1 %v5252_v34 }
 0x26e   : > { %5000 = vmatprep.subr.bf16.mxu1 %v5311_v1 }
 0x270   : > { %4969 = vmatmul.mubr.msk.bf16.gmra.mrb[148].mxu1 %vm1949_vm1, %v2471_v3 }
 0x271   : > { %5001 = vmatpush3.bf16.msra.mxu1 %v5253_v63  ;;  %4972 = vmatprep.mubr.msk.bf16.mxu1 %vm5312_vm0, %v5311_v1 }
 0x272   : > { %5002 = vmatprep.subr.bf16.mxu1 %v5311_v1 }
 0x275   : > { %5003 = vmatpush3.bf16.msra.mxu1 %v5254_v24 }
 0x276   : > { %5028 = vmatprep.subr.bf16.mxu1 %v5311_v1 }
 0x278   : > { %4973 = vmatmul.mubr.msk.bf16.gmra.mrb[152].mxu1 %vm1949_vm1, %v2472_v38 }
 0x279   : > { %5004 = vmatprep.mubr.msk.bf16.mxu1 %vm5312_vm0, %v5311_v1 }
 0x280   : > { %5005 = vmatmul.mubr.msk.bf16.vlgmr.msra.gmra.mrb[156].mxu1 %vm1949_vm1, %v2698_v58 }
 0x281   : > { %5008 = vmatprep.mubr.msk.bf16.mxu1 %vm5312_vm0, %v5311_v1  ;;  %5029 = vmatpush3.bf16.msra.mxu1 %v5257_v16 }
 0x282   : > { %5030 = vmatprep.subr.bf16.mxu1 %v5311_v1 }
 0x285   : > { %5031 = vmatpush3.bf16.msra.mxu1 %v5259_v27 }
 0x286   : > { %5032 = vmatprep.subr.bf16.mxu1 %v5311_v1 }
 0x288   : > { %5009 = vmatmul.mubr.msk.bf16.gmra.mrb[160].mxu1 %vm1949_vm1, %v2699_v14 }
 0x289   : > { %5012 = vmatprep.mubr.msk.bf16.mxu1 %vm5312_vm0, %v5311_v1  ;;  %5033 = vmatpush3.bf16.msra.mxu1 %v5260_v6 }
 0x28a   : > { %5034 = vmatprep.subr.bf16.mxu1 %v5311_v1 }
 0x28d   : > { %5035 = vmatpush3.bf16.msra.mxu1 %v5262_v37 }
 0x28e   : > { %5052 = vmatprep.subr.bf16.mxu1 %v5311_v1 }
 0x290   : > { %5013 = vmatmul.mubr.msk.bf16.gmra.mrb[164].mxu1 %vm1949_vm1, %v2700_v51 }
 0x291   : > { %5036 = vmatprep.mubr.msk.bf16.mxu1 %vm5312_vm0, %v5311_v1 }
 0x2e1   : > { %v2123_v15 = vpop.f32.mrb[108].mxu1 }
 0x2e2   : > { %v6269_v5 = vpop.f32.mrb[144].mxu0  ;;  %v4886_v49 = vpop.f32.mrb[109].mxu1 }
 0x2e3   : > { %v4946_v62 = vpop.f32.mrb[145].mxu0  ;;  %v2126_v57 = vpop.f32.mrb[110].mxu1 }
 0x2e4   : > { %v6271_v56 = vpop.f32.mrb[146].mxu0  ;;  %v4887_v11 = vpop.f32.mrb[111].mxu1 }
 0x2e5   : > { %v4947_v23 = vpop.f32.mrb[147].mxu0 }
 0x2f9   : > { %v2131_v29 = vpop.f32.mrb[112].mxu1 }
 0x2fa   : > { %v6287_v2 = vpop.f32.mrb[148].mxu0  ;;  %v4890_v13 = vpop.f32.mrb[113].mxu1 }
 0x2fb   : > { %v4950_v19 = vpop.f32.mrb[149].mxu0  ;;  %v2134_v21 = vpop.f32.mrb[114].mxu1 }
 0x2fc   : > { %v6292_v8 = vpop.f32.mrb[150].mxu0  ;;  %v4891_v7 = vpop.f32.mrb[115].mxu1 }
 0x2fd   : > { %v4951_v17 = vpop.f32.mrb[151].mxu0 }
 0x303   : > { %v2139_v43 = vpop.f32.mrb[116].mxu1 }
 0x304   : > { %v2451_v28 = vpop.f32.mrb[152].mxu0  ;;  %v4894_v31 = vpop.f32.mrb[117].mxu1 }
 0x305   : > { %v4954_v18 = vpop.f32.mrb[153].mxu0  ;;  %v2142_v44 = vpop.f32.mrb[118].mxu1 }
 0x306   : > { %v2454_v48 = vpop.f32.mrb[154].mxu0  ;;  %v4895_v12 = vpop.f32.mrb[119].mxu1 }
 0x307   : > { %v4955_v35 = vpop.f32.mrb[155].mxu0 }
 0x30b   : > { %v2213_v4 = vpop.f32.mrb[120].mxu1 }
 0x30c   : > { %v2214_v20 = vadd.f32 %v2213_v4, %v2123_v15  ;;  %v2663_v52 = vpop.f32.mrb[156].mxu0  ;;  %v4906_v33 = vpop.f32.mrb[121].mxu1 }
 0x30d   : > { %v4986_v30 = vpop.f32.mrb[157].mxu0  ;;  %v2216_v22 = vpop.f32.mrb[122].mxu1 }
 0x30e   : > { %v2217_v39 = vadd.f32 %v2216_v22, %v2126_v57  ;;  %v2666_v41 = vpop.f32.mrb[158].mxu0  ;;  %v4907_v47 = vpop.f32.mrb[123].mxu1 }
 0x30f   : > { %v4987_v42 = vpop.f32.mrb[159].mxu0 }
 0x313   : > { %v2221_v40 = vpop.f32.mrb[124].mxu1 }
 0x314   : > { %v2222_v61 = vadd.f32 %v2221_v40, %v2131_v29  ;;  %v2671_v45 = vpop.f32.mrb[160].mxu0  ;;  %v4910_v34 = vpop.f32.mrb[125].mxu1 }
 0x315   : > { %v4990_v25 = vpop.f32.mrb[161].mxu0  ;;  %v2224_v50 = vpop.f32.mrb[126].mxu1 }
 0x316   : > { %v2225_v63 = vadd.f32 %v2224_v50, %v2134_v21  ;;  %v2674_v3 = vpop.f32.mrb[162].mxu0  ;;  %v4911_v24 = vpop.f32.mrb[127].mxu1 }
 0x317   : > { %v4991_v36 = vpop.f32.mrb[163].mxu0 }
 0x31b   : > { %v2229_v53 = vpop.f32.mrb[128].mxu1 }
 0x31c   : > { %v2230_v38 = vadd.f32 %v2229_v53, %v2139_v43  ;;  %v2679_v46 = vpop.f32.mrb[164].mxu0  ;;  %v4914_v54 = vpop.f32.mrb[129].mxu1 }
 0x31d   : > { %v4994_v58 = vpop.f32.mrb[165].mxu0  ;;  %v2232_v9 = vpop.f32.mrb[130].mxu1 }
 0x31e   : > { %v2233_v55 = vadd.f32 %v2232_v9, %v2142_v44  ;;  %v2682_v14 = vpop.f32.mrb[166].mxu0  ;;  %v4915_v0 = vpop.f32.mrb[131].mxu1 }
 0x31f   : > { %v4995_v60 = vpop.f32.mrb[167].mxu0 }
 0x323   : > { %v2321_v51 = vpop.f32.mrb[132].mxu1 }
 0x324   : > { %v2344_v15 = vadd.f32 %v2321_v51, %v2214_v20  ;;  %v4926_v49 = vpop.f32.mrb[133].mxu1 }
 0x325   : > { %v2324_v62 = vpop.f32.mrb[134].mxu1 }
 0x326   : > { %v2345_v57 = vadd.f32 %v2324_v62, %v2217_v39  ;;  %v4927_v11 = vpop.f32.mrb[135].mxu1  ;;  %v2458_v23 = vadd.f32 %v6269_v5, %v2344_v15 }
 0x328   : > { %v2459_v59 = vadd.f32 %v6271_v56, %v2345_v57 }
 0x32b   : > { %v2329_v16 = vpop.f32.mrb[136].mxu1 }
 0x32c   : > { %v2346_v26 = vadd.f32 %v2329_v16, %v2222_v61  ;;  %v4930_v27 = vpop.f32.mrb[137].mxu1 }
 0x32d   : > { %v2332_v29 = vpop.f32.mrb[138].mxu1 }
 0x32e   : > { %v2347_v13 = vadd.f32 %v2332_v29, %v2225_v63  ;;  %v4931_v19 = vpop.f32.mrb[139].mxu1  ;;  %v2460_v32 = vadd.f32 %v6287_v2, %v2346_v26 }
 0x330   : > { %v2461_v21 = vadd.f32 %v6292_v8, %v2347_v13 }
 0x333   : > { %v2337_v6 = vpop.f32.mrb[140].mxu1 }
 0x334   : > { %v2348_v7 = vadd.f32 %v2337_v6, %v2230_v38  ;;  %v4934_v17 = vpop.f32.mrb[141].mxu1 }
 0x335   : > { %v2340_v10 = vpop.f32.mrb[142].mxu1 }
 0x336   : > { %v2349_v37 = vadd.f32 %v2340_v10, %v2233_v55  ;;  %v4935_v43 = vpop.f32.mrb[143].mxu1  ;;  %v2462_v31 = vadd.f32 %v2451_v28, %v2348_v7 }
 0x338   : > { %v2463_v5 = vadd.f32 %v2454_v48, %v2349_v37 }
 0x33b   : > { %v2549_v18 = vpop.f32.mrb[144].mxu1 }
 0x33c   : > { %v2572_v56 = vadd.f32 %v2549_v18, %v2458_v23  ;;  %v4966_v44 = vpop.f32.mrb[145].mxu1 }
 0x33d   : > { %v2552_v12 = vpop.f32.mrb[146].mxu1 }
 0x33e   : > { %v2573_v35 = vadd.f32 %v2552_v12, %v2459_v59  ;;  %v4967_v4 = vpop.f32.mrb[147].mxu1  ;;  %v2686_v20 = vadd.f32 %v2663_v52, %v2572_v56  ;;  %v4153_v52 = vld [vmem:[%s6542_s4] ss:$0 sm:$0xff] }
 0x33f   : > { %v5263_v12 = vld [vmem:[%s6543_s5 + $0x40] sm:$0xff]  }
 0x340   : > { %v2687_v33 = vadd.f32 %v2666_v41, %v2573_v35 }
 0x343   : > { %v2557_v30 = vpop.f32.mrb[148].mxu1 }
 0x344   : > { %v2574_v2 = vadd.f32 %v2557_v30, %v2460_v32  ;;  %v4970_v22 = vpop.f32.mrb[149].mxu1 }
 0x345   : > { %v2560_v8 = vpop.f32.mrb[150].mxu1  ;;  %v5265_v22 = vld [vmem:[%s6543_s5 + $0x50] sm:$0xff]  }
 0x346   : > { %v2575_v39 = vadd.f32 %v2560_v8, %v2461_v21  ;;  %v4971_v47 = vpop.f32.mrb[151].mxu1  ;;  %v2688_v42 = vadd.f32 %v2671_v45, %v2574_v2  ;;  %v5264_v2 = vld [vmem:[%s6543_s5 + $0x48] sm:$0xff]   ;;  %v5266_v8 = vld [vmem:[%s6543_s5 + $0x58] sm:$0xff]  }
 0x348   : > { %v2689_v40 = vadd.f32 %v2674_v3, %v2575_v39 }
 0x34b   : > { %v2565_v61 = vpop.f32.mrb[152].mxu1 }
 0x34c   : > { %v2576_v34 = vadd.f32 %v2565_v61, %v2462_v31  ;;  %v4974_v28 = vpop.f32.mrb[153].mxu1  ;;  %v5268_v61 = vld [vmem:[%s6545_s7] sm:$0xff]  }
 0x34d   : > { %v2568_v48 = vpop.f32.mrb[154].mxu1  ;;  %v5270_v28 = vld [vmem:[%s6545_s7 + $0x8] sm:$0xff]  }
 0x34e   : > { %v2577_v25 = vadd.f32 %v2568_v48, %v2463_v5  ;;  %v4975_v50 = vpop.f32.mrb[155].mxu1  ;;  %v2690_v63 = vadd.f32 %v2679_v46, %v2576_v34  ;;  %v5269_v34 = vld [vmem:[%s6545_s7 + $0x28] sm:$0xff]   ;;  %v5271_v48 = vld [vmem:[%s6545_s7 + $0x30] sm:$0xff]  }
 0x34f   : > { %v5273_v50 = vld [vmem:[%s6545_s7 + $0x38] sm:$0xff]  }
 0x350   : > { %v2691_v24 = vadd.f32 %v2682_v14, %v2577_v25  ;;  %v5272_v25 = vld [vmem:[%s6545_s7 + $0x10] sm:$0xff]  }
 0x353   : > { %v2777_v36 = vpop.f32.mrb[156].mxu1 }
 0x354   : > { %v2800_v41 = vadd.f32 %v2777_v36, %v2686_v20  ;;  %v5006_v53 = vpop.f32.mrb[157].mxu1 }
 0x355   : > { %v2780_v38 = vpop.f32.mrb[158].mxu1 }
 0x356   : > { %v2813_v54 = vadd.f32 %v4153_v52, %v2800_v41  ;;  %v2801_v58 = vadd.f32 %v2780_v38, %v2687_v33  ;;  %v5007_v45 = vpop.f32.mrb[159].mxu1 }
 0x358   : > { %v2819_v3 = vmax.f32 %v2813_v54, 0.0  ;;  %v2814_v9 = vadd.f32 %v4153_v52, %v2801_v58 }
 0x35a   : > { %2825 = vst.msk [vmem:[#allocation4] sm:$0xff] %vm1949_vm1, %v2819_v3  ;;  %v2820_v55 = vmax.f32 %v2814_v9, 0.0 }
 0x35b   : > { %v2785_v0 = vpop.f32.mrb[160].mxu1 }
 0x35c   : > { %2826 = vst.msk [vmem:[#allocation4 + $0x8] sm:$0xff] %vm1949_vm1, %v2820_v55  ;;  %v2802_v46 = vadd.f32 %v2785_v0, %v2688_v42  ;;  %v5010_v14 = vpop.f32.mrb[161].mxu1  ;;  %v4185_v55 = vld [vmem:[%s6544_s6] ss:$0 sm:$0xff] }
 0x35d   : > { %v2788_v60 = vpop.f32.mrb[162].mxu1 }
 0x35e   : > { %v2815_v51 = vadd.f32 %v4153_v52, %v2802_v46  ;;  %v2803_v15 = vadd.f32 %v2788_v60, %v2689_v40  ;;  %v5011_v49 = vpop.f32.mrb[163].mxu1  ;;  %v5267_v40 = vld [vmem:[%s6545_s7 + $0x20] sm:$0xff]  }
 0x360   : > { %v2821_v62 = vmax.f32 %v2815_v51, 0.0  ;;  %v2816_v57 = vadd.f32 %v4153_v52, %v2803_v15 }
 0x362   : > { %2827 = vst.msk [vmem:[#allocation4 + $0x10] sm:$0xff] %vm1949_vm1, %v2821_v62  ;;  %v2822_v11 = vmax.f32 %v2816_v57, 0.0 }
 0x363   : > { %v2793_v23 = vpop.f32.mrb[164].mxu1 }
 0x364   : > { %2828 = vst.msk [vmem:[#allocation4 + $0x18] sm:$0xff] %vm1949_vm1, %v2822_v11  ;;  %v2804_v59 = vadd.f32 %v2793_v23, %v2690_v63  ;;  %v5014_v16 = vpop.f32.mrb[165].mxu1  ;;  %v5274_v63 = vld [vmem:[%s6545_s7 + $0x18] sm:$0xff]   ;;  %v5275_v23 = vld [vmem:[%s6545_s7 + $0x40] sm:$0xff]  }
 0x365   : > { %v2796_v26 = vpop.f32.mrb[166].mxu1 }
 0x366   : > { %v2817_v27 = vadd.f32 %v4153_v52, %v2804_v59  ;;  %v2805_v29 = vadd.f32 %v2796_v26, %v2691_v24  ;;  %v5015_v13 = vpop.f32.mrb[167].mxu1 }
 0x367   : > { %v5276_v13 = vld [vmem:[%s6545_s7 + $0x48] sm:$0xff]  }
 0x368   : > { %v2823_v19 = vmax.f32 %v2817_v27, 0.0  ;;  %v2818_v32 = vadd.f32 %v4153_v52, %v2805_v29 }
 0x369   : > { %v2832_v21 = vld [vmem:[#allocation4] ss:$3 sm:$0xff]  ;;  %v2834_v6 = vld [vmem:[#allocation4 + $0x1] ss:$3 sm:$0xff]  ;;  %v2838_v10 = vld [vmem:[#allocation4 + $0x2] ss:$3 sm:$0xff] }
 0x36a   : > { %v2836_v7 = vmax.f32 %v2832_v21, %v2834_v6  ;;  %2829 = vst.msk [vmem:[#allocation4 + $0x20] sm:$0xff] %vm1949_vm1, %v2823_v19  ;;  %v2824_v17 = vmax.f32 %v2818_v32, 0.0  ;;  %v5277_v19 = vld [vmem:[%s6545_s7 + $0x50] sm:$0xff]   ;;  %v5278_v32 = vld [vmem:[%s6545_s7 + $0x58] sm:$0xff]  }
 0x36c   : > { %2831 = vst.msk [vmem:[#allocation4 + $0x28] sm:$0x3] %vm2830_vm2, %v2824_v17  ;;  %v2840_v37 = vmax.f32 %v2836_v7, %v2838_v10  ;;  %v5279_v17 = vld [vmem:[%s6547_s9] sm:$0xff]  }
 0x36d   : > { %v5280_v10 = vld [vmem:[%s6547_s9 + $0x20] sm:$0xff]  }
 0x36e   : > { %2842 = vst.msk [vmem:[#allocation3] sm:$0xff] %vm1949_vm1, %v2840_v37  ;;  %v5281_v37 = vld [vmem:[%s6547_s9 + $0x8] sm:$0xff]  }
 0x371   : > { %v2833_v43 = vld [vmem:[#allocation4 + $0x18] ss:$3 sm:$0x3f] }
 0x373   : > { %v2835_v31 = vld [vmem:[#allocation4 + $0x19] ss:$3 sm:$0x3f]  ;;  %v2839_v18 = vld [vmem:[#allocation4 + $0x1a] ss:$3 sm:$0x3f] }
 0x374   : > { %v2837_v5 = vmax.f32 %v2833_v43, %v2835_v31  ;;  %v5282_v43 = vld [vmem:[%s6547_s9 + $0x28] sm:$0xff]   ;;  %v5283_v31 = vld [vmem:[%s6547_s9 + $0x10] sm:$0xff]  }
 0x375   : > { %v2845_v44 = vld [vmem:[#allocation3] sm:$0xff] }
 0x376   : > { %v2841_v56 = vmax.f32 %v2837_v5, %v2839_v18  ;;  %v5284_v5 = vld [vmem:[%s6547_s9 + $0x30] sm:$0xff]   ;;  %v5285_v18 = vld [vmem:[%s6547_s9 + $0x18] sm:$0xff]  }
 0x378   : > { %2844 = vst.msk [vmem:[#allocation3 + $0x8] sm:$0x3f] %vm2843_vm3, %v2841_v56  ;;  %v5286_v56 = vld [vmem:[%s6547_s9 + $0x38] sm:$0xff]  }
 0x37f   : > { %v2856_v35 = vld [vmem:[#allocation3 + $0x1] sm:$0xff]  ;;  %v2857_v4 = vld [vmem:[#allocation3 + $0x9] sm:$0xf] }
 0x380   : > { %v2846_v20 = vld [vmem:[#allocation3 + $0x8] sm:$0xf]  ;;  %v2858_v33 = vpack.c.bf16 %v2857_v4, %v2856_v35 }
 0x381   : > { %v2847_v30 = vpack.c.bf16 %v2846_v20, %v2845_v44  ;;  %v3004_v39 = vld [vmem:[#allocation3 + $0x2] sm:$0xff]  ;;  %v3005_v47 = vld [vmem:[#allocation3 + $0xa] sm:$0xf] }
 0x382   : > { %5025 = vmatmul.mubr.msk.bf16.vlgmr.msra.gmra.mrb[168].mxu0 %vm1949_vm1, %v2858_v33  ;;  %v3006_v42 = vpack.c.bf16 %v3005_v47, %v3004_v39  ;;  %v4217_v47 = vld [vmem:[%s6546_s8] ss:$0 sm:$0xff] }
 0x383   : > { %5037 = vmatmul.mubr.msk.bf16.vlgmr.msra.gmra.mrb[168].mxu1 %vm1949_vm1, %v2847_v30  ;;  %5041 = vmatpush3.bf16.msra.mxu0 %v5263_v12 }
 0x384   : > { %5048 = vmatprep.mubr.msk.bf16.mxu0 %vm5312_vm0, %v5311_v1  ;;  %5042 = vmatprep.subr.bf16.mxu0 %v5311_v1 }
 0x385   : > { %5060 = vmatprep.mubr.msk.bf16.mxu1 %vm5312_vm0, %v5311_v1  ;;  %5053 = vmatpush3.bf16.msra.mxu1 %v5267_v40 }
 0x386   : > { %5054 = vmatprep.subr.bf16.mxu1 %v5311_v1 }
 0x387   : > { %5043 = vmatpush3.bf16.msra.mxu0 %v5264_v2 }
 0x388   : > { %5044 = vmatprep.subr.bf16.mxu0 %v5311_v1 }
 0x389   : > { %5055 = vmatpush3.bf16.msra.mxu1 %v5269_v34 }
 0x38a   : > { %5056 = vmatprep.subr.bf16.mxu1 %v5311_v1 }
 0x38b   : > { %5045 = vmatpush3.bf16.msra.mxu0 %v5265_v22 }
 0x38c   : > { %5046 = vmatprep.subr.bf16.mxu0 %v5311_v1 }
 0x38d   : > { %5057 = vmatpush3.bf16.msra.mxu1 %v5271_v48 }
 0x38e   : > { %5058 = vmatprep.subr.bf16.mxu1 %v5311_v1 }
 0x38f   : > { %5047 = vmatpush3.bf16.msra.mxu0 %v5266_v8 }
 0x390   : > { %5064 = vmatprep.subr.bf16.mxu0 %v5311_v1 }
 0x391   : > { %5059 = vmatpush3.bf16.msra.mxu1 %v5273_v50 }
 0x392   : > { %5049 = vmatmul.mubr.msk.bf16.vlgmr.msra.gmra.mrb[172].mxu0 %vm1949_vm1, %v3006_v42  ;;  %5076 = vmatprep.subr.bf16.mxu1 %v5311_v1 }
 0x393   : > { %5072 = vmatprep.mubr.msk.bf16.mxu0 %vm5312_vm0, %v5311_v1  ;;  %5065 = vmatpush3.bf16.msra.mxu0 %v5268_v61 }
 0x394   : > { %5066 = vmatprep.subr.bf16.mxu0 %v5311_v1 }
 0x397   : > { %5067 = vmatpush3.bf16.msra.mxu0 %v5270_v28 }
 0x398   : > { %5068 = vmatprep.subr.bf16.mxu0 %v5311_v1 }
 0x39b   : > { %5069 = vmatpush3.bf16.msra.mxu0 %v5272_v25 }
 0x39c   : > { %5070 = vmatprep.subr.bf16.mxu0 %v5311_v1 }
 0x39f   : > { %5071 = vmatpush3.bf16.msra.mxu0 %v5274_v63 }
 0x3a0   : > { %5088 = vmatprep.subr.bf16.mxu0 %v5311_v1 }
 0x455   : > { %v2929_v24 = vpop.f32.mrb[168].mxu0 }
 0x456   : > { %v2997_v36 = vpop.f32.mrb[168].mxu1  ;;  %v5026_v41 = vpop.f32.mrb[169].mxu0 }
 0x457   : > { %v2998_v52 = vadd.f32 %v2997_v36, %v2929_v24  ;;  %v5038_v53 = vpop.f32.mrb[169].mxu1  ;;  %v2932_v38 = vpop.f32.mrb[170].mxu0  ;;  %v5287_v41 = vld [vmem:[%s6547_s9 + $0x40] sm:$0xff]  }
 0x458   : > { %v3000_v54 = vpop.f32.mrb[170].mxu1  ;;  %v5027_v45 = vpop.f32.mrb[171].mxu0 }
 0x459   : > { %v3001_v58 = vadd.f32 %v3000_v54, %v2932_v38  ;;  %v5039_v3 = vpop.f32.mrb[171].mxu1  ;;  %v5288_v38 = vld [vmem:[%s6547_s9 + $0x48] sm:$0xff]   ;;  %v5289_v54 = vld [vmem:[%s6547_s9 + $0x50] sm:$0xff]  }
 0x465   : > { %v3077_v9 = vpop.f32.mrb[172].mxu0 }
 0x466   : > { %v3084_v0 = vadd.f32 %v3077_v9, %v2998_v52  ;;  %v5050_v46 = vpop.f32.mrb[173].mxu0  ;;  %v5291_v9 = vld [vmem:[%s6549_s11 + $0x20] sm:$0xff]  }
 0x467   : > { %v3080_v14 = vpop.f32.mrb[174].mxu0  ;;  %v5294_v46 = vld [vmem:[%s6549_s11 + $0x8] sm:$0xff]  }
 0x468   : > { %v3093_v60 = vadd.f32 %v4185_v55, %v3084_v0  ;;  %v3085_v51 = vadd.f32 %v3080_v14, %v3001_v58  ;;  %v5051_v15 = vpop.f32.mrb[175].mxu0  ;;  %v5290_v58 = vld [vmem:[%s6547_s9 + $0x58] sm:$0xff]   ;;  %v5293_v0 = vld [vmem:[%s6549_s11 + $0x28] sm:$0xff]   ;;  %v5295_v14 = vld [vmem:[%s6549_s11 + $0x30] sm:$0xff]  }
 0x469   : > { %v5298_v15 = vld [vmem:[%s6549_s11 + $0x18] sm:$0xff]  }
 0x46a   : > { %v3095_v49 = vmax.f32 %v3093_v60, 0.0  ;;  %v3094_v62 = vadd.f32 %v4185_v55, %v3085_v51  ;;  %v5292_v55 = vld [vmem:[%s6549_s11] sm:$0xff]   ;;  %v5296_v60 = vld [vmem:[%s6549_s11 + $0x10] sm:$0xff]   ;;  %v5297_v51 = vld [vmem:[%s6549_s11 + $0x38] sm:$0xff]  }
 0x46c   : > { %3097 = vst.msk [vmem:[#allocation2] sm:$0xff] %vm1949_vm1, %v3095_v49  ;;  %v3096_v57 = vmax.f32 %v3094_v62, 0.0 }
 0x46e   : > { %3099 = vst.msk [vmem:[#allocation2 + $0x8] sm:$0xf] %vm3098_vm4, %v3096_v57 }
 0x473   : > { %v3100_v11 = vld [vmem:[#allocation2] sm:$0xff] }
 0x475   : > { %v3111_v59 = vld [vmem:[#allocation2 + $0x1] sm:$0xff]  ;;  %v3112_v16 = vld [vmem:[#allocation2 + $0x9] sm:$0x3] }
 0x476   : > { %v3101_v26 = vld [vmem:[#allocation2 + $0x8] sm:$0x3]  ;;  %v3113_v27 = vpack.c.bf16 %v3112_v16, %v3111_v59  ;;  %v3260_v6 = vld [vmem:[#allocation2 + $0xa] sm:$0x3] }
 0x477   : > { %v3102_v29 = vpack.c.bf16 %v3101_v26, %v3100_v11  ;;  %v3259_v21 = vld [vmem:[#allocation2 + $0x2] sm:$0xff] }
 0x478   : > { %5061 = vmatmul.mubr.msk.bf16.vlgmr.msra.gmra.mrb[172].mxu1 %vm1949_vm1, %v3113_v27  ;;  %v3261_v7 = vpack.c.bf16 %v3260_v6, %v3259_v21 }
 0x479   : > { %5073 = vmatmul.mubr.msk.bf16.vlgmr.msra.gmra.mrb[176].mxu0 %vm1949_vm1, %v3102_v29  ;;  %5077 = vmatpush3.bf16.msra.mxu1 %v5275_v23 }
 0x47a   : > { %5084 = vmatprep.mubr.msk.bf16.mxu1 %vm5312_vm0, %v5311_v1  ;;  %5078 = vmatprep.subr.bf16.mxu1 %v5311_v1 }
 0x47b   : > { %5096 = vmatprep.mubr.msk.bf16.mxu0 %vm5312_vm0, %v5311_v1  ;;  %5089 = vmatpush3.bf16.msra.mxu0 %v5280_v10 }
 0x47c   : > { %5090 = vmatprep.subr.bf16.mxu0 %v5311_v1 }
 0x47d   : > { %5079 = vmatpush3.bf16.msra.mxu1 %v5276_v13  ;;  %v4249_v13 = vld [vmem:[%s6548_s10] ss:$0 sm:$0xff] }
 0x47e   : > { %5080 = vmatprep.subr.bf16.mxu1 %v5311_v1 }
 0x47f   : > { %5091 = vmatpush3.bf16.msra.mxu0 %v5282_v43  ;;  %v5299_v43 = vld [vmem:[%s6549_s11 + $0x40] sm:$0xff]  }
 0x480   : > { %5092 = vmatprep.subr.bf16.mxu0 %v5311_v1 }
 0x481   : > { %5081 = vmatpush3.bf16.msra.mxu1 %v5277_v19 }
 0x482   : > { %5082 = vmatprep.subr.bf16.mxu1 %v5311_v1 }
 0x483   : > { %5093 = vmatpush3.bf16.msra.mxu0 %v5284_v5 }
 0x484   : > { %5094 = vmatprep.subr.bf16.mxu0 %v5311_v1 }
 0x485   : > { %5083 = vmatpush3.bf16.msra.mxu1 %v5278_v32 }
 0x486   : > { %5100 = vmatprep.subr.bf16.mxu1 %v5311_v1 }
 0x487   : > { %5095 = vmatpush3.bf16.msra.mxu0 %v5286_v56  ;;  %v5301_v56 = vld [vmem:[%s6549_s11 + $0x50] sm:$0xff]  }
 0x488   : > { %5085 = vmatmul.mubr.msk.bf16.vlgmr.msra.gmra.mrb[176].mxu1 %vm1949_vm1, %v3261_v7  ;;  %5112 = vmatprep.subr.bf16.mxu0 %v5311_v1 }
 0x489   : > { %5108 = vmatprep.mubr.msk.bf16.mxu1 %vm5312_vm0, %v5311_v1  ;;  %5101 = vmatpush3.bf16.msra.mxu1 %v5279_v17 }
 0x48a   : > { %5102 = vmatprep.subr.bf16.mxu1 %v5311_v1 }
 0x48d   : > { %5103 = vmatpush3.bf16.msra.mxu1 %v5281_v37 }
 0x48e   : > { %5104 = vmatprep.subr.bf16.mxu1 %v5311_v1 }
 0x491   : > { %5105 = vmatpush3.bf16.msra.mxu1 %v5283_v31 }
 0x492   : > { %5106 = vmatprep.subr.bf16.mxu1 %v5311_v1 }
 0x495   : > { %5107 = vmatpush3.bf16.msra.mxu1 %v5285_v18  ;;  %v5300_v18 = vld [vmem:[%s6549_s11 + $0x48] sm:$0xff]  }
 0x496   : > { %5124 = vmatprep.subr.bf16.mxu1 %v5311_v1 }
 0x54b   : > { %v3184_v44 = vpop.f32.mrb[172].mxu1 }
 0x54c   : > { %v3252_v12 = vpop.f32.mrb[176].mxu0  ;;  %v5062_v4 = vpop.f32.mrb[173].mxu1 }
 0x54d   : > { %v3253_v35 = vadd.f32 %v3252_v12, %v3184_v44  ;;  %v5074_v20 = vpop.f32.mrb[177].mxu0  ;;  %v3187_v33 = vpop.f32.mrb[174].mxu1  ;;  %v5302_v44 = vld [vmem:[%s6549_s11 + $0x58] sm:$0xff]  }
 0x54e   : > { %v3255_v30 = vpop.f32.mrb[178].mxu0  ;;  %v5063_v22 = vpop.f32.mrb[175].mxu1 }
 0x54f   : > { %v3256_v2 = vadd.f32 %v3255_v30, %v3187_v33  ;;  %v5075_v8 = vpop.f32.mrb[179].mxu0 }
 0x55b   : > { %v3332_v39 = vpop.f32.mrb[176].mxu1 }
 0x55c   : > { %v3339_v42 = vadd.f32 %v3332_v39, %v3253_v35  ;;  %v5086_v40 = vpop.f32.mrb[177].mxu1 }
 0x55d   : > { %v3335_v61 = vpop.f32.mrb[178].mxu1 }
 0x55e   : > { %v3348_v34 = vadd.f32 %v4217_v47, %v3339_v42  ;;  %v3340_v28 = vadd.f32 %v3335_v61, %v3256_v2  ;;  %v5087_v48 = vpop.f32.mrb[179].mxu1 }
 0x560   : > { %v3350_v25 = vmax.f32 %v3348_v34, 0.0  ;;  %v3349_v50 = vadd.f32 %v4217_v47, %v3340_v28 }
 0x562   : > { %3352 = vst.msk [vmem:[#allocation3] sm:$0xff] %vm1949_vm1, %v3350_v25  ;;  %v3351_v63 = vmax.f32 %v3349_v50, 0.0 }
 0x564   : > { %3353 = vst.msk [vmem:[#allocation3 + $0x8] sm:$0x3] %vm2830_vm2, %v3351_v63 }
 0x569   : > { %v3354_v24 = vld [vmem:[#allocation3] sm:$0xff] }
 0x56a   : > { %v3355_v36 = vpack.c.bf16 %v3354_v24, %v3354_v24 }
 0x56b   : > { %v3364_v52 = vld [vmem:[#allocation3 + $0x1] sm:$0xff] }
 0x56c   : > { %5109 = vmatmul.mubr.msk.bf16.vlgmr.msra.gmra.mrb[180].mxu1 %vm1949_vm1, %v3355_v36  ;;  %v3365_v53 = vpack.c.bf16 %v3364_v52, %v3364_v52  ;;  %v3509_v45 = vld [vmem:[#allocation3 + $0x2] sm:$0xff] }
 0x56d   : > { %5132 = vmatprep.mubr.msk.bf16.mxu1 %vm5312_vm0, %v5311_v1  ;;  %v3510_v3 = vpack.c.bf16 %v3509_v45, %v3509_v45  ;;  %5125 = vmatpush3.bf16.msra.mxu1 %v5291_v9 }
 0x56e   : > { %5097 = vmatmul.mubr.msk.bf16.vlgmr.msra.gmra.mrb[180].mxu0 %vm1949_vm1, %v3365_v53  ;;  %5126 = vmatprep.subr.bf16.mxu1 %v5311_v1 }
 0x56f   : > { %5113 = vmatpush3.bf16.msra.mxu0 %v5287_v41  ;;  %5120 = vmatprep.mubr.msk.bf16.mxu0 %vm5312_vm0, %v5311_v1 }
 0x570   : > { %5114 = vmatprep.subr.bf16.mxu0 %v5311_v1 }
 0x571   : > { %5127 = vmatpush3.bf16.msra.mxu1 %v5293_v0 }
 0x572   : > { %5128 = vmatprep.subr.bf16.mxu1 %v5311_v1 }
 0x573   : > { %5115 = vmatpush3.bf16.msra.mxu0 %v5288_v38 }
 0x574   : > { %5116 = vmatprep.subr.bf16.mxu0 %v5311_v1 }
 0x575   : > { %5129 = vmatpush3.bf16.msra.mxu1 %v5295_v14 }
 0x576   : > { %5130 = vmatprep.subr.bf16.mxu1 %v5311_v1 }
 0x577   : > { %5117 = vmatpush3.bf16.msra.mxu0 %v5289_v54 }
 0x578   : > { %5118 = vmatprep.subr.bf16.mxu0 %v5311_v1 }
 0x579   : > { %5131 = vmatpush3.bf16.msra.mxu1 %v5297_v51 }
 0x57a   : > { %5148 = vmatprep.subr.bf16.mxu1 %v5311_v1 }
 0x57b   : > { %5119 = vmatpush3.bf16.msra.mxu0 %v5290_v58 }
 0x57c   : > { %5136 = vmatprep.subr.bf16.mxu0 %v5311_v1 }
 0x57e   : > { %5121 = vmatmul.mubr.msk.bf16.vlgmr.msra.gmra.mrb[184].mxu0 %vm1949_vm1, %v3510_v3 }
 0x57f   : > { %5144 = vmatprep.mubr.msk.bf16.mxu0 %vm5312_vm0, %v5311_v1  ;;  %5137 = vmatpush3.bf16.msra.mxu0 %v5292_v55 }
 0x580   : > { %5138 = vmatprep.subr.bf16.mxu0 %v5311_v1 }
 0x583   : > { %5139 = vmatpush3.bf16.msra.mxu0 %v5294_v46 }
 0x584   : > { %5140 = vmatprep.subr.bf16.mxu0 %v5311_v1 }
 0x587   : > { %5141 = vmatpush3.bf16.msra.mxu0 %v5296_v60 }
 0x588   : > { %5142 = vmatprep.subr.bf16.mxu0 %v5311_v1 }
 0x58b   : > { %5143 = vmatpush3.bf16.msra.mxu0 %v5298_v15 }
 0x63f   : > { %v3503_v49 = vpop.f32.mrb[180].mxu1 }
 0x640   : > { %v5110_v62 = vpop.f32.mrb[181].mxu1 }
 0x641   : > { %v3436_v57 = vpop.f32.mrb[180].mxu0  ;;  %v3506_v11 = vpop.f32.mrb[182].mxu1 }
 0x642   : > { %v3504_v23 = vadd.f32 %v3503_v49, %v3436_v57  ;;  %v5098_v59 = vpop.f32.mrb[181].mxu0  ;;  %v5111_v16 = vpop.f32.mrb[183].mxu1 }
 0x643   : > { %v3439_v26 = vpop.f32.mrb[182].mxu0 }
 0x644   : > { %v5099_v27 = vpop.f32.mrb[183].mxu0 }
 0x651   : > { %v3581_v29 = vpop.f32.mrb[184].mxu0 }
 0x652   : > { %v3587_v19 = vadd.f32 %v3581_v29, %v3504_v23  ;;  %v5122_v32 = vpop.f32.mrb[185].mxu0 }
 0x653   : > { %v3584_v21 = vpop.f32.mrb[186].mxu0 }
 0x654   : > { %v3595_v6 = vadd.f32 %v4249_v13, %v3587_v19  ;;  %v5123_v7 = vpop.f32.mrb[187].mxu0 }
 0x656   : > { %v3596_v17 = vmax.f32 %v3595_v6, 0.0 }
 0x658   : > { %3597 = vst.msk [vmem:[#allocation2] sm:$0xff] %vm1949_vm1, %v3596_v17 }
 0x65f   : > { %v3608_v10 = vld [vmem:[#allocation2 + $0x1] sm:$0x3f] }
 0x660   : > { %v3598_v37 = vld [vmem:[#allocation2] sm:$0x3f]  ;;  %v3609_v31 = vpack.c.bf16 %v3608_v10, %v3608_v10 }
 0x661   : > { %v3599_v5 = vpack.c.bf16 %v3598_v37, %v3598_v37  ;;  %v3753_v12 = vld [vmem:[#allocation2 + $0x2] sm:$0x3f] }
 0x662   : > { %5133 = vmatmul.mubr.msk.bf16.vlgmr.msra.gmra.mrb[184].mxu1 %vm1949_vm1, %v3609_v31  ;;  %v3754_v35 = vpack.c.bf16 %v3753_v12, %v3753_v12 }
 0x663   : > { %5145 = vmatmul.mubr.msk.bf16.vlgmr.msra.gmra.mrb[188].mxu0 %vm1949_vm1, %v3599_v5  ;;  %5149 = vmatpush3.bf16.msra.mxu1 %v5299_v43 }
 0x664   : > { %5156 = vmatprep.mubr.msk.bf16.mxu1 %vm5312_vm0, %v5311_v1  ;;  %5150 = vmatprep.subr.bf16.mxu1 %v5311_v1 }
 0x667   : > { %5151 = vmatpush3.bf16.msra.mxu1 %v5300_v18 }
 0x668   : > { %5152 = vmatprep.subr.bf16.mxu1 %v5311_v1 }
 0x66b   : > { %5153 = vmatpush3.bf16.msra.mxu1 %v5301_v56 }
 0x66c   : > { %5154 = vmatprep.subr.bf16.mxu1 %v5311_v1  ;;  %v4281_v1 = vld [vmem:[%s6550_s12] ss:$0 sm:$0xff] }
 0x66f   : > { %5155 = vmatpush3.bf16.msra.mxu1 %v5302_v44 }
 0x672   : > { %5157 = vmatmul.mubr.msk.bf16.vlgmr.msra.gmra.mrb[188].mxu1 %vm1949_vm1, %v3754_v35 }
 0x735   : > { %v3680_v4 = vpop.f32.mrb[184].mxu1 }
 0x736   : > { %v3747_v20 = vpop.f32.mrb[188].mxu0  ;;  %v5134_v30 = vpop.f32.mrb[185].mxu1 }
 0x737   : > { %v3748_v33 = vadd.f32 %v3747_v20, %v3680_v4  ;;  %v5146_v2 = vpop.f32.mrb[189].mxu0  ;;  %v3683_v22 = vpop.f32.mrb[186].mxu1 }
 0x738   : > { %v3750_v8 = vpop.f32.mrb[190].mxu0  ;;  %v5135_v39 = vpop.f32.mrb[187].mxu1 }
 0x739   : > { %v5147_v47 = vpop.f32.mrb[191].mxu0 }
 0x745   : > { %v3825_v42 = vpop.f32.mrb[188].mxu1 }
 0x746   : > { %v3831_v40 = vadd.f32 %v3825_v42, %v3748_v33  ;;  %v5158_v61 = vpop.f32.mrb[189].mxu1 }
 0x747   : > { %v3828_v34 = vpop.f32.mrb[190].mxu1 }
 0x748   : > { %v3839_v28 = vadd.f32 %v4281_v1, %v3831_v40  ;;  %v5159_v48 = vpop.f32.mrb[191].mxu1 }
 0x74a   : > { %v3840_v25 = vmax.f32 %v3839_v28, 0.0 }
 0x74c   : > { %3841 = vst.msk [vmem:[#allocation4] sm:$0x3f] %vm2843_vm3, %v3840_v25 }
 0x753   : > { %v3842_v50 = vld [vmem:[#allocation4] ss:$3 sm:$0x3]  ;;  %v3843_v63 = vld [vmem:[#allocation4 + $0x1] ss:$3 sm:$0x3] }
 0x754   : > { %v3844_v24 = vmax.f32 %v3842_v50, %v3843_v63  ;;  %v3845_v36 = vld [vmem:[#allocation4 + $0x2] ss:$3 sm:$0x3] }
 0x756   : > { %v3846_v52 = vmax.f32 %v3844_v24, %v3845_v36 }
 0x758   : > { %v3847_v41 = vpack.c.bf16 %v3846_v52, %v3846_v52 }
 0x75a   : > { %3849 = vst.msk [vmem:[%s436_s29] sm:$0x1] %vm3848_vm5, %v3847_v41 }
 0x75b PF: > { %s23_s25 = sadd.s32 1, %s5309_s25  }
 0x75c   : > { %p20_p4 = scmp.ge.s32.totalorder %s23_s25, 4  }
 0x75e   :  { %22 = sbr.rel (!%p20_p4) target bundleno = 1 (0x1), region = 139 }

</bundles_post_ra>
